<compile_context>
chip_gen: v6e
topology: v6e:2x2x1
jax: 0.10.0
libtpu: 0.0.40
codegen_flags: <defaults>
</compile_context>

<pallas_src>
import functools
import math

import jax
import jax.numpy as jnp
from jax.experimental import pallas as pl
from jax.experimental.pallas import tpu as pltpu

# ---- model hyper-parameters (module defaults) ----
T = 8                        # sequence length
C = 16                       # in_channels
D_MODEL = C                  # d_model=None -> d_model == in_channels (no inconv)
N_HEAD, D_K = 8, 16
HK = N_HEAD * D_K            # 128: query/key width (head-major)
HD = N_HEAD * D_MODEL        # 128: multi-head output width fed to the MLP
MLP_DIMS = (256, 128)
MAX_POS = 366
PE_T = 1000.0
EPS = 1e-5
INV_TEMP = 1.0 / (float(D_K) ** 0.5)

B = 64                       # demo batch (review: use a realistic-ish batch)
BLOCK_B = 32                 # batch block per grid step -> grid=(2,), even for v7x


# --------------------------------------------------------------------------- #
# Kernel
# --------------------------------------------------------------------------- #
def ltae_kernel(x_ref, pe_ref,
                ln_g, ln_b, w_qk, b_qk, wfc2, bfc2,
                wm1, bm1, wm2, bm2, oln_g, oln_b,
                g_head, e_exp, d_tile, rep_th, tmask,
                out_ref, attn_ref):
    """One grid step: BLOCK_B sequences (= BLOCK_B*T token rows).

    Activations stay 2-D and lane-dense ([rows, 128/256]) wherever possible; the
    only reshapes are leading-dim splits/merges (free, no relayout).
    """
    x = x_ref[...]                                    # [rows, D] f32
    rows = x.shape[0]
    bb = rows // T

    # ---- input LayerNorm over channels ----
    mu = jnp.mean(x, axis=-1, keepdims=True)
    var = jnp.mean((x - mu) ** 2, axis=-1, keepdims=True)
    xn = (x - mu) * jax.lax.rsqrt(var + EPS) * ln_g[...] + ln_b[...]

    # ---- add pre-gathered positional encoding; enc is also the value tensor ----
    enc_bf = (xn + pe_ref[...]).astype(jnp.bfloat16)  # [rows, D] bf16

    # ---- fused Q|K projection: one K=16 matmul, split by 128-aligned lane slices ----
    qk = jnp.dot(enc_bf, w_qk[...], preferred_element_type=jnp.float32) + b_qk[...]   # [rows, 2*HK]
    q_all = qk[:, :HK]                                # [rows, HK]
    k_all = qk[:, HK:]                                # [rows, HK]

    # ---- master query: mean over T, (BN-folded) Linear, 1/temperature folded in ----
    q_mean = jnp.mean(q_all.reshape(bb, T, HK), axis=1)                                # [bb, HK]
    q = jnp.dot(q_mean.astype(jnp.bfloat16), wfc2[...],
                preferred_element_type=jnp.float32) + bfc2[...]
    q = q * INV_TEMP                                                                   # [bb, HK]

    # ---- scores[b,t,h] = sum_d q[b,h*dk+d] * k[b,t,h*dk+d]
    #      (lane-dense elementwise product + constant [HK,H] matmul; kept f32 for
    #       softmax parity per review) ----
    prod = k_all.reshape(bb, T, HK) * q[:, None, :]                                    # [bb, T, HK]
    scores = jnp.dot(prod.reshape(rows, HK), g_head[...],
                     preferred_element_type=jnp.float32).reshape(bb, T, N_HEAD)        # [bb, T, H]

    # ---- softmax over T (attention dropout = identity in eval mode) ----
    m = jnp.max(scores, axis=1, keepdims=True)
    e = jnp.exp(scores - m)
    denom = jnp.sum(e, axis=1, keepdims=True)
    attn = e * pl.reciprocal(denom, approx=False)                                      # [bb, T, H]
    attn_2d = attn.reshape(rows, N_HEAD)              # free (leading-dim merge)

    # ---- lane-dense attention output [bb, T*H] without a minor-dims relayout:
    #      replicate head values across the T lane-groups (constant 0/1 matmul),
    #      mask by time slot, reduce over T sublane-groups ----
    attn_rep = jnp.dot(attn_2d, rep_th[...], preferred_element_type=jnp.float32)       # [rows, T*H]
    attn_ref[...] = jnp.sum(attn_rep.reshape(bb, T, T * N_HEAD) * tmask[...][None],
                            axis=1).astype(attn_ref.dtype)                             # [bb, T*H]

    # ---- output = attn @ v, produced directly lane-dense as [bb, H*D]:
    #      o[b, h*D+d] = sum_t attn[b,t,h] * enc[b,t,d]   (bf16 0/1 structural matmuls) ----
    attn_lanes = jnp.dot(attn_2d.astype(jnp.bfloat16), e_exp[...],
                         preferred_element_type=jnp.float32)                           # [rows, H*D]
    enc_lanes = jnp.dot(enc_bf, d_tile[...], preferred_element_type=jnp.float32)       # [rows, H*D]
    o = jnp.sum((attn_lanes * enc_lanes).reshape(bb, T, HD), axis=1)                   # [bb, H*D]

    # ---- MLP (BatchNorm folded into first Linear) -> ReLU -> Linear ----
    h1 = jnp.dot(o.astype(jnp.bfloat16), wm1[...],
                 preferred_element_type=jnp.float32) + bm1[...]
    h1 = jnp.maximum(h1, 0.0)
    h2 = jnp.dot(h1.astype(jnp.bfloat16), wm2[...],
                 preferred_element_type=jnp.float32) + bm2[...]                        # [bb, 128]

    # ---- output LayerNorm ----
    mu2 = jnp.mean(h2, axis=-1, keepdims=True)
    var2 = jnp.mean((h2 - mu2) ** 2, axis=-1, keepdims=True)
    out_ref[...] = ((h2 - mu2) * jax.lax.rsqrt(var2 + EPS)
                    * oln_g[...] + oln_b[...]).astype(out_ref.dtype)


# --------------------------------------------------------------------------- #
# Host-side builders / parameter prep
# --------------------------------------------------------------------------- #
def build_pe_table(d_model=D_MODEL, max_len=MAX_POS, temp=PE_T):
    position = jnp.arange(max_len, dtype=jnp.float32)[:, None]
    div_term = jnp.exp(jnp.arange(0, d_model, 2, dtype=jnp.float32)
                       * (-math.log(temp) / d_model))
    ang = position * div_term
    pe = jnp.zeros((max_len, d_model), jnp.float32)
    pe = pe.at[:, 0::2].set(jnp.sin(ang))
    pe = pe.at[:, 1::2].set(jnp.cos(ang))
    return pe


def build_structural_mats():
    """Constant 0/1 matrices turning per-head reshapes/broadcasts into MXU matmuls."""
    col = jnp.arange(HD)
    th = jnp.arange(T * N_HEAD)
    # g_head[j, h] = 1 iff key/query column j belongs to head h (j // d_k == h); f32 for score parity.
    g_head = (jnp.arange(HK)[:, None] // D_K
              == jnp.arange(N_HEAD)[None, :]).astype(jnp.float32)                         # [HK, H]
    # e_exp[h, h*D + d] = 1 : spreads one attention weight across that head's D lanes.
    e_exp = (jnp.arange(N_HEAD)[:, None] == col[None, :] // D_MODEL).astype(jnp.bfloat16)  # [H, HD]
    # d_tile[d, h*D + d] = 1 : tiles the (head-shared) value vector across all heads.
    d_tile = (jnp.arange(D_MODEL)[:, None] == col[None, :] % D_MODEL).astype(jnp.bfloat16) # [D, HD]
    # rep_th[h, t*H + h'] = 1 iff h == h' : replicates head weights across T lane-groups.
    rep_th = (jnp.arange(N_HEAD)[:, None] == th[None, :] % N_HEAD).astype(jnp.float32)     # [H, T*H]
    # tmask[t', t*H + h] = 1 iff t' == t : selects the matching time slot.
    tmask = (jnp.arange(T)[:, None] == th[None, :] // N_HEAD).astype(jnp.float32)          # [T, T*H]
    return g_head, e_exp, d_tile, rep_th, tmask


def init_params(key):
    """Raw parameters mirroring the PyTorch module's init (pre-transposed to [in,out])."""
    hk = N_HEAD * D_K
    ks = iter(jax.random.split(key, 32))

    def uniform_lin(fan_in, fan_out):
        bound = 1.0 / math.sqrt(fan_in)
        w = jax.random.uniform(next(ks), (fan_in, fan_out), jnp.float32, -bound, bound)
        b = jax.random.uniform(next(ks), (1, fan_out), jnp.float32, -bound, bound)
        return w, b

    def normal_lin(fan_in, fan_out, std):
        w = jax.random.normal(next(ks), (fan_in, fan_out), jnp.float32) * std
        bound = 1.0 / math.sqrt(fan_in)
        b = jax.random.uniform(next(ks), (1, fan_out), jnp.float32, -bound, bound)
        return w, b

    def bn_params(n):
        g = 1.0 + 0.05 * jax.random.normal(next(ks), (1, n), jnp.float32)
        b = 0.05 * jax.random.normal(next(ks), (1, n), jnp.float32)
        rm = 0.1 * jax.random.normal(next(ks), (1, n), jnp.float32)
        rv = 1.0 + 0.1 * jnp.abs(jax.random.normal(next(ks), (1, n), jnp.float32))
        return g, b, rm, rv

    ln_g = 1.0 + 0.05 * jax.random.normal(next(ks), (1, D_MODEL), jnp.float32)
    ln_b = 0.05 * jax.random.normal(next(ks), (1, D_MODEL), jnp.float32)
    wq, bq = normal_lin(D_MODEL, hk, math.sqrt(2.0 / D_K))
    wk, bk = normal_lin(D_MODEL, hk, math.sqrt(2.0 / D_K))
    bn1_g, bn1_b, bn1_m, bn1_v = bn_params(hk)
    wfc2, bfc2 = uniform_lin(hk, hk)
    wm1, bm1 = uniform_lin(N_HEAD * D_MODEL, MLP_DIMS[0])
    bnm_g, bnm_b, bnm_m, bnm_v = bn_params(MLP_DIMS[0])
    wm2, bm2 = uniform_lin(MLP_DIMS[0], MLP_DIMS[1])
    oln_g = 1.0 + 0.05 * jax.random.normal(next(ks), (1, MLP_DIMS[1]), jnp.float32)
    oln_b = 0.05 * jax.random.normal(next(ks), (1, MLP_DIMS[1]), jnp.float32)

    return (ln_g, ln_b, wq, bq, wk, bk,
            bn1_g, bn1_b, bn1_m, bn1_v, wfc2, bfc2,
            wm1, bm1, bnm_g, bnm_b, bnm_m, bnm_v, wm2, bm2,
            oln_g, oln_b)


def fold_params(params):
    """Eval-mode prep: fold BatchNorms into adjacent Linears (exact algebra), fuse the
    Q|K projection into one weight, and pre-cast matmul weights to bf16."""
    (ln_g, ln_b, wq, bq, wk, bk,
     bn1_g, bn1_b, bn1_m, bn1_v, wfc2, bfc2,
     wm1, bm1, bnm_g, bnm_b, bnm_m, bnm_v, wm2, bm2,
     oln_g, oln_b) = params

    # fc2 = BN(hk) -> Linear(hk,hk): BN precedes the linear -> scale input rows of W.
    s1 = bn1_g / jnp.sqrt(bn1_v + EPS)
    t1 = bn1_b - bn1_m * s1
    wfc2_f = wfc2 * s1.reshape(-1, 1)
    bfc2_f = t1 @ wfc2 + bfc2

    # mlp = Linear(HD,256) -> BN(256) -> ReLU: BN follows the linear -> scale output cols.
    s2 = bnm_g / jnp.sqrt(bnm_v + EPS)
    t2 = bnm_b - bnm_m * s2
    wm1_f = wm1 * s2
    bm1_f = bm1 * s2 + t2

    bf16 = jnp.bfloat16
    w_qk = jnp.concatenate([wq, wk], axis=1).astype(bf16)    # [D, 2*HK] fused projection
    b_qk = jnp.concatenate([bq, bk], axis=1)                 # [1, 2*HK]
    return (ln_g.reshape(1, D_MODEL), ln_b.reshape(1, D_MODEL),
            w_qk, b_qk,
            wfc2_f.astype(bf16), bfc2_f,
            wm1_f.astype(bf16), bm1_f,
            wm2.astype(bf16), bm2,
            oln_g, oln_b)


# --------------------------------------------------------------------------- #
# Wrapper
# --------------------------------------------------------------------------- #
def _resident(arr):
    """Whole-array (grid-invariant) VMEM block: weights stay resident across steps."""
    n = arr.ndim
    return pl.BlockSpec(arr.shape, lambda i, n=n: (0,) * n)


def _ltae_forward_impl(x, positions, pe_table, smats, kweights, *, block_b):
    batch, seq, ch = x.shape
    assert seq == T and ch == D_MODEL
    assert batch % block_b == 0 and (block_b % 8 == 0 or block_b == batch)

    rows_blk = block_b * T
    x2 = x.reshape(batch * T, D_MODEL)                                    # free flatten
    # Pre-gather positional encodings in XLA ([B*T, D] ~ a few KB) — replaces the
    # in-kernel one-hot @ PE-table matmul.  PyTorch also clamps out-of-range positions.
    pos_idx = jnp.clip(positions, 0, MAX_POS - 1).astype(jnp.int32).reshape(-1)
    pe2 = pe_table[pos_idx]                                               # [B*T, D]

    row_map = lambda i: (i, 0)
    weights = tuple(kweights) + tuple(smats)
    in_specs = ([pl.BlockSpec((rows_blk, D_MODEL), row_map),              # x
                 pl.BlockSpec((rows_blk, D_MODEL), row_map)]              # pe rows
                + [_resident(w) for w in weights])
    out_specs = (pl.BlockSpec((block_b, MLP_DIMS[-1]), row_map),          # [B, 128]
                 pl.BlockSpec((block_b, T * N_HEAD), row_map))            # [B, T*H] lane-dense

    out, attn_wide = pl.pallas_call(
        ltae_kernel,
        grid=(batch // block_b,),
        out_shape=(jax.ShapeDtypeStruct((batch, MLP_DIMS[-1]), jnp.float32),
                   jax.ShapeDtypeStruct((batch, T * N_HEAD), jnp.float32)),
        in_specs=in_specs,
        out_specs=out_specs,
        compiler_params=pltpu.CompilerParams(
            dimension_semantics=("parallel",)),       # even grid -> both TCs on v7x
    )(x2, pe2, *weights)

    # Match the PyTorch module's return layout (attn is [n_head, B, T]).
    # TODO(synk): the tiny [B,T,H]->[H,B,T] permute stays in XLA; producing [H,B,T]
    # in-kernel would need a batch-axis relayout for negligible gain at these sizes.
    attn = jnp.transpose(attn_wide.reshape(batch, T, N_HEAD), (2, 0, 1))
    return out, attn


ltae_forward = jax.jit(_ltae_forward_impl, static_argnames=("block_b",))


# --------------------------------------------------------------------------- #
if __name__ == "__main__":
    key = jax.random.PRNGKey(0)
    kx, kpos, kparam = jax.random.split(key, 3)
    x = jax.random.normal(kx, (B, T, C), jnp.float32)
    positions = jax.random.randint(kpos, (B, T), 0, MAX_POS)

    params = init_params(kparam)
    kweights = fold_params(params)          # BN folding + Q|K fuse + bf16 cast (done once)
    pe_table = build_pe_table()             # hoisted out of jit
    smats = build_structural_mats()

    out, attn = ltae_forward(x, positions, pe_table, smats, kweights, block_b=BLOCK_B)
    jax.block_until_ready((out, attn))

    assert out.shape == (B, MLP_DIMS[-1]), out.shape
    assert attn.shape == (N_HEAD, B, T), attn.shape
    assert bool(jnp.all(jnp.isfinite(out))) and bool(jnp.all(jnp.isfinite(attn)))
    assert bool(jnp.allclose(jnp.sum(attn, axis=-1), 1.0, atol=1e-3))  # softmax rows
    print("KERNEL_OK")
</pallas_src>

<mosaic_0001>
module attributes {stable_mosaic.version = 11 : i64} {
  func.func @ltae_kernel(%arg0: i32, %arg1: memref<256x16xf32, #tpu.memory_space<vmem>>, %arg2: memref<256x16xf32, #tpu.memory_space<vmem>>, %arg3: memref<1x16xf32, #tpu.memory_space<vmem>>, %arg4: memref<1x16xf32, #tpu.memory_space<vmem>>, %arg5: memref<16x256xbf16, #tpu.memory_space<vmem>>, %arg6: memref<1x256xf32, #tpu.memory_space<vmem>>, %arg7: memref<128x128xbf16, #tpu.memory_space<vmem>>, %arg8: memref<1x128xf32, #tpu.memory_space<vmem>>, %arg9: memref<128x256xbf16, #tpu.memory_space<vmem>>, %arg10: memref<1x256xf32, #tpu.memory_space<vmem>>, %arg11: memref<256x128xbf16, #tpu.memory_space<vmem>>, %arg12: memref<1x128xf32, #tpu.memory_space<vmem>>, %arg13: memref<1x128xf32, #tpu.memory_space<vmem>>, %arg14: memref<1x128xf32, #tpu.memory_space<vmem>>, %arg15: memref<128x8xf32, #tpu.memory_space<vmem>>, %arg16: memref<8x128xbf16, #tpu.memory_space<vmem>>, %arg17: memref<16x128xbf16, #tpu.memory_space<vmem>>, %arg18: memref<8x64xf32, #tpu.memory_space<vmem>>, %arg19: memref<8x64xf32, #tpu.memory_space<vmem>>, %arg20: memref<32x128xf32, #tpu.memory_space<vmem>>, %arg21: memref<32x64xf32, #tpu.memory_space<vmem>>) attributes {dimension_semantics = [#tpu.dimension_semantics<parallel>], iteration_bounds = array<i64: 2>, scalar_prefetch = 0 : i64, scratch_operands = 0 : i64, tpu.core_type = #tpu.core_type<tc>, window_params = [{transform_indices = @transform_0, window_bounds = array<i64: 256, 16>}, {transform_indices = @transform_1, window_bounds = array<i64: 256, 16>}, {pipeline_mode = #tpu.pipeline_mode<synchronous>, transform_indices = @transform_2, window_bounds = array<i64: 1, 16>}, {pipeline_mode = #tpu.pipeline_mode<synchronous>, transform_indices = @transform_3, window_bounds = array<i64: 1, 16>}, {pipeline_mode = #tpu.pipeline_mode<synchronous>, transform_indices = @transform_4, window_bounds = array<i64: 16, 256>}, {pipeline_mode = #tpu.pipeline_mode<synchronous>, transform_indices = @transform_5, window_bounds = array<i64: 1, 256>}, {pipeline_mode = #tpu.pipeline_mode<synchronous>, transform_indices = @transform_6, window_bounds = array<i64: 128, 128>}, {pipeline_mode = #tpu.pipeline_mode<synchronous>, transform_indices = @transform_7, window_bounds = array<i64: 1, 128>}, {pipeline_mode = #tpu.pipeline_mode<synchronous>, transform_indices = @transform_8, window_bounds = array<i64: 128, 256>}, {pipeline_mode = #tpu.pipeline_mode<synchronous>, transform_indices = @transform_9, window_bounds = array<i64: 1, 256>}, {pipeline_mode = #tpu.pipeline_mode<synchronous>, transform_indices = @transform_10, window_bounds = array<i64: 256, 128>}, {pipeline_mode = #tpu.pipeline_mode<synchronous>, transform_indices = @transform_11, window_bounds = array<i64: 1, 128>}, {pipeline_mode = #tpu.pipeline_mode<synchronous>, transform_indices = @transform_12, window_bounds = array<i64: 1, 128>}, {pipeline_mode = #tpu.pipeline_mode<synchronous>, transform_indices = @transform_13, window_bounds = array<i64: 1, 128>}, {pipeline_mode = #tpu.pipeline_mode<synchronous>, transform_indices = @transform_14, window_bounds = array<i64: 128, 8>}, {pipeline_mode = #tpu.pipeline_mode<synchronous>, transform_indices = @transform_15, window_bounds = array<i64: 8, 128>}, {pipeline_mode = #tpu.pipeline_mode<synchronous>, transform_indices = @transform_16, window_bounds = array<i64: 16, 128>}, {pipeline_mode = #tpu.pipeline_mode<synchronous>, transform_indices = @transform_17, window_bounds = array<i64: 8, 64>}, {pipeline_mode = #tpu.pipeline_mode<synchronous>, transform_indices = @transform_18, window_bounds = array<i64: 8, 64>}, {transform_indices = @transform_19, window_bounds = array<i64: 32, 128>}, {transform_indices = @transform_20, window_bounds = array<i64: 32, 64>}]} {
    %c0 = arith.constant 0 : index
    %c0_0 = arith.constant 0 : index
    %0 = vector.load %arg1[%c0, %c0_0] : memref<256x16xf32, #tpu.memory_space<vmem>>, vector<256x16xf32>
    %cst = arith.constant dense<0.000000e+00> : vector<256xf32>
    %1 = vector.multi_reduction <add>, %0, %cst [1] : vector<256x16xf32> to vector<256xf32>
    %2 = vector.shape_cast %1 : vector<256xf32> to vector<256x1xf32>
    %cst_1 = arith.constant 1.600000e+01 : f32
    %3 = vector.broadcast %cst_1 : f32 to vector<256x1xf32>
    %4 = arith.divf %2, %3 : vector<256x1xf32>
    %5 = vector.broadcast %4 : vector<256x1xf32> to vector<256x16xf32>
    %6 = arith.subf %0, %5 : vector<256x16xf32>
    %7 = arith.mulf %6, %6 : vector<256x16xf32>
    %cst_2 = arith.constant dense<0.000000e+00> : vector<256xf32>
    %8 = vector.multi_reduction <add>, %7, %cst_2 [1] : vector<256x16xf32> to vector<256xf32>
    %9 = vector.shape_cast %8 : vector<256xf32> to vector<256x1xf32>
    %cst_3 = arith.constant 1.600000e+01 : f32
    %10 = vector.broadcast %cst_3 : f32 to vector<256x1xf32>
    %11 = arith.divf %9, %10 : vector<256x1xf32>
    %12 = vector.broadcast %4 : vector<256x1xf32> to vector<256x16xf32>
    %13 = arith.subf %0, %12 : vector<256x16xf32>
    %cst_4 = arith.constant 9.99999974E-6 : f32
    %14 = vector.broadcast %cst_4 : f32 to vector<256x1xf32>
    %15 = arith.addf %11, %14 : vector<256x1xf32>
    %16 = math.rsqrt %15 : vector<256x1xf32>
    %17 = vector.broadcast %16 : vector<256x1xf32> to vector<256x16xf32>
    %18 = arith.mulf %13, %17 : vector<256x16xf32>
    %c0_5 = arith.constant 0 : index
    %c0_6 = arith.constant 0 : index
    %19 = vector.load %arg3[%c0_5, %c0_6] : memref<1x16xf32, #tpu.memory_space<vmem>>, vector<1x16xf32>
    %20 = vector.broadcast %19 : vector<1x16xf32> to vector<256x16xf32>
    %21 = arith.mulf %18, %20 : vector<256x16xf32>
    %c0_7 = arith.constant 0 : index
    %c0_8 = arith.constant 0 : index
    %22 = vector.load %arg4[%c0_7, %c0_8] : memref<1x16xf32, #tpu.memory_space<vmem>>, vector<1x16xf32>
    %23 = vector.broadcast %22 : vector<1x16xf32> to vector<256x16xf32>
    %24 = arith.addf %21, %23 : vector<256x16xf32>
    %c0_9 = arith.constant 0 : index
    %c0_10 = arith.constant 0 : index
    %25 = vector.load %arg2[%c0_9, %c0_10] : memref<256x16xf32, #tpu.memory_space<vmem>>, vector<256x16xf32>
    %26 = arith.addf %24, %25 : vector<256x16xf32>
    %27 = arith.truncf %26 : vector<256x16xf32> to vector<256x16xbf16>
    %c0_11 = arith.constant 0 : index
    %c0_12 = arith.constant 0 : index
    %28 = vector.load %arg5[%c0_11, %c0_12] : memref<16x256xbf16, #tpu.memory_space<vmem>>, vector<16x256xbf16>
    %cst_13 = arith.constant dense<0.000000e+00> : vector<256x256xf32>
    %29 = tpu.matmul %27, %28, %cst_13 {dimension_numbers = #tpu.dot_dimension_numbers<[1], [0], [0], [1], [0, 0, 1, 1], [], []>} : vector<256x16xbf16>, vector<16x256xbf16>, vector<256x256xf32> -> vector<256x256xf32>
    %c0_14 = arith.constant 0 : index
    %c0_15 = arith.constant 0 : index
    %30 = vector.load %arg6[%c0_14, %c0_15] : memref<1x256xf32, #tpu.memory_space<vmem>>, vector<1x256xf32>
    %31 = vector.broadcast %30 : vector<1x256xf32> to vector<256x256xf32>
    %32 = arith.addf %29, %31 : vector<256x256xf32>
    %33 = vector.extract_strided_slice %32 {offsets = [0, 0], sizes = [256, 128], strides = [1, 1]} : vector<256x256xf32> to vector<256x128xf32>
    %34 = vector.extract_strided_slice %32 {offsets = [0, 128], sizes = [256, 128], strides = [1, 1]} : vector<256x256xf32> to vector<256x128xf32>
    %35 = vector.shape_cast %33 : vector<256x128xf32> to vector<32x8x128xf32>
    %cst_16 = arith.constant dense<0.000000e+00> : vector<32x128xf32>
    %36 = vector.multi_reduction <add>, %35, %cst_16 [1] : vector<32x8x128xf32> to vector<32x128xf32>
    %cst_17 = arith.constant 8.000000e+00 : f32
    %37 = vector.broadcast %cst_17 : f32 to vector<32x128xf32>
    %38 = arith.divf %36, %37 : vector<32x128xf32>
    %39 = arith.truncf %38 : vector<32x128xf32> to vector<32x128xbf16>
    %c0_18 = arith.constant 0 : index
    %c0_19 = arith.constant 0 : index
    %40 = vector.load %arg7[%c0_18, %c0_19] : memref<128x128xbf16, #tpu.memory_space<vmem>>, vector<128x128xbf16>
    %cst_20 = arith.constant dense<0.000000e+00> : vector<32x128xf32>
    %41 = tpu.matmul %39, %40, %cst_20 {dimension_numbers = #tpu.dot_dimension_numbers<[1], [0], [0], [1], [0, 0, 1, 1], [], []>} : vector<32x128xbf16>, vector<128x128xbf16>, vector<32x128xf32> -> vector<32x128xf32>
    %c0_21 = arith.constant 0 : index
    %c0_22 = arith.constant 0 : index
    %42 = vector.load %arg8[%c0_21, %c0_22] : memref<1x128xf32, #tpu.memory_space<vmem>>, vector<1x128xf32>
    %43 = vector.broadcast %42 : vector<1x128xf32> to vector<32x128xf32>
    %44 = arith.addf %41, %43 : vector<32x128xf32>
    %cst_23 = arith.constant 2.500000e-01 : f32
    %45 = vector.broadcast %cst_23 : f32 to vector<32x128xf32>
    %46 = arith.mulf %44, %45 : vector<32x128xf32>
    %47 = vector.shape_cast %34 : vector<256x128xf32> to vector<32x8x128xf32>
    %48 = vector.shape_cast %46 : vector<32x128xf32> to vector<32x1x128xf32>
    %49 = vector.broadcast %48 : vector<32x1x128xf32> to vector<32x8x128xf32>
    %50 = arith.mulf %47, %49 : vector<32x8x128xf32>
    %51 = vector.shape_cast %50 : vector<32x8x128xf32> to vector<256x128xf32>
    %c0_24 = arith.constant 0 : index
    %c0_25 = arith.constant 0 : index
    %52 = vector.load %arg15[%c0_24, %c0_25] : memref<128x8xf32, #tpu.memory_space<vmem>>, vector<128x8xf32>
    %cst_26 = arith.constant dense<0.000000e+00> : vector<256x8xf32>
    %53 = tpu.matmul %51, %52, %cst_26 {dimension_numbers = #tpu.dot_dimension_numbers<[1], [0], [0], [1], [0, 0, 1, 1], [], []>} : vector<256x128xf32>, vector<128x8xf32>, vector<256x8xf32> -> vector<256x8xf32>
    %54 = vector.shape_cast %53 : vector<256x8xf32> to vector<32x8x8xf32>
    %cst_27 = arith.constant dense<0xFF800000> : vector<32x8xf32>
    %55 = vector.multi_reduction <maximumf>, %54, %cst_27 [1] : vector<32x8x8xf32> to vector<32x8xf32>
    %56 = vector.shape_cast %55 : vector<32x8xf32> to vector<32x1x8xf32>
    %57 = vector.broadcast %56 : vector<32x1x8xf32> to vector<32x8x8xf32>
    %58 = arith.subf %54, %57 : vector<32x8x8xf32>
    %59 = math.exp %58 : vector<32x8x8xf32>
    %cst_28 = arith.constant dense<0.000000e+00> : vector<32x8xf32>
    %60 = vector.multi_reduction <add>, %59, %cst_28 [1] : vector<32x8x8xf32> to vector<32x8xf32>
    %61 = vector.shape_cast %60 : vector<32x8xf32> to vector<32x1x8xf32>
    %62 = tpu.reciprocal %61 : vector<32x1x8xf32> -> vector<32x1x8xf32>
    %63 = vector.broadcast %62 : vector<32x1x8xf32> to vector<32x8x8xf32>
    %64 = arith.mulf %59, %63 : vector<32x8x8xf32>
    %65 = vector.shape_cast %64 : vector<32x8x8xf32> to vector<256x8xf32>
    %c0_29 = arith.constant 0 : index
    %c0_30 = arith.constant 0 : index
    %66 = vector.load %arg18[%c0_29, %c0_30] : memref<8x64xf32, #tpu.memory_space<vmem>>, vector<8x64xf32>
    %cst_31 = arith.constant dense<0.000000e+00> : vector<256x64xf32>
    %67 = tpu.matmul %65, %66, %cst_31 {dimension_numbers = #tpu.dot_dimension_numbers<[1], [0], [0], [1], [0, 0, 1, 1], [], []>} : vector<256x8xf32>, vector<8x64xf32>, vector<256x64xf32> -> vector<256x64xf32>
    %68 = vector.shape_cast %67 : vector<256x64xf32> to vector<32x8x64xf32>
    %c0_32 = arith.constant 0 : index
    %c0_33 = arith.constant 0 : index
    %69 = vector.load %arg19[%c0_32, %c0_33] : memref<8x64xf32, #tpu.memory_space<vmem>>, vector<8x64xf32>
    %70 = vector.shape_cast %69 : vector<8x64xf32> to vector<1x8x64xf32>
    %71 = vector.broadcast %70 : vector<1x8x64xf32> to vector<32x8x64xf32>
    %72 = arith.mulf %68, %71 : vector<32x8x64xf32>
    %cst_34 = arith.constant dense<0.000000e+00> : vector<32x64xf32>
    %73 = vector.multi_reduction <add>, %72, %cst_34 [1] : vector<32x8x64xf32> to vector<32x64xf32>
    %c0_35 = arith.constant 0 : index
    %c0_36 = arith.constant 0 : index
    %74 = vector.load %arg21[%c0_35, %c0_36] : memref<32x64xf32, #tpu.memory_space<vmem>>, vector<32x64xf32>
    tpu.vector_store %arg21[%c0_35, %c0_36], %73 {strides = array<i32>} : memref<32x64xf32, #tpu.memory_space<vmem>>, vector<32x64xf32>,
    %75 = arith.truncf %65 : vector<256x8xf32> to vector<256x8xbf16>
    %c0_37 = arith.constant 0 : index
    %c0_38 = arith.constant 0 : index
    %76 = vector.load %arg16[%c0_37, %c0_38] : memref<8x128xbf16, #tpu.memory_space<vmem>>, vector<8x128xbf16>
    %cst_39 = arith.constant dense<0.000000e+00> : vector<256x128xf32>
    %77 = tpu.matmul %75, %76, %cst_39 {dimension_numbers = #tpu.dot_dimension_numbers<[1], [0], [0], [1], [0, 0, 1, 1], [], []>} : vector<256x8xbf16>, vector<8x128xbf16>, vector<256x128xf32> -> vector<256x128xf32>
    %c0_40 = arith.constant 0 : index
    %c0_41 = arith.constant 0 : index
    %78 = vector.load %arg17[%c0_40, %c0_41] : memref<16x128xbf16, #tpu.memory_space<vmem>>, vector<16x128xbf16>
    %cst_42 = arith.constant dense<0.000000e+00> : vector<256x128xf32>
    %79 = tpu.matmul %27, %78, %cst_42 {dimension_numbers = #tpu.dot_dimension_numbers<[1], [0], [0], [1], [0, 0, 1, 1], [], []>} : vector<256x16xbf16>, vector<16x128xbf16>, vector<256x128xf32> -> vector<256x128xf32>
    %80 = arith.mulf %77, %79 : vector<256x128xf32>
    %81 = vector.shape_cast %80 : vector<256x128xf32> to vector<32x8x128xf32>
    %cst_43 = arith.constant dense<0.000000e+00> : vector<32x128xf32>
    %82 = vector.multi_reduction <add>, %81, %cst_43 [1] : vector<32x8x128xf32> to vector<32x128xf32>
    %83 = arith.truncf %82 : vector<32x128xf32> to vector<32x128xbf16>
    %c0_44 = arith.constant 0 : index
    %c0_45 = arith.constant 0 : index
    %84 = vector.load %arg9[%c0_44, %c0_45] : memref<128x256xbf16, #tpu.memory_space<vmem>>, vector<128x256xbf16>
    %cst_46 = arith.constant dense<0.000000e+00> : vector<32x256xf32>
    %85 = tpu.matmul %83, %84, %cst_46 {dimension_numbers = #tpu.dot_dimension_numbers<[1], [0], [0], [1], [0, 0, 1, 1], [], []>} : vector<32x128xbf16>, vector<128x256xbf16>, vector<32x256xf32> -> vector<32x256xf32>
    %c0_47 = arith.constant 0 : index
    %c0_48 = arith.constant 0 : index
    %86 = vector.load %arg10[%c0_47, %c0_48] : memref<1x256xf32, #tpu.memory_space<vmem>>, vector<1x256xf32>
    %87 = vector.broadcast %86 : vector<1x256xf32> to vector<32x256xf32>
    %88 = arith.addf %85, %87 : vector<32x256xf32>
    %cst_49 = arith.constant 0.000000e+00 : f32
    %89 = vector.broadcast %cst_49 : f32 to vector<32x256xf32>
    %90 = arith.maximumf %88, %89 : vector<32x256xf32>
    %91 = arith.truncf %90 : vector<32x256xf32> to vector<32x256xbf16>
    %c0_50 = arith.constant 0 : index
    %c0_51 = arith.constant 0 : index
    %92 = vector.load %arg11[%c0_50, %c0_51] : memref<256x128xbf16, #tpu.memory_space<vmem>>, vector<256x128xbf16>
    %cst_52 = arith.constant dense<0.000000e+00> : vector<32x128xf32>
    %93 = tpu.matmul %91, %92, %cst_52 {dimension_numbers = #tpu.dot_dimension_numbers<[1], [0], [0], [1], [0, 0, 1, 1], [], []>} : vector<32x256xbf16>, vector<256x128xbf16>, vector<32x128xf32> -> vector<32x128xf32>
    %c0_53 = arith.constant 0 : index
    %c0_54 = arith.constant 0 : index
    %94 = vector.load %arg12[%c0_53, %c0_54] : memref<1x128xf32, #tpu.memory_space<vmem>>, vector<1x128xf32>
    %95 = vector.broadcast %94 : vector<1x128xf32> to vector<32x128xf32>
    %96 = arith.addf %93, %95 : vector<32x128xf32>
    %cst_55 = arith.constant dense<0.000000e+00> : vector<32xf32>
    %97 = vector.multi_reduction <add>, %96, %cst_55 [1] : vector<32x128xf32> to vector<32xf32>
    %98 = vector.shape_cast %97 : vector<32xf32> to vector<32x1xf32>
    %cst_56 = arith.constant 1.280000e+02 : f32
    %99 = vector.broadcast %cst_56 : f32 to vector<32x1xf32>
    %100 = arith.divf %98, %99 : vector<32x1xf32>
    %101 = vector.broadcast %100 : vector<32x1xf32> to vector<32x128xf32>
    %102 = arith.subf %96, %101 : vector<32x128xf32>
    %103 = arith.mulf %102, %102 : vector<32x128xf32>
    %cst_57 = arith.constant dense<0.000000e+00> : vector<32xf32>
    %104 = vector.multi_reduction <add>, %103, %cst_57 [1] : vector<32x128xf32> to vector<32xf32>
    %105 = vector.shape_cast %104 : vector<32xf32> to vector<32x1xf32>
    %cst_58 = arith.constant 1.280000e+02 : f32
    %106 = vector.broadcast %cst_58 : f32 to vector<32x1xf32>
    %107 = arith.divf %105, %106 : vector<32x1xf32>
    %108 = vector.broadcast %100 : vector<32x1xf32> to vector<32x128xf32>
    %109 = arith.subf %96, %108 : vector<32x128xf32>
    %cst_59 = arith.constant 9.99999974E-6 : f32
    %110 = vector.broadcast %cst_59 : f32 to vector<32x1xf32>
    %111 = arith.addf %107, %110 : vector<32x1xf32>
    %112 = math.rsqrt %111 : vector<32x1xf32>
    %113 = vector.broadcast %112 : vector<32x1xf32> to vector<32x128xf32>
    %114 = arith.mulf %109, %113 : vector<32x128xf32>
    %c0_60 = arith.constant 0 : index
    %c0_61 = arith.constant 0 : index
    %115 = vector.load %arg13[%c0_60, %c0_61] : memref<1x128xf32, #tpu.memory_space<vmem>>, vector<1x128xf32>
    %116 = vector.broadcast %115 : vector<1x128xf32> to vector<32x128xf32>
    %117 = arith.mulf %114, %116 : vector<32x128xf32>
    %c0_62 = arith.constant 0 : index
    %c0_63 = arith.constant 0 : index
    %118 = vector.load %arg14[%c0_62, %c0_63] : memref<1x128xf32, #tpu.memory_space<vmem>>, vector<1x128xf32>
    %119 = vector.broadcast %118 : vector<1x128xf32> to vector<32x128xf32>
    %120 = arith.addf %117, %119 : vector<32x128xf32>
    %c0_64 = arith.constant 0 : index
    %c0_65 = arith.constant 0 : index
    %121 = vector.load %arg20[%c0_64, %c0_65] : memref<32x128xf32, #tpu.memory_space<vmem>>, vector<32x128xf32>
    tpu.vector_store %arg20[%c0_64, %c0_65], %120 {strides = array<i32>} : memref<32x128xf32, #tpu.memory_space<vmem>>, vector<32x128xf32>,
    return
  }
  func.func @transform_0(%arg0: i32) -> (i32, i32) {
    %c0_i32 = arith.constant 0 : i32
    %c0_i32_0 = arith.constant 0 : i32
    return %arg0, %c0_i32 : i32, i32
  }
  func.func @transform_1(%arg0: i32) -> (i32, i32) {
    %c0_i32 = arith.constant 0 : i32
    %c0_i32_0 = arith.constant 0 : i32
    return %arg0, %c0_i32 : i32, i32
  }
  func.func @transform_2(%arg0: i32) -> (i32, i32) {
    %c0_i32 = arith.constant 0 : i32
    %c0_i32_0 = arith.constant 0 : i32
    %c0_i32_1 = arith.constant 0 : i32
    return %c0_i32, %c0_i32_0 : i32, i32
  }
  func.func @transform_3(%arg0: i32) -> (i32, i32) {
    %c0_i32 = arith.constant 0 : i32
    %c0_i32_0 = arith.constant 0 : i32
    %c0_i32_1 = arith.constant 0 : i32
    return %c0_i32, %c0_i32_0 : i32, i32
  }
  func.func @transform_4(%arg0: i32) -> (i32, i32) {
    %c0_i32 = arith.constant 0 : i32
    %c0_i32_0 = arith.constant 0 : i32
    %c0_i32_1 = arith.constant 0 : i32
    return %c0_i32, %c0_i32_0 : i32, i32
  }
  func.func @transform_5(%arg0: i32) -> (i32, i32) {
    %c0_i32 = arith.constant 0 : i32
    %c0_i32_0 = arith.constant 0 : i32
    %c0_i32_1 = arith.constant 0 : i32
    return %c0_i32, %c0_i32_0 : i32, i32
  }
  func.func @transform_6(%arg0: i32) -> (i32, i32) {
    %c0_i32 = arith.constant 0 : i32
    %c0_i32_0 = arith.constant 0 : i32
    %c0_i32_1 = arith.constant 0 : i32
    return %c0_i32, %c0_i32_0 : i32, i32
  }
  func.func @transform_7(%arg0: i32) -> (i32, i32) {
    %c0_i32 = arith.constant 0 : i32
    %c0_i32_0 = arith.constant 0 : i32
    %c0_i32_1 = arith.constant 0 : i32
    return %c0_i32, %c0_i32_0 : i32, i32
  }
  func.func @transform_8(%arg0: i32) -> (i32, i32) {
    %c0_i32 = arith.constant 0 : i32
    %c0_i32_0 = arith.constant 0 : i32
    %c0_i32_1 = arith.constant 0 : i32
    return %c0_i32, %c0_i32_0 : i32, i32
  }
  func.func @transform_9(%arg0: i32) -> (i32, i32) {
    %c0_i32 = arith.constant 0 : i32
    %c0_i32_0 = arith.constant 0 : i32
    %c0_i32_1 = arith.constant 0 : i32
    return %c0_i32, %c0_i32_0 : i32, i32
  }
  func.func @transform_10(%arg0: i32) -> (i32, i32) {
    %c0_i32 = arith.constant 0 : i32
    %c0_i32_0 = arith.constant 0 : i32
    %c0_i32_1 = arith.constant 0 : i32
    return %c0_i32, %c0_i32_0 : i32, i32
  }
  func.func @transform_11(%arg0: i32) -> (i32, i32) {
    %c0_i32 = arith.constant 0 : i32
    %c0_i32_0 = arith.constant 0 : i32
    %c0_i32_1 = arith.constant 0 : i32
    return %c0_i32, %c0_i32_0 : i32, i32
  }
  func.func @transform_12(%arg0: i32) -> (i32, i32) {
    %c0_i32 = arith.constant 0 : i32
    %c0_i32_0 = arith.constant 0 : i32
    %c0_i32_1 = arith.constant 0 : i32
    return %c0_i32, %c0_i32_0 : i32, i32
  }
  func.func @transform_13(%arg0: i32) -> (i32, i32) {
    %c0_i32 = arith.constant 0 : i32
    %c0_i32_0 = arith.constant 0 : i32
    %c0_i32_1 = arith.constant 0 : i32
    return %c0_i32, %c0_i32_0 : i32, i32
  }
  func.func @transform_14(%arg0: i32) -> (i32, i32) {
    %c0_i32 = arith.constant 0 : i32
    %c0_i32_0 = arith.constant 0 : i32
    %c0_i32_1 = arith.constant 0 : i32
    return %c0_i32, %c0_i32_0 : i32, i32
  }
  func.func @transform_15(%arg0: i32) -> (i32, i32) {
    %c0_i32 = arith.constant 0 : i32
    %c0_i32_0 = arith.constant 0 : i32
    %c0_i32_1 = arith.constant 0 : i32
    return %c0_i32, %c0_i32_0 : i32, i32
  }
  func.func @transform_16(%arg0: i32) -> (i32, i32) {
    %c0_i32 = arith.constant 0 : i32
    %c0_i32_0 = arith.constant 0 : i32
    %c0_i32_1 = arith.constant 0 : i32
    return %c0_i32, %c0_i32_0 : i32, i32
  }
  func.func @transform_17(%arg0: i32) -> (i32, i32) {
    %c0_i32 = arith.constant 0 : i32
    %c0_i32_0 = arith.constant 0 : i32
    %c0_i32_1 = arith.constant 0 : i32
    return %c0_i32, %c0_i32_0 : i32, i32
  }
  func.func @transform_18(%arg0: i32) -> (i32, i32) {
    %c0_i32 = arith.constant 0 : i32
    %c0_i32_0 = arith.constant 0 : i32
    %c0_i32_1 = arith.constant 0 : i32
    return %c0_i32, %c0_i32_0 : i32, i32
  }
  func.func @transform_19(%arg0: i32) -> (i32, i32) {
    %c0_i32 = arith.constant 0 : i32
    %c0_i32_0 = arith.constant 0 : i32
    return %arg0, %c0_i32 : i32, i32
  }
  func.func @transform_20(%arg0: i32) -> (i32, i32) {
    %c0_i32 = arith.constant 0 : i32
    %c0_i32_0 = arith.constant 0 : i32
    return %arg0, %c0_i32 : i32, i32
  }
}

</mosaic_0001>

<bundles_post_ra>
// kernel: _ltae_forward_impl.1
= control target key start
LH: loop header
LB: loop body
LE: loop exit
PB: predicated region body
PF: predicated region fallthrough
CT: control target
= control target key end

     0   :  { %s8135_s0 = inlined_call_operand.vmem [shape: f32[512,16], index: 0, kind: input, shape index: {}]   ;;  %s8136_s1 = inlined_call_operand.vmem [shape: f32[512,16], index: 1, kind: input, shape index: {}]   ;;  %s8137_s2 = inlined_call_operand.vmem [shape: f32[1,16], index: 2, kind: input, shape index: {}]   ;;  %s8138_s3 = inlined_call_operand.vmem [shape: f32[1,16], index: 3, kind: input, shape index: {}]   ;;  %s8139_s4 = inlined_call_operand.vmem [shape: bf16[16,256], index: 4, kind: input, shape index: {}]   ;;  %s8140_s5 = inlined_call_operand.vmem [shape: f32[1,256], index: 5, kind: input, shape index: {}]   ;;  %s8141_s6 = inlined_call_operand.vmem [shape: bf16[128,128], index: 6, kind: input, shape index: {}]   ;;  %s8142_s7 = inlined_call_operand.vmem [shape: f32[1,128], index: 7, kind: input, shape index: {}]   ;;  %s8143_s8 = inlined_call_operand.vmem [shape: bf16[128,256], index: 8, kind: input, shape index: {}]   ;;  %s8144_s9 = inlined_call_operand.vmem [shape: f32[1,256], index: 9, kind: input, shape index: {}]   ;;  %s8145_s10 = inlined_call_operand.vmem [shape: bf16[256,128], index: 10, kind: input, shape index: {}]   ;;  %s8146_s11 = inlined_call_operand.vmem [shape: f32[1,128], index: 11, kind: input, shape index: {}]   ;;  %s8147_s12 = inlined_call_operand.vmem [shape: f32[1,128], index: 12, kind: input, shape index: {}]   ;;  %s8148_s13 = inlined_call_operand.vmem [shape: f32[1,128], index: 13, kind: input, shape index: {}]   ;;  %s8149_s14 = inlined_call_operand.vmem [shape: f32[128,8], index: 14, kind: input, shape index: {}]   ;;  %s8150_s15 = inlined_call_operand.vmem [shape: bf16[8,128], index: 15, kind: input, shape index: {}]   ;;  %s8151_s16 = inlined_call_operand.vmem [shape: bf16[16,128], index: 16, kind: input, shape index: {}]   ;;  %s8152_s17 = inlined_call_operand.vmem [shape: f32[8,64], index: 17, kind: input, shape index: {}]   ;;  %s8153_s18 = inlined_call_operand.vmem [shape: f32[8,64], index: 18, kind: input, shape index: {}]   ;;  %s8154_s19 = inlined_call_operand.hbm [shape: f32[64,128], index: 19, kind: output, shape index: {0}]   ;;  %s8155_s20 = inlined_call_operand.vmem [shape: f32[64,64], index: 20, kind: output, shape index: {1}]  }
   0x1   :  { %8195 = sst [smem:[#allocation42_spill]] %s8135_s0 }
   0x2   :  { %8196 = sst [smem:[#allocation43_spill]] %s8136_s1 }
   0x3   :  { %8197 = sst [smem:[#allocation44_spill]] %s8137_s2 }
   0x4   :  { %8198 = sst [smem:[#allocation45_spill]] %s8138_s3 }
   0x5   :  { %8199 = sst [smem:[#allocation46_spill]] %s8139_s4 }
   0x6   :  { %8200 = sst [smem:[#allocation47_spill]] %s8140_s5 }
   0x7   :  { %8201 = sst [smem:[#allocation48_spill]] %s8141_s6 }
   0x8   :  { %26 = vsyncpa [#allocation3], 0 }
   0x9   :  { %28 = vsyncpa [#allocation3 + $0x1], 0  ;;  %s6204_s1 = smov 0   ;;  %s6206_s22 = smov 0  }
   0xa   :  { %s6208_s23 = smov 0   ;;  %s6210_s24 = smov 0  }
   0xb LB: > { %8202 = sst [smem:[#allocation5_spill]] %s6088_s23  ;;  %s6225_s2 = sadd.s32 4294967295, %s6092_s24   ;;  %s6092_s24 = sphi %s6210_s24, %s8307_s24   ;;  %s6088_s23 = sphi %s6208_s23, %s8309_s23   ;;  %s6084_s22 = sphi %s6206_s22, %s8311_s22   ;;  %s6080_s1 = sphi %s6204_s1, %s8310_s1  }
   0xc   : > { %s5216_s25 = sadd.s32 4294967294, %s6092_s24   ;;  %s6229_s3 = sadd.s32 1, %s6092_s24  }
   0xd   : > { %8203 = sst [smem:[#allocation6_spill]] %s6229_s3  ;;  %s450_s26 = sadd.s32 1, %s6088_s23 }
   0xe   : > { %s447_s27 = ssub.s32 %s6092_s24, %s6229_s3  ;;  %p460_p0 = scmp.ne.s32.totalorder %s6088_s23, %s6084_s22 }
   0xf   : > { %p448_p1 = scmp.eq.s32.totalorder %s447_s27, 0  ;;  %p461_p2 = scmp.eq.s32.totalorder %s6225_s2, 1 }
  0x10   : > { %p466_p3 = scmp.ne.s32.totalorder %s6084_s22, %s6080_s1  ;;  %p467_p4 = scmp.eq.s32.totalorder %s5216_s25, 1 }
  0x11   : > { %s6240_s28 = scalar_select %p448_p1, %s6088_s23, %s450_s26  }
  0x12   : > { %p6242_p5 = por %p461_p2, %p460_p0  ;;  %p6246_p6 = por %p467_p4, %p466_p3 }
  0x13   : > { %8204 = sst [smem:[#allocation7_spill]] %s6240_s28  ;;  %p5219_p7 = scmp.ge.s32.totalorder %s6092_s24, 1 }
  0x14   : > { %p580_p8 = scmp.lt.s32.totalorder %s6092_s24, 3 }
  0x16   : > { %p581_p9 = pnand %p5219_p7, %p580_p8 }
  0x18   : > { %584 = sbr.rel (%p581_p9) target bundleno = 2377 (0x949), region = 96 }
  0x1d   : > { %s5221_s30 = sshll.u32 %s6225_s2, 5  ;;  %vm700_vm0 = vcmask 130048   ;;  %s8207_s26 = sld [smem:[#allocation42_spill]]  ;;  %vm1885_vm1 = vcmask 1041409   ;;  %vm1887_vm2 = vcmask 1042434   ;;  %vm1889_vm3 = vcmask 1043459  }
  0x1e   : > { %p649_p10 = scmp.lt.s32.totalorder %s5221_s30, 63  ;;  %s8210_s28 = sld [smem:[#allocation45_spill]]  ;;  %vm1891_vm4 = vcmask 1044484   ;;  %vm1893_vm5 = vcmask 1045509   ;;  %vm1895_vm6 = vcmask 1046534   ;;  %vm1897_vm7 = vcmask 1047559  }
  0x1f   : > { %s8212_s23 = sld [smem:[#allocation43_spill]]  ;;  %vm2658_vm8 = vcmask 64512   ;;  %vm3980_vm9 = vcmask 1043456   ;;  %vm3622_vm10 = vcmask 523264   ;;  %s638_s25 = sand.u32 1, %s6084_s22  }
  0x20   : > { %s8313_s30 = smov (!%p649_p10, %s5221_s30), 63  ;;  %s8226_s6 = sld [smem:[#allocation48_spill]] }
  0x21   : > { %s8157_s0 = sshll.u32 %s8313_s30, 3  ;;  %s8231_s5 = sld [smem:[#allocation47_spill]] }
  0x23   : > { %s6261_s27 = scalar_lea.vmem %s8207_s26, %s8157_s0  ;;  %s8208_s26 = sld [smem:[#allocation46_spill]] }
  0x24   : > { %v6264_v0 = vld [vmem:[%s6261_s27] sm:$0xff]  ;;  %v6267_v1 = vld [vmem:[%s6261_s27 + $0x8] sm:$0xff]  ;;  %v6270_v2 = vld [vmem:[%s6261_s27 + $0x10] sm:$0xff]  ;;  %s8211_s0 = sshll.u32 %s8313_s30, 3 }
  0x25   : > { %v701_v3 = vsel %vm700_vm0, %v6264_v0, 0.0  ;;  %v707_v4 = vsel %vm700_vm0, %v6270_v2, 0.0  ;;  %v6277_v5 = vld [vmem:[%s6261_s27 + $0x18] sm:$0xff]  ;;  %v704_v6 = vsel %vm700_vm0, %v6267_v1, 0.0  ;;  %v6284_v8 = vld [vmem:[%s6261_s27 + $0x20] sm:$0xff]  ;;  %v6287_v9 = vld [vmem:[%s6261_s27 + $0x28] sm:$0xff]  ;;  %s6595_s3 = scalar_lea.vmem %s8212_s23, %s8211_s0 }
  0x26   : > { %702 = vadd.xlane.f32.xlu0 %v701_v3  ;;  %708 = vadd.xlane.f32.xlu1 %v707_v4  ;;  %v710_v7 = vsel %vm700_vm0, %v6277_v5, 0.0  ;;  %v6290_v10 = vld [vmem:[%s6261_s27 + $0x30] sm:$0xff]  ;;  %v6293_v11 = vld [vmem:[%s6261_s27 + $0x38] sm:$0xff]  ;;  %v713_v12 = vsel %vm700_vm0, %v6284_v8, 0.0  ;;  %v6298_v13 = vld [vmem:[%s6261_s27 + $0x40] sm:$0xff]  ;;  %v716_v15 = vsel %vm700_vm0, %v6287_v9, 0.0 }
  0x27   : > { %v6301_v14 = vld [vmem:[%s6261_s27 + $0x48] sm:$0xff]  ;;  %v6306_v16 = vld [vmem:[%s6261_s27 + $0x50] sm:$0xff]  ;;  %v719_v17 = vsel %vm700_vm0, %v6290_v10, 0.0  ;;  %v722_v18 = vsel %vm700_vm0, %v6293_v11, 0.0  ;;  %v725_v19 = vsel %vm700_vm0, %v6298_v13, 0.0  ;;  %v6319_v22 = vld [vmem:[%s6261_s27 + $0x58] sm:$0xff] }
  0x28   : > { %v728_v20 = vsel %vm700_vm0, %v6301_v14, 0.0  ;;  %v731_v21 = vsel %vm700_vm0, %v6306_v16, 0.0  ;;  %v734_v23 = vsel %vm700_vm0, %v6319_v22, 0.0  ;;  %v6324_v24 = vld [vmem:[%s6261_s27 + $0x60] sm:$0xff]  ;;  %v6327_v25 = vld [vmem:[%s6261_s27 + $0x68] sm:$0xff]  ;;  %v6334_v28 = vld [vmem:[%s6261_s27 + $0x70] sm:$0xff] }
  0x29   : > { %v737_v26 = vsel %vm700_vm0, %v6324_v24, 0.0  ;;  %v740_v27 = vsel %vm700_vm0, %v6327_v25, 0.0  ;;  %v6337_v29 = vld [vmem:[%s6261_s27 + $0x78] sm:$0xff]  ;;  %v743_v30 = vsel %vm700_vm0, %v6334_v28, 0.0  ;;  %v6344_v32 = vld [vmem:[%s6261_s27 + $0x80] sm:$0xff]  ;;  %v6347_v33 = vld [vmem:[%s6261_s27 + $0x88] sm:$0xff] }
  0x2a   : > { %705 = vadd.xlane.f32.xlu0 %v704_v6  ;;  %711 = vadd.xlane.f32.xlu1 %v710_v7  ;;  %v746_v31 = vsel %vm700_vm0, %v6337_v29, 0.0  ;;  %v749_v34 = vsel %vm700_vm0, %v6344_v32, 0.0  ;;  %v752_v35 = vsel %vm700_vm0, %v6347_v33, 0.0  ;;  %v6354_v36 = vld [vmem:[%s6261_s27 + $0x90] sm:$0xff]  ;;  %v6357_v37 = vld [vmem:[%s6261_s27 + $0x98] sm:$0xff]  ;;  %v6372_v51 = vld [vmem:[%s6261_s27 + $0xa0] sm:$0xff] }
  0x2b   : > { %v755_v38 = vsel %vm700_vm0, %v6354_v36, 0.0  ;;  %v758_v39 = vsel %vm700_vm0, %v6357_v37, 0.0  ;;  %v761_v54 = vsel %vm700_vm0, %v6372_v51, 0.0  ;;  %v6388_v59 = vld [vmem:[%s6261_s27 + $0xa8] sm:$0xff]  ;;  %v6398_v3 = vld [vmem:[%s6261_s27 + $0xb0] sm:$0xff] }
  0x2c   : > { %v764_v63 = vsel %vm700_vm0, %v6388_v59, 0.0  ;;  %v767_v6 = vsel %vm700_vm0, %v6398_v3, 0.0 }
  0x2e   : > { %714 = vadd.xlane.f32.xlu0 %v713_v12  ;;  %717 = vadd.xlane.f32.xlu1 %v716_v15 }
  0x32   : > { %720 = vadd.xlane.f32.xlu0 %v719_v17  ;;  %723 = vadd.xlane.f32.xlu1 %v722_v18 }
  0x36   : > { %726 = vadd.xlane.f32.xlu0 %v725_v19  ;;  %729 = vadd.xlane.f32.xlu1 %v728_v20 }
  0x3a   : > { %732 = vadd.xlane.f32.xlu0 %v731_v21  ;;  %735 = vadd.xlane.f32.xlu1 %v734_v23 }
  0x3e   : > { %738 = vadd.xlane.f32.xlu0 %v737_v26  ;;  %741 = vadd.xlane.f32.xlu1 %v740_v27  ;;  %v6422_v26 = vld [vmem:[%s6261_s27 + $0xc0] sm:$0xff] }
  0x42   : > { %744 = vadd.xlane.f32.xlu0 %v743_v30  ;;  %747 = vadd.xlane.f32.xlu1 %v746_v31  ;;  %v773_v30 = vsel %vm700_vm0, %v6422_v26, 0.0 }
  0x46   : > { %750 = vadd.xlane.f32.xlu0 %v749_v34  ;;  %753 = vadd.xlane.f32.xlu1 %v752_v35 }
  0x4a   : > { %756 = vadd.xlane.f32.xlu0 %v755_v38  ;;  %759 = vadd.xlane.f32.xlu1 %v758_v39 }
  0xaf   : > { %v703_v40 = vpop.xlane.xlu0 %702  ;;  %v709_v41 = vpop.xlane.xlu1 %708 }
  0xb0   : > { %v798_v42 = vmul.f32 0.0625, %v703_v40  ;;  %v800_v43 = vmul.f32 0.0625, %v709_v41 }
  0xb2   : > { %v6364_v44 = vsub.f32 %v6264_v0, %v798_v42  ;;  %v6367_v48 = vsub.f32 %v6270_v2, %v800_v43 }
  0xb3   : > { %v706_v45 = vpop.xlane.xlu0 %705  ;;  %v712_v46 = vpop.xlane.xlu1 %711 }
  0xb4   : > { %v799_v47 = vmul.f32 0.0625, %v706_v45  ;;  %v862_v49 = vmul.f32 %v6364_v44, %v6364_v44  ;;  %v801_v50 = vmul.f32 0.0625, %v712_v46  ;;  %v864_v58 = vmul.f32 %v6367_v48, %v6367_v48  ;;  %v6444_v46 = vld [vmem:[%s6261_s27 + $0xd0] sm:$0xff] }
  0xb6   : > { %v6375_v52 = vsub.f32 %v6267_v1, %v799_v47  ;;  %v894_v53 = vsel %vm700_vm0, %v862_v49, 0.0  ;;  %v6381_v56 = vsub.f32 %v6277_v5, %v801_v50  ;;  %v900_v0 = vsel %vm700_vm0, %v864_v58, 0.0 }
  0xb7   : > { %895 = vadd.xlane.f32.xlu0 %v894_v53  ;;  %v715_v55 = vpop.xlane.xlu0 %714  ;;  %v718_v61 = vpop.xlane.xlu1 %717  ;;  %v779_v47 = vsel %vm700_vm0, %v6444_v46, 0.0 }
  0xb8   : > { %v863_v57 = vmul.f32 %v6375_v52, %v6375_v52  ;;  %v802_v60 = vmul.f32 0.0625, %v715_v55  ;;  %v803_v2 = vmul.f32 0.0625, %v718_v61  ;;  %v865_v4 = vmul.f32 %v6381_v56, %v6381_v56 }
  0xba   : > { %v897_v62 = vsel %vm700_vm0, %v863_v57, 0.0  ;;  %v6395_v1 = vsub.f32 %v6284_v8, %v802_v60  ;;  %v6405_v7 = vsub.f32 %v6287_v9, %v803_v2  ;;  %v903_v12 = vsel %vm700_vm0, %v865_v4, 0.0  ;;  %v6409_v8 = vld [vmem:[%s6261_s27 + $0xb8] sm:$0xff] }
  0xbb   : > { %762 = vadd.xlane.f32.xlu0 %v761_v54  ;;  %898 = vadd.xlane.f32.xlu1 %v897_v62  ;;  %v721_v5 = vpop.xlane.xlu0 %720  ;;  %v724_v18 = vpop.xlane.xlu1 %723  ;;  %v770_v19 = vsel %vm700_vm0, %v6409_v8, 0.0  ;;  %v6453_v54 = vld [vmem:[%s6261_s27 + $0xd8] sm:$0xff] }
  0xbc   : > { %v866_v15 = vmul.f32 %v6395_v1, %v6395_v1  ;;  %v804_v17 = vmul.f32 0.0625, %v721_v5  ;;  %v805_v21 = vmul.f32 0.0625, %v724_v18  ;;  %v867_v23 = vmul.f32 %v6405_v7, %v6405_v7 }
  0xbd   : > { %v782_v58 = vsel %vm700_vm0, %v6453_v54, 0.0 }
  0xbe   : > { %v906_v20 = vsel %vm700_vm0, %v866_v15, 0.0  ;;  %v6417_v9 = vsub.f32 %v6290_v10, %v804_v17  ;;  %v6427_v31 = vsub.f32 %v6293_v11, %v805_v21  ;;  %v909_v34 = vsel %vm700_vm0, %v867_v23, 0.0  ;;  %v6431_v10 = vld [vmem:[%s6261_s27 + $0xc8] sm:$0xff] }
  0xbf   : > { %901 = vadd.xlane.f32.xlu0 %v900_v0  ;;  %765 = vadd.xlane.f32.xlu1 %v764_v63  ;;  %v727_v27 = vpop.xlane.xlu0 %726  ;;  %v730_v39 = vpop.xlane.xlu1 %729  ;;  %v776_v40 = vsel %vm700_vm0, %v6431_v10, 0.0  ;;  %v6466_v0 = vld [vmem:[%s6261_s27 + $0xe0] sm:$0xff] }
  0xc0   : > { %v868_v35 = vmul.f32 %v6417_v9, %v6417_v9  ;;  %v806_v38 = vmul.f32 0.0625, %v727_v27  ;;  %v807_v43 = vmul.f32 0.0625, %v730_v39  ;;  %v869_v45 = vmul.f32 %v6427_v31, %v6427_v31 }
  0xc1   : > { %v785_v4 = vsel %vm700_vm0, %v6466_v0, 0.0 }
  0xc2   : > { %v912_v42 = vsel %vm700_vm0, %v868_v35, 0.0  ;;  %v6439_v11 = vsub.f32 %v6298_v13, %v806_v38  ;;  %v6449_v53 = vsub.f32 %v6301_v14, %v807_v43  ;;  %v915_v13 = vsel %vm700_vm0, %v869_v45, 0.0  ;;  %v5781_v35 = vld [vmem:[%s8208_s26] ss:$8 sps:$4 sm:$0xff]   ;;  %v6506_v43 = vld [vmem:[%s6261_s27 + $0xf8] sm:$0xff] }
  0xc3   : > { %768 = vadd.xlane.f32.xlu0 %v767_v6  ;;  %904 = vadd.xlane.f32.xlu1 %v903_v12  ;;  %v733_v41 = vpop.xlane.xlu0 %732  ;;  %v736_v49 = vpop.xlane.xlu1 %735 }
  0xc4   : > { %v870_v55 = vmul.f32 %v6439_v11, %v6439_v11  ;;  %v808_v57 = vmul.f32 0.0625, %v733_v41  ;;  %v809_v62 = vmul.f32 0.0625, %v736_v49  ;;  %v871_v63 = vmul.f32 %v6449_v53, %v6449_v53 }
  0xc5   : > { %v8163_v49 = vmov 0  }
  0xc6   : > { %v918_v61 = vsel %vm700_vm0, %v870_v55, 0.0  ;;  %v6461_v14 = vsub.f32 %v6306_v16, %v808_v57  ;;  %v6471_v5 = vsub.f32 %v6319_v22, %v809_v62  ;;  %v921_v6 = vsel %vm700_vm0, %v871_v63, 0.0  ;;  %v6475_v16 = vld [vmem:[%s6261_s27 + $0xe8] sm:$0xff]  ;;  %1380 = vmatprep.mubr.bf16.mxu0 %v8163_v49 }
  0xc7   : > { %771 = vadd.xlane.f32.xlu1 %v770_v19  ;;  %907 = vadd.xlane.f32.xlu0 %v906_v20  ;;  %v739_v50 = vpop.xlane.xlu0 %738  ;;  %v742_v60 = vpop.xlane.xlu1 %741  ;;  %v788_v18 = vsel %vm700_vm0, %v6475_v16, 0.0  ;;  %v5779_v22 = vld [vmem:[%s8208_s26 + $0x4] ss:$8 sps:$4 sm:$0xff]  }
  0xc8   : > { %v872_v12 = vmul.f32 %v6461_v14, %v6461_v14  ;;  %v810_v15 = vmul.f32 0.0625, %v739_v50  ;;  %v811_v19 = vmul.f32 0.0625, %v742_v60  ;;  %v873_v27 = vmul.f32 %v6471_v5, %v6471_v5  ;;  %1362 = vmatprep.subr.bf16.mxu0 %v5779_v22 }
  0xc9   : > { %1363 = vmatpush1.bf16.msra.mxu0 %v5781_v35 }
  0xca   : > { %v924_v21 = vsel %vm700_vm0, %v872_v12, 0.0  ;;  %v6486_v23 = vsub.f32 %v6324_v24, %v810_v15  ;;  %v6497_v38 = vsub.f32 %v6327_v25, %v811_v19  ;;  %v927_v41 = vsel %vm700_vm0, %v873_v27, 0.0 }
  0xcb   : > { %910 = vadd.xlane.f32.xlu1 %v909_v34  ;;  %774 = vadd.xlane.f32.xlu0 %v773_v30  ;;  %v745_v2 = vpop.xlane.xlu0 %744  ;;  %v748_v17 = vpop.xlane.xlu1 %747  ;;  %v6491_v30 = vld [vmem:[%s6261_s27 + $0xf0] sm:$0xff]  ;;  %s8209_s27 = sld [smem:[#allocation44_spill]] }
  0xcc   : > { %v812_v34 = vmul.f32 0.0625, %v745_v2  ;;  %v791_v24 = vsel %vm700_vm0, %v6491_v30, 0.0  ;;  %v813_v39 = vmul.f32 0.0625, %v748_v17  ;;  %v874_v45 = vmul.f32 %v6486_v23, %v6486_v23 }
  0xcd   : > { %v875_v55 = vmul.f32 %v6497_v38, %v6497_v38 }
  0xce   : > { %v6512_v50 = vsub.f32 %v6337_v29, %v813_v39  ;;  %v930_v57 = vsel %vm700_vm0, %v874_v45, 0.0 }
  0xcf   : > { %777 = vadd.xlane.f32.xlu1 %v776_v40  ;;  %913 = vadd.xlane.f32.xlu0 %v912_v42  ;;  %v751_v20 = vpop.xlane.xlu0 %750  ;;  %v754_v40 = vpop.xlane.xlu1 %753  ;;  %v6503_v42 = vsub.f32 %v6334_v28, %v812_v34  ;;  %v933_v63 = vsel %vm700_vm0, %v875_v55, 0.0 }
  0xd0   : > { %v815_v28 = vmul.f32 0.0625, %v754_v40  ;;  %v877_v2 = vmul.f32 %v6512_v50, %v6512_v50 }
  0xd1   : > { %v876_v60 = vmul.f32 %v6503_v42, %v6503_v42 }
  0xd2   : > { %v6525_v29 = vsub.f32 %v6347_v33, %v815_v28  ;;  %v939_v15 = vsel %vm700_vm0, %v877_v2, 0.0 }
  0xd3   : > { %916 = vadd.xlane.f32.xlu1 %v915_v13  ;;  %780 = vadd.xlane.f32.xlu0 %v779_v47  ;;  %v814_v47 = vmul.f32 0.0625, %v751_v20  ;;  %v757_v25 = vpop.xlane.xlu0 %756  ;;  %v794_v13 = vsel %vm700_vm0, %v6506_v43, 0.0  ;;  %v760_v62 = vpop.xlane.xlu1 %759 }
  0xd7   : > { %783 = vadd.xlane.f32.xlu1 %v782_v58  ;;  %919 = vadd.xlane.f32.xlu0 %v918_v61  ;;  %v6520_v58 = vsub.f32 %v6344_v32, %v814_v47  ;;  %v816_v61 = vmul.f32 0.0625, %v757_v25 }
  0xd9   : > { %v6532_v32 = vsub.f32 %v6354_v36, %v816_v61  ;;  %v878_v12 = vmul.f32 %v6520_v58, %v6520_v58 }
  0xdb   : > { %922 = vadd.xlane.f32.xlu1 %v921_v6  ;;  %786 = vadd.xlane.f32.xlu0 %v785_v4  ;;  %v936_v4 = vsel %vm700_vm0, %v876_v60, 0.0  ;;  %v817_v6 = vmul.f32 0.0625, %v760_v62  ;;  %v942_v17 = vsel %vm700_vm0, %v878_v12, 0.0  ;;  %v880_v36 = vmul.f32 %v6532_v32, %v6532_v32 }
  0xdd   : > { %v6538_v33 = vsub.f32 %v6357_v37, %v817_v6  ;;  %v948_v20 = vsel %vm700_vm0, %v880_v36, 0.0 }
  0xdf   : > { %789 = vadd.xlane.f32.xlu1 %v788_v18  ;;  %925 = vadd.xlane.f32.xlu0 %v924_v21  ;;  %v879_v18 = vmul.f32 %v6525_v29, %v6525_v29  ;;  %v881_v22 = vmul.f32 %v6538_v33, %v6538_v33 }
  0xe1   : > { %v945_v19 = vsel %vm700_vm0, %v879_v18, 0.0  ;;  %v951_v37 = vsel %vm700_vm0, %v881_v22, 0.0 }
  0xe3   : > { %928 = vadd.xlane.f32.xlu1 %v927_v41  ;;  %792 = vadd.xlane.f32.xlu0 %v791_v24 }
  0xe7   : > { %795 = vadd.xlane.f32.xlu1 %v794_v13  ;;  %931 = vadd.xlane.f32.xlu0 %v930_v57 }
  0xeb   : > { %934 = vadd.xlane.f32.xlu1 %v933_v63  ;;  %937 = vadd.xlane.f32.xlu0 %v936_v4 }
  0xef   : > { %940 = vadd.xlane.f32.xlu1 %v939_v15  ;;  %943 = vadd.xlane.f32.xlu0 %v942_v17 }
  0xf3   : > { %946 = vadd.xlane.f32.xlu1 %v945_v19  ;;  %949 = vadd.xlane.f32.xlu0 %v948_v20 }
  0xf7   : > { %952 = vadd.xlane.f32.xlu1 %v951_v37 }
 0x140   : > { %v896_v21 = vpop.xlane.xlu0 %895 }
 0x141   : > { %v990_v27 = vmul.f32 0.0625, %v896_v21 }
 0x143   : > { %v1022_v34 = vadd.f32 1e-05, %v990_v27  ;;  %v6575_v27 = vld [vmem:[%s8209_s27] ss:$0 sm:$0xff]  ;;  %s5220_s27 = sshll.u32 %s638_s25, 5 }
 0x144   : > { %v899_v35 = vpop.xlane.xlu1 %898  ;;  %v763_v24 = vpop.xlane.xlu0 %762  ;;  %s640_s30 = scalar_lea.vmem [#allocation2], %s5220_s27  ;;  %s8095_s27 = scalar_lea.sflag [#allocation3], %s638_s25 }
 0x145   : > { %5831 = vrsqrt.f32 %v1022_v34  ;;  %v991_v39 = vmul.f32 0.0625, %v899_v35  ;;  %v818_v40 = vmul.f32 0.0625, %v763_v24  ;;  %s5113_s26 = sshll.u32 %s640_s30, 4  ;;  %s8091_s26 = int_to_ptr.vmem [resolvable:$true] %s5113_s26 }
 0x147   : > { %v1023_v41 = vadd.f32 1e-05, %v991_v39  ;;  %v6551_v45 = vsub.f32 %v6372_v51, %v818_v40 }
 0x148   : > { %v766_v47 = vpop.xlane.xlu1 %765  ;;  %v902_v25 = vpop.xlane.xlu0 %901 }
 0x149   : > { %5833 = vrsqrt.f32 %v1023_v41  ;;  %v819_v13 = vmul.f32 0.0625, %v766_v47  ;;  %v992_v28 = vmul.f32 0.0625, %v902_v25  ;;  %v882_v55 = vmul.f32 %v6551_v45, %v6551_v45 }
 0x14b   : > { %v6556_v57 = vsub.f32 %v6388_v59, %v819_v13  ;;  %v1024_v60 = vadd.f32 1e-05, %v992_v28  ;;  %v954_v61 = vsel %vm700_vm0, %v882_v55, 0.0  ;;  %v6588_v28 = vld [vmem:[%s8210_s28] ss:$0 sm:$0xff] }
 0x14c   : > { %v905_v62 = vpop.xlane.xlu1 %904  ;;  %955 = vadd.xlane.f32.xlu0 %v954_v61  ;;  %v769_v63 = vpop.xlane.xlu0 %768 }
 0x14d   : > { %5835 = vrsqrt.f32 %v1024_v60  ;;  %v993_v51 = vmul.f32 0.0625, %v905_v62  ;;  %v820_v2 = vmul.f32 0.0625, %v769_v63  ;;  %v883_v4 = vmul.f32 %v6556_v57, %v6556_v57 }
 0x14f   : > { %v1025_v6 = vadd.f32 1e-05, %v993_v51  ;;  %v6562_v12 = vsub.f32 %v6398_v3, %v820_v2  ;;  %v957_v15 = vsel %vm700_vm0, %v883_v4, 0.0 }
 0x150   : > { %958 = vadd.xlane.f32.xlu1 %v957_v15  ;;  %v772_v59 = vpop.xlane.xlu1 %771  ;;  %v908_v17 = vpop.xlane.xlu0 %907  ;;  %v1196_v15 = vld [vmem:[%s6595_s3] sm:$0xff] }
 0x151   : > { %5837 = vrsqrt.f32 %v1025_v6  ;;  %v821_v18 = vmul.f32 0.0625, %v772_v59  ;;  %v994_v36 = vmul.f32 0.0625, %v908_v17  ;;  %v884_v19 = vmul.f32 %v6562_v12, %v6562_v12  ;;  %v1197_v59 = vld [vmem:[%s6595_s3 + $0x8] sm:$0xff] }
 0x152   : > { %v5832_v20 = vpop.eup %5831 }
 0x153   : > { %v6568_v22 = vsub.f32 %v6409_v8, %v821_v18  ;;  %v1026_v37 = vadd.f32 1e-05, %v994_v36  ;;  %v960_v21 = vsel %vm700_vm0, %v884_v19, 0.0  ;;  %v1086_v3 = vmul.f32 %v5832_v20, %v6364_v44 }
 0x154   : > { %v911_v34 = vpop.xlane.xlu1 %910  ;;  %961 = vadd.xlane.f32.xlu0 %v960_v21  ;;  %v775_v35 = vpop.xlane.xlu0 %774 }
 0x155   : > { %5839 = vrsqrt.f32 %v1026_v37  ;;  %v995_v24 = vmul.f32 0.0625, %v911_v34  ;;  %v822_v39 = vmul.f32 0.0625, %v775_v35  ;;  %v885_v8 = vmul.f32 %v6568_v22, %v6568_v22 }
 0x156   : > { %v5834_v40 = vpop.eup %5833  ;;  %v1125_v41 = vmul.f32 %v6575_v27, %v1086_v3 }
 0x157   : > { %v1027_v47 = vadd.f32 1e-05, %v995_v24  ;;  %v6581_v44 = vsub.f32 %v6422_v26, %v822_v39  ;;  %v963_v25 = vsel %vm700_vm0, %v885_v8, 0.0  ;;  %v1087_v13 = vmul.f32 %v5834_v40, %v6375_v52 }
 0x158   : > { %964 = vadd.xlane.f32.xlu1 %v963_v25  ;;  %v778_v26 = vpop.xlane.xlu1 %777  ;;  %v914_v55 = vpop.xlane.xlu0 %913  ;;  %v1164_v51 = vadd.f32 %v6588_v28, %v1125_v41 }
 0x159   : > { %5841 = vrsqrt.f32 %v1027_v47  ;;  %v823_v60 = vmul.f32 0.0625, %v778_v26  ;;  %v996_v61 = vmul.f32 0.0625, %v914_v55  ;;  %v886_v52 = vmul.f32 %v6581_v44, %v6581_v44 }
 0x15a   : > { %v5836_v62 = vpop.eup %5835  ;;  %v1126_v63 = vmul.f32 %v6575_v27, %v1087_v13  ;;  %v1228_v3 = vadd.f32 %v1196_v15, %v1164_v51 }
 0x15b   : > { %v6602_v2 = vsub.f32 %v6431_v10, %v823_v60  ;;  %v1028_v4 = vadd.f32 1e-05, %v996_v61  ;;  %v966_v6 = vsel %vm700_vm0, %v886_v52, 0.0  ;;  %v1088_v17 = vmul.f32 %v5836_v62, %v6367_v48  ;;  %v1198_v62 = vld [vmem:[%s6595_s3 + $0x10] sm:$0xff] }
 0x15c   : > { %v917_v18 = vpop.xlane.xlu1 %916  ;;  %967 = vadd.xlane.f32.xlu0 %v966_v6  ;;  %v781_v36 = vpop.xlane.xlu0 %780  ;;  %v1165_v19 = vadd.f32 %v6588_v28, %v1126_v63  ;;  %v1199_v63 = vld [vmem:[%s6595_s3 + $0x18] sm:$0xff] }
 0x15d   : > { %5843 = vrsqrt.f32 %v1028_v4  ;;  %v997_v20 = vmul.f32 0.0625, %v917_v18  ;;  %v824_v37 = vmul.f32 0.0625, %v781_v36  ;;  %v887_v21 = vmul.f32 %v6602_v2, %v6602_v2 }
 0x15e   : > { %v5838_v10 = vpop.eup %5837  ;;  %v1229_v34 = vadd.f32 %v1197_v59, %v1165_v19  ;;  %v1127_v35 = vmul.f32 %v6575_v27, %v1088_v17 }
 0x15f   : > { %v1029_v24 = vadd.f32 1e-05, %v997_v20  ;;  %v6613_v39 = vsub.f32 %v6444_v46, %v824_v37  ;;  %v969_v48 = vsel %vm700_vm0, %v887_v21, 0.0  ;;  %v1089_v8 = vmul.f32 %v5838_v10, %v6381_v56 }
 0x160   : > { %970 = vadd.xlane.f32.xlu1 %v969_v48  ;;  %v784_v40 = vpop.xlane.xlu1 %783  ;;  %v920_v41 = vpop.xlane.xlu0 %919  ;;  %v6617_v47 = vpack.c.bf16 %v1229_v34, %v1228_v3  ;;  %v1166_v56 = vadd.f32 %v6588_v28, %v1127_v35 }
 0x161   : > { %5845 = vrsqrt.f32 %v1029_v24  ;;  %v825_v25 = vmul.f32 0.0625, %v784_v40  ;;  %v998_v13 = vmul.f32 0.0625, %v920_v41  ;;  %v888_v26 = vmul.f32 %v6613_v39, %v6613_v39 }
 0x162   : > { %8213 = vst [vmem:[#allocation8_spill] sm:$0xff] %v6617_v47  ;;  %v5840_v55 = vpop.eup %5839  ;;  %5231 = vmatmul.mubr.msk.bf16.vlgmr.msra.gmra.mxu0 %vm700_vm0, %v6617_v47  ;;  %v1128_v46 = vmul.f32 %v6575_v27, %v1089_v8  ;;  %v1230_v36 = vadd.f32 %v1198_v62, %v1166_v56 }
 0x163   : > { %v6626_v60 = vsub.f32 %v6453_v54, %v825_v25  ;;  %v1030_v61 = vadd.f32 1e-05, %v998_v13  ;;  %v972_v52 = vsel %vm700_vm0, %v888_v26, 0.0  ;;  %1390 = vmatprep.mubr.bf16.mxu0 %v8163_v49  ;;  %v1090_v51 = vmul.f32 %v5840_v55, %v6395_v1  ;;  %v1200_v26 = vld [vmem:[%s6595_s3 + $0x20] sm:$0xff]  ;;  %v1201_v55 = vld [vmem:[%s6595_s3 + $0x28] sm:$0xff] }
 0x164   : > { %v923_v4 = vpop.xlane.xlu1 %922  ;;  %973 = vadd.xlane.f32.xlu0 %v972_v52  ;;  %v787_v6 = vpop.xlane.xlu0 %786  ;;  %v1167_v15 = vadd.f32 %v6588_v28, %v1128_v46 }
 0x165   : > { %5847 = vrsqrt.f32 %v1030_v61  ;;  %v999_v59 = vmul.f32 0.0625, %v923_v4  ;;  %v826_v17 = vmul.f32 0.0625, %v787_v6  ;;  %v889_v54 = vmul.f32 %v6626_v60, %v6626_v60 }
 0x166   : > { %v5842_v18 = vpop.eup %5841  ;;  %v1231_v19 = vadd.f32 %v1199_v63, %v1167_v15  ;;  %v1129_v20 = vmul.f32 %v6575_v27, %v1090_v51 }
 0x167   : > { %v1031_v37 = vadd.f32 1e-05, %v999_v59  ;;  %v6638_v21 = vsub.f32 %v6466_v0, %v826_v17  ;;  %v975_v1 = vsel %vm700_vm0, %v889_v54, 0.0  ;;  %v1091_v10 = vmul.f32 %v5842_v18, %v6405_v7 }
 0x168   : > { %976 = vadd.xlane.f32.xlu1 %v975_v1  ;;  %v790_v3 = vpop.xlane.xlu1 %789  ;;  %v926_v34 = vpop.xlane.xlu0 %925  ;;  %v6642_v35 = vpack.c.bf16 %v1231_v19, %v1230_v36  ;;  %v1168_v7 = vadd.f32 %v6588_v28, %v1129_v20 }
 0x169   : > { %5849 = vrsqrt.f32 %v1031_v37  ;;  %v827_v24 = vmul.f32 0.0625, %v790_v3  ;;  %v1000_v48 = vmul.f32 0.0625, %v926_v34  ;;  %v890_v8 = vmul.f32 %v6638_v21, %v6638_v21 }
 0x16a   : > { %8214 = vst [vmem:[#allocation9_spill] sm:$0xff] %v6642_v35  ;;  %v5844_v40 = vpop.eup %5843  ;;  %5232 = vmatmul.mubr.msk.bf16.gmra.mxu0 %vm700_vm0, %v6642_v35  ;;  %v1130_v0 = vmul.f32 %v6575_v27, %v1091_v10  ;;  %v1232_v4 = vadd.f32 %v1200_v26, %v1168_v7 }
 0x16b   : > { %v6651_v41 = vsub.f32 %v6475_v16, %v827_v24  ;;  %v1032_v25 = vadd.f32 1e-05, %v1000_v48  ;;  %v978_v13 = vsel %vm700_vm0, %v890_v8, 0.0  ;;  %1400 = vmatprep.mubr.bf16.mxu0 %v8163_v49  ;;  %v1092_v46 = vmul.f32 %v5844_v40, %v6417_v9  ;;  %v1202_v48 = vld [vmem:[%s6595_s3 + $0x30] sm:$0xff]  ;;  %v1203_v8 = vld [vmem:[%s6595_s3 + $0x38] sm:$0xff] }
 0x16c   : > { %v929_v56 = vpop.xlane.xlu1 %928  ;;  %979 = vadd.xlane.f32.xlu0 %v978_v13  ;;  %v793_v61 = vpop.xlane.xlu0 %792  ;;  %v1169_v52 = vadd.f32 %v6588_v28, %v1130_v0 }
 0x16d   : > { %5851 = vrsqrt.f32 %v1032_v25  ;;  %v1001_v62 = vmul.f32 0.0625, %v929_v56  ;;  %v828_v63 = vmul.f32 0.0625, %v793_v61  ;;  %v891_v16 = vmul.f32 %v6651_v41, %v6651_v41 }
 0x16e   : > { %v5846_v51 = vpop.eup %5845  ;;  %v1233_v6 = vadd.f32 %v1201_v55, %v1169_v52  ;;  %v1131_v15 = vmul.f32 %v6575_v27, %v1092_v46 }
 0x16f   : > { %v1033_v59 = vadd.f32 1e-05, %v1001_v62  ;;  %v6663_v17 = vsub.f32 %v6491_v30, %v828_v63  ;;  %v981_v9 = vsel %vm700_vm0, %v891_v16, 0.0  ;;  %v1093_v54 = vmul.f32 %v5846_v51, %v6427_v31 }
 0x170   : > { %982 = vadd.xlane.f32.xlu1 %v981_v9  ;;  %v796_v18 = vpop.xlane.xlu1 %795  ;;  %v932_v36 = vpop.xlane.xlu0 %931  ;;  %v6667_v19 = vpack.c.bf16 %v1233_v6, %v1232_v4  ;;  %v1170_v31 = vadd.f32 %v6588_v28, %v1131_v15 }
 0x171   : > { %5853 = vrsqrt.f32 %v1033_v59  ;;  %v829_v20 = vmul.f32 0.0625, %v796_v18  ;;  %v1002_v37 = vmul.f32 0.0625, %v932_v36  ;;  %v892_v1 = vmul.f32 %v6663_v17, %v6663_v17  ;;  %v1204_v18 = vld [vmem:[%s6595_s3 + $0x40] sm:$0xff]  ;;  %v1205_v36 = vld [vmem:[%s6595_s3 + $0x48] sm:$0xff] }
 0x172   : > { %8215 = vst [vmem:[#allocation10_spill] sm:$0xff] %v6667_v19  ;;  %v5848_v10 = vpop.eup %5847  ;;  %5233 = vmatmul.mubr.msk.bf16.gmra.mxu0 %vm700_vm0, %v6667_v19  ;;  %v1132_v30 = vmul.f32 %v6575_v27, %v1093_v54  ;;  %v1234_v46 = vadd.f32 %v1202_v48, %v1170_v31 }
 0x173   : > { %v6676_v3 = vsub.f32 %v6506_v43, %v829_v20  ;;  %v1034_v34 = vadd.f32 1e-05, %v1002_v37  ;;  %v984_v24 = vsel %vm700_vm0, %v892_v1, 0.0  ;;  %1410 = vmatprep.mubr.bf16.mxu0 %v8163_v49  ;;  %v1094_v40 = vmul.f32 %v5848_v10, %v6439_v11 }
 0x174   : > { %v935_v0 = vpop.xlane.xlu1 %934  ;;  %985 = vadd.xlane.f32.xlu0 %v984_v24  ;;  %v938_v7 = vpop.xlane.xlu0 %937  ;;  %v1171_v25 = vadd.f32 %v6588_v28, %v1132_v30 }
 0x175   : > { %5855 = vrsqrt.f32 %v1034_v34  ;;  %v1003_v13 = vmul.f32 0.0625, %v935_v0  ;;  %v1004_v26 = vmul.f32 0.0625, %v938_v7  ;;  %v893_v43 = vmul.f32 %v6676_v3, %v6676_v3 }
 0x176   : > { %v5850_v55 = vpop.eup %5849  ;;  %v1235_v56 = vadd.f32 %v1203_v8, %v1171_v25  ;;  %v1133_v61 = vmul.f32 %v6575_v27, %v1094_v40 }
 0x177   : > { %v1035_v52 = vadd.f32 1e-05, %v1003_v13  ;;  %v1036_v62 = vadd.f32 1e-05, %v1004_v26  ;;  %v987_v11 = vsel %vm700_vm0, %v893_v43, 0.0  ;;  %v1095_v63 = vmul.f32 %v5850_v55, %v6449_v53 }
 0x178   : > { %988 = vadd.xlane.f32.xlu1 %v987_v11  ;;  %v941_v16 = vpop.xlane.xlu1 %940  ;;  %v944_v51 = vpop.xlane.xlu0 %943  ;;  %v6689_v4 = vpack.c.bf16 %v1235_v56, %v1234_v46  ;;  %v1172_v59 = vadd.f32 %v6588_v28, %v1133_v61  ;;  %v1206_v46 = vld [vmem:[%s6595_s3 + $0x50] sm:$0xff]  ;;  %v1207_v56 = vld [vmem:[%s6595_s3 + $0x58] sm:$0xff] }
 0x179   : > { %5857 = vrsqrt.f32 %v1035_v52  ;;  %v1005_v6 = vmul.f32 0.0625, %v941_v16  ;;  %v1134_v15 = vmul.f32 %v6575_v27, %v1095_v63  ;;  %v1006_v54 = vmul.f32 0.0625, %v944_v51 }
 0x17a   : > { %8216 = vst [vmem:[#allocation11_spill] sm:$0xff] %v6689_v4  ;;  %v5852_v9 = vpop.eup %5851  ;;  %5859 = vrsqrt.f32 %v1036_v62  ;;  %5234 = vmatmul.mubr.msk.bf16.gmra.mxu0 %vm700_vm0, %v6689_v4  ;;  %v1236_v30 = vadd.f32 %v1204_v18, %v1172_v59  ;;  %v1208_v18 = vld [vmem:[%s6595_s3 + $0x60] sm:$0xff] }
 0x17b   : > { %v1037_v53 = vadd.f32 1e-05, %v1005_v6  ;;  %1420 = vmatprep.mubr.bf16.mxu0 %v8163_v49  ;;  %v1173_v20 = vadd.f32 %v6588_v28, %v1134_v15  ;;  %v1096_v37 = vmul.f32 %v5852_v9, %v6461_v14  ;;  %v1038_v24 = vadd.f32 1e-05, %v1006_v54 }
 0x17c   : > { %v947_v1 = vpop.xlane.xlu1 %946  ;;  %v950_v40 = vpop.xlane.xlu0 %949 }
 0x17d   : > { %5861 = vrsqrt.f32 %v1037_v53  ;;  %v1007_v10 = vmul.f32 0.0625, %v947_v1  ;;  %v1237_v31 = vadd.f32 %v1205_v36, %v1173_v20  ;;  %v1135_v48 = vmul.f32 %v6575_v27, %v1096_v37  ;;  %v1209_v36 = vld [vmem:[%s6595_s3 + $0x68] sm:$0xff] }
 0x17e   : > { %v5854_v34 = vpop.eup %5853  ;;  %v1008_v55 = vmul.f32 0.0625, %v950_v40 }
 0x17f   : > { %v1039_v8 = vadd.f32 1e-05, %v1007_v10  ;;  %v6701_v0 = vpack.c.bf16 %v1237_v31, %v1236_v30  ;;  %v1097_v7 = vmul.f32 %v5854_v34, %v6471_v5  ;;  %v1174_v26 = vadd.f32 %v6588_v28, %v1135_v48 }
 0x180   : > { %v953_v25 = vpop.xlane.xlu1 %952  ;;  %v1040_v51 = vadd.f32 1e-05, %v1008_v55 }
 0x181   : > { %8217 = vst [vmem:[#allocation12_spill] sm:$0xff] %v6701_v0  ;;  %5863 = vrsqrt.f32 %v1039_v8  ;;  %v1009_v14 = vmul.f32 0.0625, %v953_v25  ;;  %v1136_v13 = vmul.f32 %v6575_v27, %v1097_v7  ;;  %v1238_v62 = vadd.f32 %v1206_v46, %v1174_v26  ;;  %v1211_v8 = vld [vmem:[%s6595_s3 + $0x78] sm:$0xff]  ;;  %v1210_v7 = vld [vmem:[%s6595_s3 + $0x70] sm:$0xff] }
 0x182   : > { %v5856_v43 = vpop.eup %5855  ;;  %5865 = vrsqrt.f32 %v1038_v24  ;;  %5235 = vmatmul.mubr.msk.bf16.gmra.mxu0 %vm700_vm0, %v6701_v0 }
 0x183   : > { %1430 = vmatprep.mubr.bf16.mxu0 %v8163_v49  ;;  %v1175_v61 = vadd.f32 %v6588_v28, %v1136_v13  ;;  %v1098_v5 = vmul.f32 %v5856_v43, %v6486_v23  ;;  %v1041_v52 = vadd.f32 1e-05, %v1009_v14 }
 0x185   : > { %v1239_v11 = vadd.f32 %v1207_v56, %v1175_v61  ;;  %v1137_v63 = vmul.f32 %v6575_v27, %v1098_v5  ;;  %5867 = vrsqrt.f32 %v1041_v52  ;;  %v1212_v52 = vld [vmem:[%s6595_s3 + $0x80] sm:$0xff] }
 0x186   : > { %v5858_v16 = vpop.eup %5857  ;;  %5869 = vrsqrt.f32 %v1040_v51 }
 0x187   : > { %v5860_v6 = vpop.eup %5859  ;;  %v6714_v15 = vpack.c.bf16 %v1239_v11, %v1238_v62  ;;  %v1099_v59 = vmul.f32 %v5858_v16, %v6497_v38  ;;  %v1176_v54 = vadd.f32 %v6588_v28, %v1137_v63 }
 0x188   : > { %v1100_v53 = vmul.f32 %v5860_v6, %v6503_v42  ;;  %v1215_v6 = vld [vmem:[%s6595_s3 + $0x98] sm:$0xff] }
 0x189   : > { %8218 = vst [vmem:[#allocation13_spill] sm:$0xff] %v6714_v15  ;;  %v1138_v9 = vmul.f32 %v6575_v27, %v1099_v59  ;;  %v1240_v37 = vadd.f32 %v1208_v18, %v1176_v54 }
 0x18a   : > { %v5862_v23 = vpop.eup %5861  ;;  %5236 = vmatmul.mubr.msk.bf16.gmra.mxu0 %vm700_vm0, %v6714_v15  ;;  %v1139_v31 = vmul.f32 %v6575_v27, %v1100_v53 }
 0x18b   : > { %1440 = vmatprep.mubr.bf16.mxu0 %v8163_v49  ;;  %v1177_v20 = vadd.f32 %v6588_v28, %v1138_v9  ;;  %v1101_v38 = vmul.f32 %v5862_v23, %v6512_v50 }
 0x18c   : > { %v1178_v50 = vadd.f32 %v6588_v28, %v1139_v31 }
 0x18d   : > { %v1241_v1 = vadd.f32 %v1209_v36, %v1177_v20  ;;  %v1140_v10 = vmul.f32 %v6575_v27, %v1101_v38 }
 0x18e   : > { %v5864_v30 = vpop.eup %5863  ;;  %v1242_v26 = vadd.f32 %v1210_v7, %v1178_v50 }
 0x18f   : > { %v5866_v34 = vpop.eup %5865  ;;  %v6729_v24 = vpack.c.bf16 %v1241_v1, %v1240_v37  ;;  %v1179_v48 = vadd.f32 %v6588_v28, %v1140_v10  ;;  %v1103_v42 = vmul.f32 %v5864_v30, %v6525_v29 }
 0x190   : > { %v1102_v40 = vmul.f32 %v5866_v34, %v6520_v58  ;;  %v1213_v58 = vld [vmem:[%s6595_s3 + $0x88] sm:$0xff] }
 0x191   : > { %8219 = vst [vmem:[#allocation14_spill] sm:$0xff] %v6729_v24  ;;  %v1243_v25 = vadd.f32 %v1211_v8, %v1179_v48  ;;  %v1142_v14 = vmul.f32 %v6575_v27, %v1103_v42 }
 0x192   : > { %5237 = vmatmul.mubr.msk.bf16.gmra.mxu0 %vm700_vm0, %v6729_v24  ;;  %v5868_v13 = vpop.eup %5867  ;;  %v1141_v29 = vmul.f32 %v6575_v27, %v1102_v40 }
 0x193   : > { %1450 = vmatprep.mubr.bf16.mxu0 %v8163_v49  ;;  %v5870_v43 = vpop.eup %5869  ;;  %v6742_v55 = vpack.c.bf16 %v1243_v25, %v1242_v26  ;;  %v1181_v46 = vadd.f32 %v6588_v28, %v1142_v14  ;;  %v1105_v56 = vmul.f32 %v5868_v13, %v6538_v33 }
 0x194   : > { %v1180_v61 = vadd.f32 %v6588_v28, %v1141_v29  ;;  %v1104_v5 = vmul.f32 %v5870_v43, %v6532_v32  ;;  %v1214_v32 = vld [vmem:[%s6595_s3 + $0x90] sm:$0xff] }
 0x195   : > { %8220 = vst [vmem:[#allocation15_spill] sm:$0xff] %v6742_v55  ;;  %v1245_v62 = vadd.f32 %v1213_v58, %v1181_v46  ;;  %v1144_v11 = vmul.f32 %v6575_v27, %v1105_v56 }
 0x196   : > { %v1244_v63 = vadd.f32 %v1212_v52, %v1180_v61  ;;  %v1143_v16 = vmul.f32 %v6575_v27, %v1104_v5  ;;  %v1216_v5 = vld [vmem:[%s6595_s3 + $0xa0] sm:$0xff] }
 0x197   : > { %v1183_v33 = vadd.f32 %v6588_v28, %v1144_v11 }
 0x198   : > { %v6755_v51 = vpack.c.bf16 %v1245_v62, %v1244_v63  ;;  %v1182_v59 = vadd.f32 %v6588_v28, %v1143_v16  ;;  %v1217_v62 = vld [vmem:[%s6595_s3 + $0xa8] sm:$0xff] }
 0x199   : > { %v1247_v9 = vadd.f32 %v1215_v6, %v1183_v33 }
 0x19a   : > { %5238 = vmatmul.mubr.msk.bf16.gmra.mxu0 %vm700_vm0, %v6742_v55  ;;  %8221 = vst [vmem:[#allocation16_spill] sm:$0xff] %v6755_v51  ;;  %v1246_v54 = vadd.f32 %v1214_v32, %v1182_v59 }
 0x19b   : > { %1460 = vmatprep.mubr.bf16.mxu0 %v8163_v49 }
 0x19c   : > { %v6764_v23 = vpack.c.bf16 %v1247_v9, %v1246_v54 }
 0x19e   : > { %8222 = vst [vmem:[#allocation17_spill] sm:$0xff] %v6764_v23 }
 0x1a2   : > { %5239 = vmatmul.mubr.msk.bf16.gmra.mxu0 %vm700_vm0, %v6755_v51 }
 0x1a3   : > { %1470 = vmatprep.mubr.bf16.mxu0 %v8163_v49 }
 0x1aa   : > { %5240 = vmatmul.mubr.msk.bf16.gmra.mxu0 %vm700_vm0, %v6764_v23 }
 0x1ab   : > { %1480 = vmatprep.mubr.bf16.mxu0 %v8163_v49 }
 0x1d5   : > { %v956_v18 = vpop.xlane.xlu0 %955 }
 0x1d6   : > { %v1010_v36 = vmul.f32 0.0625, %v956_v18 }
 0x1d8   : > { %v1042_v53 = vadd.f32 1e-05, %v1010_v36 }
 0x1d9   : > { %v959_v20 = vpop.xlane.xlu1 %958 }
 0x1da   : > { %5871 = vrsqrt.f32 %v1042_v53  ;;  %v1011_v38 = vmul.f32 0.0625, %v959_v20 }
 0x1dc   : > { %v1043_v37 = vadd.f32 1e-05, %v1011_v38  ;;  %v1218_v38 = vld [vmem:[%s6595_s3 + $0xb0] sm:$0xff] }
 0x1dd   : > { %v962_v1 = vpop.xlane.xlu0 %961 }
 0x1de   : > { %5873 = vrsqrt.f32 %v1043_v37  ;;  %v1012_v10 = vmul.f32 0.0625, %v962_v1  ;;  %v1219_v1 = vld [vmem:[%s6595_s3 + $0xb8] sm:$0xff] }
 0x1e0   : > { %v1044_v30 = vadd.f32 1e-05, %v1012_v10 }
 0x1e1   : > { %v965_v31 = vpop.xlane.xlu1 %964 }
 0x1e2   : > { %5875 = vrsqrt.f32 %v1044_v30  ;;  %v1013_v34 = vmul.f32 0.0625, %v965_v31 }
 0x1e4   : > { %v1045_v48 = vadd.f32 1e-05, %v1013_v34 }
 0x1e5   : > { %v968_v42 = vpop.xlane.xlu0 %967 }
 0x1e6   : > { %5877 = vrsqrt.f32 %v1045_v48  ;;  %v1014_v8 = vmul.f32 0.0625, %v968_v42 }
 0x1e7   : > { %v5872_v50 = vpop.eup %5871 }
 0x1e8   : > { %v1046_v40 = vadd.f32 1e-05, %v1014_v8  ;;  %v1106_v7 = vmul.f32 %v5872_v50, %v6551_v45 }
 0x1e9   : > { %v971_v25 = vpop.xlane.xlu1 %970 }
 0x1ea   : > { %5879 = vrsqrt.f32 %v1046_v40  ;;  %v1015_v14 = vmul.f32 0.0625, %v971_v25  ;;  %v1145_v13 = vmul.f32 %v6575_v27, %v1106_v7 }
 0x1eb   : > { %v5874_v26 = vpop.eup %5873 }
 0x1ec   : > { %v1047_v29 = vadd.f32 1e-05, %v1015_v14  ;;  %v1107_v43 = vmul.f32 %v5874_v26, %v6556_v57  ;;  %v1184_v56 = vadd.f32 %v6588_v28, %v1145_v13 }
 0x1ed   : > { %v974_v46 = vpop.xlane.xlu0 %973 }
 0x1ee   : > { %5881 = vrsqrt.f32 %v1047_v29  ;;  %v1016_v58 = vmul.f32 0.0625, %v974_v46  ;;  %v1146_v61 = vmul.f32 %v6575_v27, %v1107_v43  ;;  %v1248_v33 = vadd.f32 %v1216_v5, %v1184_v56  ;;  %v1220_v29 = vld [vmem:[%s6595_s3 + $0xc0] sm:$0xff]  ;;  %v1221_v46 = vld [vmem:[%s6595_s3 + $0xc8] sm:$0xff] }
 0x1ef   : > { %v5876_v52 = vpop.eup %5875 }
 0x1f0   : > { %v1048_v45 = vadd.f32 1e-05, %v1016_v58  ;;  %v1185_v11 = vadd.f32 %v6588_v28, %v1146_v61  ;;  %v1108_v63 = vmul.f32 %v5876_v52, %v6562_v12 }
 0x1f1   : > { %v977_v16 = vpop.xlane.xlu1 %976 }
 0x1f2   : > { %5883 = vrsqrt.f32 %v1048_v45  ;;  %v1017_v57 = vmul.f32 0.0625, %v977_v16  ;;  %v1249_v6 = vadd.f32 %v1217_v62, %v1185_v11  ;;  %v1147_v59 = vmul.f32 %v6575_v27, %v1108_v63 }
 0x1f3   : > { %v5878_v32 = vpop.eup %5877 }
 0x1f4   : > { %v1049_v9 = vadd.f32 1e-05, %v1017_v57  ;;  %v6779_v54 = vpack.c.bf16 %v1249_v6, %v1248_v33  ;;  %v1109_v18 = vmul.f32 %v5878_v32, %v6568_v22  ;;  %v1186_v53 = vadd.f32 %v6588_v28, %v1147_v59  ;;  %v5782_v57 = vld [vmem:[%s8226_s6 + $0x38] sm:$0xff]  }
 0x1f5   : > { %v980_v36 = vpop.xlane.xlu0 %979  ;;  %5515 = vmatprep.subr.bf16.mxu0 %v5782_v57 }
 0x1f6   : > { %8223 = vst [vmem:[#allocation18_spill] sm:$0xff] %v6779_v54  ;;  %5885 = vrsqrt.f32 %v1049_v9  ;;  %v1018_v12 = vmul.f32 0.0625, %v980_v36  ;;  %5241 = vmatmul.mubr.msk.bf16.gmra.mxu0 %vm700_vm0, %v6779_v54  ;;  %v1148_v20 = vmul.f32 %v6575_v27, %v1109_v18  ;;  %v1250_v34 = vadd.f32 %v1218_v38, %v1186_v53  ;;  %v1223_v9 = vld [vmem:[%s6595_s3 + $0xd8] sm:$0xff]  ;;  %v5784_v53 = vld [vmem:[%s8226_s6 + $0x28] sm:$0xff]  }
 0x1f7   : > { %v5880_v37 = vpop.eup %5879  ;;  %1490 = vmatprep.mubr.bf16.mxu0 %v8163_v49  ;;  %5516 = vmatpush3.bf16.msra.mxu0 %v5782_v57 }
 0x1f8   : > { %v1050_v10 = vadd.f32 1e-05, %v1018_v12  ;;  %v1187_v30 = vadd.f32 %v6588_v28, %v1148_v20  ;;  %v1110_v22 = vmul.f32 %v5880_v37, %v6581_v44 }
 0x1f9   : > { %v983_v31 = vpop.xlane.xlu1 %982 }
 0x1fa   : > { %5887 = vrsqrt.f32 %v1050_v10  ;;  %v1019_v48 = vmul.f32 0.0625, %v983_v31  ;;  %v1251_v42 = vadd.f32 %v1219_v1, %v1187_v30  ;;  %v1149_v8 = vmul.f32 %v6575_v27, %v1110_v22 }
 0x1fb   : > { %v5882_v50 = vpop.eup %5881 }
 0x1fc   : > { %v1051_v40 = vadd.f32 1e-05, %v1019_v48  ;;  %v6792_v7 = vpack.c.bf16 %v1251_v42, %v1250_v34  ;;  %v1111_v25 = vmul.f32 %v5882_v50, %v6602_v2  ;;  %v1188_v13 = vadd.f32 %v6588_v28, %v1149_v8  ;;  %v1224_v34 = vld [vmem:[%s6595_s3 + $0xe0] sm:$0xff]  ;;  %v1225_v48 = vld [vmem:[%s6595_s3 + $0xe8] sm:$0xff] }
 0x1fd   : > { %v986_v14 = vpop.xlane.xlu0 %985 }
 0x1fe   : > { %8224 = vst [vmem:[#allocation19_spill] sm:$0xff] %v6792_v7  ;;  %5889 = vrsqrt.f32 %v1051_v40  ;;  %v1020_v44 = vmul.f32 0.0625, %v986_v14  ;;  %5242 = vmatmul.mubr.msk.bf16.gmra.mxu0 %vm700_vm0, %v6792_v7  ;;  %v1150_v26 = vmul.f32 %v6575_v27, %v1111_v25  ;;  %v1252_v5 = vadd.f32 %v1220_v29, %v1188_v13  ;;  %v1227_v29 = vld [vmem:[%s6595_s3 + $0xf8] sm:$0xff] }
 0x1ff   : > { %v5884_v43 = vpop.eup %5883  ;;  %1500 = vmatprep.mubr.bf16.mxu0 %v8163_v49 }
 0x200   : > { %v1052_v56 = vadd.f32 1e-05, %v1020_v44  ;;  %v1189_v58 = vadd.f32 %v6588_v28, %v1150_v26  ;;  %v1112_v2 = vmul.f32 %v5884_v43, %v6613_v39  ;;  %v5783_v39 = vld [vmem:[%s8226_s6 + $0x30] sm:$0xff]   ;;  %v1280_v43 = vlaneseq }
 0x201   : > { %v989_v61 = vpop.xlane.xlu1 %988  ;;  %5517 = vmatprep.subr.bf16.mxu0 %v5783_v39 }
 0x202   : > { %5891 = vrsqrt.f32 %v1052_v56  ;;  %v1021_v52 = vmul.f32 0.0625, %v989_v61  ;;  %v1253_v62 = vadd.f32 %v1221_v46, %v1189_v58  ;;  %v1151_v45 = vmul.f32 %v6575_v27, %v1112_v2  ;;  %5518 = vmatpush3.bf16.msra.mxu0 %v5783_v39 }
 0x203   : > { %v5886_v11 = vpop.eup %5885  ;;  %5519 = vmatprep.subr.bf16.mxu0 %v5784_v53  ;;  %v6854_v2 = vshrl.u32 %v1280_v43, 7 }
 0x204   : > { %v1053_v63 = vadd.f32 1e-05, %v1021_v52  ;;  %v6805_v16 = vpack.c.bf16 %v1253_v62, %v1252_v5  ;;  %v1113_v33 = vmul.f32 %v5886_v11, %v6626_v60  ;;  %v1190_v59 = vadd.f32 %v6588_v28, %v1151_v45  ;;  %v1222_v60 = vld [vmem:[%s6595_s3 + $0xd0] sm:$0xff] }
 0x205   : > { %8229 = vst [vmem:[#allocation23_spill] sm:$0xff] %v6854_v2  ;;  %v6872_v11 = vsub.s32 0, %v6854_v2 }
 0x206   : > { %8225 = vst [vmem:[#allocation20_spill] sm:$0xff] %v6805_v16  ;;  %5893 = vrsqrt.f32 %v1053_v63  ;;  %5243 = vmatmul.mubr.msk.bf16.gmra.mxu0 %vm700_vm0, %v6805_v16  ;;  %v1152_v6 = vmul.f32 %v6575_v27, %v1113_v33  ;;  %v1254_v12 = vadd.f32 %v1222_v60, %v1190_v59 }
 0x207   : > { %v5888_v32 = vpop.eup %5887  ;;  %1510 = vmatprep.mubr.bf16.mxu0 %v8163_v49  ;;  %5520 = vmatpush3.bf16.msra.mxu0 %v5784_v53  ;;  %8233 = vst [vmem:[#allocation26_spill] sm:$0xff] %v6872_v11 }
 0x208   : > { %v1191_v18 = vadd.f32 %v6588_v28, %v1152_v6  ;;  %v1114_v36 = vmul.f32 %v5888_v32, %v6638_v21  ;;  %v5785_v21 = vld [vmem:[%s8226_s6 + $0x20] sm:$0xff]  }
 0x209   : > { %5521 = vmatprep.subr.bf16.mxu0 %v5785_v21 }
 0x20a   : > { %v1255_v20 = vadd.f32 %v1223_v9, %v1191_v18  ;;  %v1153_v38 = vmul.f32 %v6575_v27, %v1114_v36 }
 0x20b   : > { %v5890_v37 = vpop.eup %5889  ;;  %5522 = vmatpush3.bf16.msra.mxu0 %v5785_v21 }
 0x20c   : > { %v6827_v1 = vpack.c.bf16 %v1255_v20, %v1254_v12  ;;  %v1115_v10 = vmul.f32 %v5890_v37, %v6651_v41  ;;  %v1192_v22 = vadd.f32 %v6588_v28, %v1153_v38 }
 0x20e   : > { %8227 = vst [vmem:[#allocation21_spill] sm:$0xff] %v6827_v1  ;;  %5244 = vmatmul.mubr.msk.bf16.gmra.mxu0 %vm700_vm0, %v6827_v1  ;;  %v1154_v30 = vmul.f32 %v6575_v27, %v1115_v10  ;;  %v1256_v8 = vadd.f32 %v1224_v34, %v1192_v22 }
 0x20f   : > { %v5892_v31 = vpop.eup %5891  ;;  %1520 = vmatprep.mubr.bf16.mxu0 %v8163_v49 }
 0x210   : > { %v1193_v41 = vadd.f32 %v6588_v28, %v1154_v30  ;;  %v1116_v42 = vmul.f32 %v5892_v31, %v6663_v17  ;;  %v1226_v17 = vld [vmem:[%s6595_s3 + $0xf0] sm:$0xff]  ;;  %s5225_s3 = sshll.u32 %s6225_s2, 2 }
 0x211   : > { %p7777_p11 = scmp.lt.s32.totalorder %s5225_s3, 7 }
 0x212   : > { %v1257_v50 = vadd.f32 %v1225_v48, %v1193_v41  ;;  %v1155_v40 = vmul.f32 %v6575_v27, %v1116_v42 }
 0x213   : > { %v5894_v25 = vpop.eup %5893  ;;  %s8315_s3 = smov (!%p7777_p11, %s5225_s3), 7 }
 0x214   : > { %v6843_v14 = vpack.c.bf16 %v1257_v50, %v1256_v8  ;;  %v1117_v13 = vmul.f32 %v5894_v25, %v6676_v3  ;;  %v1194_v26 = vadd.f32 %v6588_v28, %v1155_v40  ;;  %v8162_v3 = vsub.s32 1, %v6854_v2  ;;  %s5226_s21 = sshll.u32 %s8315_s3, 3  ;;  %s5361_s3 = sshll.u32 %s6225_s2, 9 }
 0x215   : > { %s7810_s28 = scalar_lea.vmem %s8155_s20, %s5226_s21  ;;  %s8089_s0 = scalar_lea.hbm %s8154_s19, %s5361_s3 }
 0x216   : > { %8228 = vst [vmem:[#allocation22_spill] sm:$0xff] %v6843_v14  ;;  %5245 = vmatmul.mubr.msk.bf16.gmra.mxu0 %vm700_vm0, %v6843_v14  ;;  %v1156_v44 = vmul.f32 %v6575_v27, %v1117_v13  ;;  %v1258_v56 = vadd.f32 %v1226_v17, %v1194_v26  ;;  %v1278_v27 = vld [vmem:[%s8231_s5] sm:$0x3]  ;;  %s6096_s2 = smov [#allocation2]  }
 0x217   : > { %1530 = vmatprep.mubr.bf16.mxu0 %v8163_v49  ;;  %v6866_v5 = vrot.slane %v1278_v27, %v8162_v3  ;;  %v6878_v39 = vrot.slane %v1278_v27, %v6872_v11  ;;  %s6036_s23 = sshll.u32 %s6096_s2, 4  ;;  %s6037_s23 = int_to_ptr.vmem [resolvable:$false] %s6036_s23 }
 0x218   : > { %v1195_v46 = vadd.f32 %v6588_v28, %v1156_v44  ;;  %s6038_s3 = scalar_lea.vmem %s6037_s23, 1024  ;;  %p6039_p1 = scmp.lt.s32.totalorder %s8091_s26, %s6037_s23 }
 0x219   : > { %8232 = vst [vmem:[#allocation25_spill] sm:$0xff] %v6866_v5 }
 0x21a   : > { %v1259_v58 = vadd.f32 %v1227_v29, %v1195_v46 }
 0x21c   : > { %v6856_v61 = vpack.c.bf16 %v1259_v58, %v1258_v56 }
 0x21e   : > { %8230 = vst [vmem:[#allocation24_spill] sm:$0xff] %v6856_v61  ;;  %5246 = vmatmul.mubr.msk.bf16.gmra.mxu0 %vm700_vm0, %v6856_v61 }
 0x222   : > { %v1382_v28 = vpop.f32.mrf.mxu0 }
 0x223   : > { %v1383_v60 = vadd.f32 %v1382_v28, %v6878_v39 }
 0x224   : > { %v1384_v52 = vpop.f32.mrf.mxu0 }
 0x225   : > { %v6869_v62 = vadd.f32 %v1384_v52, %v6866_v5  ;;  %v1541_v12 = vrot.slane %v1383_v60, 4 }
 0x226   : > { %v1386_v45 = vpop.f32.mrf.mxu0 }
 0x227   : > { %v1387_v9 = vadd.f32 %v1386_v45, %v6878_v39  ;;  %v1542_v30 = vadd.f32 %v1541_v12, %v1383_v60 }
 0x228   : > { %v1388_v63 = vpop.f32.mrf.mxu0 }
 0x229   : > { %v6875_v33 = vadd.f32 %v1388_v63, %v6866_v5  ;;  %v1547_v20 = vrot.slane %v1387_v9, 4  ;;  %v1543_v42 = vrot.slane %v1542_v30, 2 }
 0x22a   : > { %v1392_v57 = vpop.f32.mrf.mxu0 }
 0x22b   : > { %v1393_v37 = vadd.f32 %v1392_v57, %v6878_v39  ;;  %v1548_v22 = vadd.f32 %v1547_v20, %v1387_v9  ;;  %v1544_v44 = vadd.f32 %v1543_v42, %v1542_v30 }
 0x22c   : > { %v1394_v6 = vpop.f32.mrf.mxu0 }
 0x22d   : > { %v6881_v59 = vadd.f32 %v1394_v6, %v6866_v5  ;;  %v1553_v34 = vrot.slane %v1393_v37, 4  ;;  %v1549_v8 = vrot.slane %v1548_v22, 2  ;;  %v1545_v58 = vrot.slane %v1544_v44, 1 }
 0x22e   : > { %v1396_v32 = vpop.f32.mrf.mxu0 }
 0x22f   : > { %v1554_v40 = vadd.f32 %v1553_v34, %v1393_v37  ;;  %v1550_v26 = vadd.f32 %v1549_v8, %v1548_v22  ;;  %v1397_v17 = vadd.f32 %v1396_v32, %v6878_v39  ;;  %v1546_v6 = vadd.f32 %v1545_v58, %v1544_v44 }
 0x230   : > { %v1398_v18 = vpop.f32.mrf.mxu0 }
 0x231   : > { %v6886_v36 = vadd.f32 %v1398_v18, %v6866_v5  ;;  %v1555_v43 = vrot.slane %v1554_v40, 2  ;;  %v1551_v27 = vrot.slane %v1550_v26, 1  ;;  %v1559_v28 = vrot.slane %v1397_v17, 4 }
 0x232   : > { %v1402_v53 = vpop.f32.mrf.mxu0  ;;  %v1734_v8 = vmul.f32 0.125, %v1546_v6 }
 0x233   : > { %v1556_v45 = vadd.f32 %v1555_v43, %v1554_v40  ;;  %v1552_v60 = vadd.f32 %v1551_v27, %v1550_v26  ;;  %v1560_v18 = vadd.f32 %v1559_v28, %v1397_v17  ;;  %v1403_v12 = vadd.f32 %v1402_v53, %v6878_v39  ;;  %v5786_v53 = vld [vmem:[%s8226_s6 + $0x18] sm:$0xff]  }
 0x234   : > { %v1404_v38 = vpop.f32.mrf.mxu0  ;;  %5523 = vmatprep.subr.bf16.mxu0 %v5786_v53 }
 0x235   : > { %v6890_v10 = vadd.f32 %v1404_v38, %v6866_v5  ;;  %v1557_v37 = vrot.slane %v1556_v45, 1  ;;  %v1565_v26 = vrot.slane %v1403_v12, 4  ;;  %5524 = vmatpush3.bf16.msra.mxu0 %v5786_v53 }
 0x236   : > { %v1406_v21 = vpop.f32.mrf.mxu0 }
 0x237   : > { %v1407_v20 = vadd.f32 %v1406_v21, %v6878_v39  ;;  %v1561_v21 = vrot.slane %v1560_v18, 2 }
 0x238   : > { %v1408_v31 = vpop.f32.mrf.mxu0 }
 0x239   : > { %v6893_v48 = vadd.f32 %v1408_v31, %v6866_v5  ;;  %v1571_v17 = vrot.slane %v1407_v20, 4 }
 0x23a   : > { %v1412_v41 = vpop.f32.mrf.mxu0 }
 0x23b   : > { %v1413_v30 = vadd.f32 %v1412_v41, %v6878_v39  ;;  %v1572_v3 = vadd.f32 %v1571_v17, %v1407_v20 }
 0x23c   : > { %v1414_v50 = vpop.f32.mrf.mxu0 }
 0x23d   : > { %v6896_v25 = vadd.f32 %v1414_v50, %v6866_v5  ;;  %v1735_v50 = vmul.f32 0.125, %v1552_v60  ;;  %v1577_v43 = vrot.slane %v1413_v30, 4 }
 0x23e   : > { %v1416_v13 = vpop.f32.mrf.mxu0 }
 0x23f   : > { %v1417_v31 = vadd.f32 %v1416_v13, %v6878_v39 }
 0x240   : > { %v1418_v29 = vpop.f32.mrf.mxu0 }
 0x241   : > { %v6900_v46 = vadd.f32 %v1418_v29, %v6866_v5  ;;  %v1558_v29 = vadd.f32 %v1557_v37, %v1556_v45  ;;  %v1583_v58 = vrot.slane %v1417_v31, 4  ;;  %v1578_v37 = vadd.f32 %v1577_v43, %v1413_v30 }
 0x242   : > { %v1422_v56 = vpop.f32.mrf.mxu0 }
 0x243   : > { %v1423_v9 = vadd.f32 %v1422_v56, %v6878_v39  ;;  %v1584_v61 = vadd.f32 %v1583_v58, %v1417_v31  ;;  %v1579_v30 = vrot.slane %v1578_v37, 2 }
 0x244   : > { %v1424_v52 = vpop.f32.mrf.mxu0 }
 0x245   : > { %v6903_v63 = vadd.f32 %v1424_v52, %v6866_v5  ;;  %v1589_v40 = vrot.slane %v1423_v9, 4  ;;  %v1766_v52 = vpack.c.bf16 %v1734_v8, %v1734_v8 }
 0x246   : > { %v1426_v57 = vpop.f32.mrf.mxu0 }
 0x247   : > { %v1427_v32 = vadd.f32 %v1426_v57, %v6878_v39  ;;  %v1767_v57 = vpack.c.bf16 %v1735_v50, %v1735_v50  ;;  %v1590_v6 = vadd.f32 %v1589_v40, %v1423_v9  ;;  %v1853_v50 = vunpack.c.l.b16 %v1766_v52 }
 0x248   : > { %v1428_v38 = vpop.f32.mrf.mxu0 }
 0x249   : > { %v1595_v22 = vrot.slane %v1427_v32, 4  ;;  %v6912_v34 = vadd.f32 %v1428_v38, %v6866_v5  ;;  %v1562_v38 = vadd.f32 %v1561_v21, %v1560_v18  ;;  %v1854_v9 = vunpack.c.l.b16 %v1767_v57 }
 0x24a   : > { %v1432_v42 = vpop.f32.mrf.mxu0  ;;  %v1591_v40 = vrot.slane %v1590_v6, 2 }
 0x24b   : > { %v1433_v44 = vadd.f32 %v1432_v42, %v6878_v39  ;;  %v1596_v13 = vadd.f32 %v1595_v22, %v1427_v32  ;;  %v1566_v42 = vadd.f32 %v1565_v26, %v1403_v12  ;;  %v1736_v32 = vmul.f32 0.125, %v1558_v29 }
 0x24c   : > { %v1434_v41 = vpop.f32.mrf.mxu0  ;;  %v1563_v12 = vrot.slane %v1562_v38, 1  ;;  %v1585_v29 = vrot.slane %v1584_v61, 2  ;;  %v6930_v52 = vsel %vm1885_vm1, %v1854_v9, %v1853_v50  ;;  %v1592_v57 = vadd.f32 %v1591_v40, %v1590_v6 }
 0x24d   : > { %v1601_v56 = vrot.slane %v1433_v44, 4  ;;  %v6919_v27 = vadd.f32 %v1434_v41, %v6866_v5  ;;  %v1597_v22 = vrot.slane %v1596_v13, 2  ;;  %v1567_v20 = vrot.slane %v1566_v42, 2 }
 0x24e   : > { %v1436_v28 = vpop.f32.mrf.mxu0  ;;  %v1768_v26 = vpack.c.bf16 %v1736_v32, %v1736_v32  ;;  %v1586_v54 = vadd.f32 %v1585_v29, %v1584_v61 }
 0x24f   : > { %v1602_v60 = vadd.f32 %v1601_v56, %v1433_v44  ;;  %v1437_v49 = vadd.f32 %v1436_v28, %v6878_v39  ;;  %v1573_v44 = vrot.slane %v1572_v3, 2  ;;  %v1598_v17 = vadd.f32 %v1597_v22, %v1596_v13 }
 0x250   : > { %v1438_v45 = vpop.f32.mrf.mxu0  ;;  %v6933_v22 = vunpack.c.l.b16 %v1768_v26  ;;  %v1587_v29 = vrot.slane %v1586_v54, 1 }
 0x251   : > { %v1603_v14 = vrot.slane %v1602_v60, 2  ;;  %v1607_v41 = vrot.slane %v1437_v49, 4  ;;  %v6923_v1 = vadd.f32 %v1438_v45, %v6866_v5  ;;  %v1574_v32 = vadd.f32 %v1573_v44, %v1572_v3 }
 0x252   : > { %v1442_v8 = vpop.f32.mrf.mxu0 }
 0x253   : > { %v1443_v18 = vadd.f32 %v1442_v8, %v6878_v39  ;;  %v1608_v53 = vadd.f32 %v1607_v41, %v1437_v49  ;;  %v1604_v43 = vadd.f32 %v1603_v14, %v1602_v60  ;;  %v1564_v49 = vadd.f32 %v1563_v12, %v1562_v38  ;;  %v5787_v38 = vld [vmem:[%s8226_s6 + $0x10] sm:$0xff]  }
 0x254   : > { %v1444_v21 = vpop.f32.mrf.mxu0  ;;  %v1568_v41 = vadd.f32 %v1567_v20, %v1566_v42  ;;  %v1599_v14 = vrot.slane %v1598_v17, 1  ;;  %v1593_v42 = vrot.slane %v1592_v57, 1  ;;  %v1575_v20 = vrot.slane %v1574_v32, 1  ;;  %5525 = vmatprep.subr.bf16.mxu0 %v5787_v38 }
 0x255   : > { %v1613_v31 = vrot.slane %v1443_v18, 4  ;;  %v1609_v56 = vrot.slane %v1608_v53, 2  ;;  %v6927_v58 = vadd.f32 %v1444_v21, %v6866_v5  ;;  %v1580_v21 = vadd.f32 %v1579_v30, %v1578_v37  ;;  %5526 = vmatpush3.bf16.msra.mxu0 %v5787_v38 }
 0x256   : > { %v1446_v28 = vpop.f32.mrf.mxu0  ;;  %v1605_v23 = vrot.slane %v1604_v43, 1  ;;  %v1569_v12 = vrot.slane %v1568_v41, 1  ;;  %v1600_v61 = vadd.f32 %v1599_v14, %v1598_v17 }
 0x257   : > { %v1614_v45 = vadd.f32 %v1613_v31, %v1443_v18  ;;  %v1447_v8 = vadd.f32 %v1446_v28, %v6878_v39  ;;  %v1610_v16 = vadd.f32 %v1609_v56, %v1608_v53  ;;  %v1737_v18 = vmul.f32 0.125, %v1564_v49 }
 0x258   : > { %v1448_v13 = vpop.f32.mrf.mxu0  ;;  %v1581_v31 = vrot.slane %v1580_v21, 1  ;;  %v1606_v56 = vadd.f32 %v1605_v23, %v1604_v43  ;;  %v1743_v55 = vmul.f32 0.125, %v1600_v61  ;;  %v1588_v43 = vadd.f32 %v1587_v29, %v1586_v54 }
 0x259   : > { %v1615_v60 = vrot.slane %v1614_v45, 2  ;;  %v1619_v7 = vrot.slane %v1447_v8, 4  ;;  %v6936_v50 = vadd.f32 %v1448_v13, %v6866_v5  ;;  %v1611_v3 = vrot.slane %v1610_v16, 1 }
 0x25a   : > { %v1452_v6 = vpop.f32.mrf.mxu0  ;;  %v1582_v23 = vadd.f32 %v1581_v31, %v1580_v21  ;;  %v1744_v15 = vmul.f32 0.125, %v1606_v56 }
 0x25b   : > { %v1616_v9 = vadd.f32 %v1615_v60, %v1614_v45  ;;  %v1620_v40 = vadd.f32 %v1619_v7, %v1447_v8  ;;  %v1453_v44 = vadd.f32 %v1452_v6, %v6878_v39  ;;  %v1594_v7 = vadd.f32 %v1593_v42, %v1592_v57 }
 0x25c   : > { %v1454_v37 = vpop.f32.mrf.mxu0  ;;  %v1612_v8 = vadd.f32 %v1611_v3, %v1610_v16  ;;  %v1570_v60 = vadd.f32 %v1569_v12, %v1568_v41  ;;  %v1576_v6 = vadd.f32 %v1575_v20, %v1574_v32  ;;  %v1740_v54 = vmul.f32 0.125, %v1582_v23 }
 0x25d   : > { %v1617_v53 = vrot.slane %v1616_v9, 1  ;;  %v1621_v26 = vrot.slane %v1620_v40, 2  ;;  %v6943_v30 = vadd.f32 %v1454_v37, %v6866_v5  ;;  %v1625_v28 = vrot.slane %v1453_v44, 4 }
 0x25e   : > { %v1456_v45 = vpop.f32.mrf.mxu0  ;;  %v1742_v42 = vmul.f32 0.125, %v1594_v7  ;;  %v1745_v3 = vmul.f32 0.125, %v1612_v8  ;;  %v1739_v61 = vmul.f32 0.125, %v1576_v6  ;;  %v1776_v21 = vpack.c.bf16 %v1744_v15, %v1744_v15 }
 0x25f   : > { %v1622_v49 = vadd.f32 %v1621_v26, %v1620_v40  ;;  %v1457_v13 = vadd.f32 %v1456_v45, %v6878_v39  ;;  %v1618_v51 = vadd.f32 %v1617_v53, %v1616_v9  ;;  %v1626_v17 = vadd.f32 %v1625_v28, %v1453_v44 }
 0x260   : > { %v1458_v14 = vpop.f32.mrf.mxu0  ;;  %v1769_v9 = vpack.c.bf16 %v1737_v18, %v1737_v18  ;;  %v1738_v40 = vmul.f32 0.125, %v1570_v60  ;;  %v1775_v53 = vpack.c.bf16 %v1743_v55, %v1743_v55  ;;  %v1774_v18 = vpack.c.bf16 %v1742_v42, %v1742_v42 }
 0x261   : > { %v1623_v37 = vrot.slane %v1622_v49, 1  ;;  %v1631_v24 = vrot.slane %v1457_v13, 4  ;;  %v6947_v38 = vadd.f32 %v1458_v14, %v6866_v5  ;;  %v1627_v57 = vrot.slane %v1626_v17, 2 }
 0x262   : > { %v6949_v16 = vpop.f32.mrf.mxu0  ;;  %v1746_v12 = vmul.f32 0.125, %v1618_v51  ;;  %v1777_v45 = vpack.c.bf16 %v1745_v3, %v1745_v3  ;;  %v1856_v7 = vunpack.c.l.b16 %v1769_v9  ;;  %v1770_v8 = vpack.c.bf16 %v1738_v40, %v1738_v40  ;;  %v5788_v9 = vld [vmem:[%s8226_s6 + $0x8] sm:$0xff]  }
 0x263   : > { %v1624_v41 = vadd.f32 %v1623_v37, %v1622_v49  ;;  %v1632_v32 = vadd.f32 %v1631_v24, %v1457_v13  ;;  %v1628_v20 = vadd.f32 %v1627_v57, %v1626_v17  ;;  %v1741_v24 = vmul.f32 0.125, %v1588_v43  ;;  %5527 = vmatprep.subr.bf16.mxu0 %v5788_v9 }
 0x264   : > { %v1464_v44 = vpop.f32.mrf.mxu0  ;;  %v1778_v55 = vpack.c.bf16 %v1746_v12, %v1746_v12  ;;  %v1771_v60 = vpack.c.bf16 %v1739_v61, %v1739_v61  ;;  %v1862_v6 = vunpack.c.l.b16 %v1775_v53  ;;  %v1772_v14 = vpack.c.bf16 %v1740_v54, %v1740_v54  ;;  %5528 = vmatpush3.bf16.msra.mxu0 %v5788_v9  ;;  %v2427_v9 = vld [vmem:[%s8149_s14 + $0x50] sm:$0xff] }
 0x265   : > { %v1747_v26 = vmul.f32 0.125, %v1624_v41  ;;  %v1633_v28 = vrot.slane %v1632_v32, 2  ;;  %v1629_v31 = vrot.slane %v1628_v20, 1  ;;  %v6952_v29 = vadd.f32 %v1464_v44, %v6866_v5 }
 0x266   : > { %v6954_v56 = vpop.f32.mrf.mxu0  ;;  %v1863_v37 = vunpack.c.l.b16 %v1776_v21  ;;  %v1773_v42 = vpack.c.bf16 %v1741_v24, %v1741_v24  ;;  %v1861_v3 = vunpack.c.l.b16 %v1774_v18  ;;  %v1864_v41 = vunpack.c.l.b16 %v1777_v45 }
 0x267   : > { %8234 = vst [vmem:[#allocation27_spill] sm:$0xff] %v6952_v29  ;;  %v1634_v51 = vadd.f32 %v1633_v28, %v1632_v32  ;;  %v1630_v49 = vadd.f32 %v1629_v31, %v1628_v20  ;;  %v1779_v15 = vpack.c.bf16 %v1747_v26, %v1747_v26  ;;  %v1888_v40 = vsel %vm1887_vm2, %v6933_v22, %v6930_v52 }
 0x268   : > { %v1468_v13 = vpop.f32.mrf.mxu0  ;;  %v1857_v12 = vunpack.c.l.b16 %v1770_v8  ;;  %v1865_v20 = vunpack.c.l.b16 %v1778_v55  ;;  %v1858_v53 = vunpack.c.l.b16 %v1771_v60  ;;  %v1899_v26 = vsel %vm1885_vm1, %v1862_v6, %v1861_v3  ;;  %v2430_v3 = vld [vmem:[%s8149_s14 + $0x68] sm:$0xff] }
 0x269   : > { %v1635_v17 = vrot.slane %v1634_v51, 1  ;;  %v1748_v23 = vmul.f32 0.125, %v1630_v49  ;;  %v6957_v57 = vadd.f32 %v1468_v13, %v6866_v5  ;;  %v1866_v28 = vunpack.c.l.b16 %v1779_v15 }
 0x26a   : > { %v6959_v43 = vpop.f32.mrf.mxu0  ;;  %v1859_v21 = vunpack.c.l.b16 %v1772_v14  ;;  %v1900_v31 = vsel %vm1887_vm2, %v1863_v37, %v1899_v26  ;;  %v1890_v52 = vsel %vm1889_vm3, %v1856_v7, %v1888_v40  ;;  %v1860_v22 = vunpack.c.l.b16 %v1773_v42  ;;  %v5789_v37 = vld [vmem:[%s8226_s6] sm:$0xff]   ;;  %v2431_v42 = vld [vmem:[%s8149_s14 + $0x70] sm:$0xff]  ;;  %v2426_v40 = vld [vmem:[%s8149_s14 + $0x48] sm:$0xff] }
 0x26b   : > { %8235 = vst [vmem:[#allocation28_spill] sm:$0xff] %v6957_v57  ;;  %v1636_v32 = vadd.f32 %v1635_v17, %v1634_v51  ;;  %v1780_v44 = vpack.c.bf16 %v1748_v23, %v1748_v23  ;;  %v1901_v45 = vsel %vm1889_vm3, %v1864_v41, %v1900_v31  ;;  %v1892_v8 = vsel %vm1891_vm4, %v1857_v12, %v1890_v52  ;;  %v2432_v23 = vld [vmem:[%s8149_s14 + $0x78] sm:$0xff]  ;;  %v2429_v41 = vld [vmem:[%s8149_s14 + $0x60] sm:$0xff] }
 0x26c   : > { %v1474_v61 = vpop.f32.mrf.mxu0  ;;  %v1902_v55 = vsel %vm1891_vm4, %v1865_v20, %v1901_v45  ;;  %v1894_v13 = vsel %vm1893_vm5, %v1858_v53, %v1892_v8  ;;  %5529 = vmatprep.subr.bf16.mxu0 %v5789_v37  ;;  %5535 = vmatprep.subr.mxu1 %v2432_v23  ;;  %v2425_v12 = vld [vmem:[%s8149_s14 + $0x40] sm:$0xff]  ;;  %v1467_v26 = vadd.f32 %v6954_v56, %v6878_v39 }
 0x26d   : > { %v1749_v54 = vmul.f32 0.125, %v1636_v32  ;;  %v1867_v24 = vunpack.c.l.b16 %v1780_v44  ;;  %v6970_v18 = vadd.f32 %v1474_v61, %v6866_v5  ;;  %v1903_v60 = vsel %vm1893_vm5, %v1866_v28, %v1902_v55  ;;  %5530 = vmatpush3.bf16.msra.mxu0 %v5789_v37  ;;  %5536 = vmatpush3.msra.mxu1 %v2432_v23  ;;  %v2428_v32 = vld [vmem:[%s8149_s14 + $0x58] sm:$0xff] }
 0x26e   : > { %v1896_v6 = vsel %vm1895_vm6, %v1859_v21, %v1894_v13  ;;  %5537 = vmatprep.subr.mxu1 %v2431_v42  ;;  %v1476_v20 = vpop.f32.mrf.mxu0  ;;  %v1463_v61 = vadd.f32 %v6949_v16, %v6878_v39  ;;  %v1473_v13 = vadd.f32 %v6959_v43, %v6878_v39 }
 0x26f   : > { %8236 = vst [vmem:[#allocation29_spill] sm:$0xff] %v6970_v18  ;;  %v1781_v51 = vpack.c.bf16 %v1749_v54, %v1749_v54  ;;  %v1904_v15 = vsel %vm1895_vm6, %v1867_v24, %v1903_v60  ;;  %v1898_v7 = vsel %vm1897_vm7, %v1860_v22, %v1896_v6  ;;  %5538 = vmatpush3.msra.mxu1 %v2431_v42  ;;  %v1643_v24 = vrot.slane %v1467_v26, 4 }
 0x270   : > { %5539 = vmatprep.subr.mxu1 %v2430_v3  ;;  %v7009_v44 = vpop.f32.mrf.mxu0  ;;  %v1637_v21 = vrot.slane %v1463_v61, 4 }
 0x271   : > { %v1868_v49 = vunpack.c.l.b16 %v1781_v51  ;;  %5540 = vmatpush3.msra.mxu1 %v2430_v3  ;;  %8237 = vst [vmem:[#allocation30_spill] sm:$0xff] %v7009_v44  ;;  %v1644_v8 = vadd.f32 %v1643_v24, %v1467_v26  ;;  %v1477_v3 = vadd.f32 %v1476_v20, %v6878_v39 }
 0x272   : > { %5541 = vmatprep.subr.mxu1 %v2429_v41  ;;  %v1638_v45 = vadd.f32 %v1637_v21, %v1463_v61 }
 0x273   : > { %v1905_v17 = vsel %vm1897_vm7, %v1868_v49, %v1904_v15  ;;  %5542 = vmatpush3.msra.mxu1 %v2429_v41  ;;  %v1645_v60 = vrot.slane %v1644_v8, 2  ;;  %v1655_v20 = vrot.slane %v1477_v3, 4 }
 0x274   : > { %v1920_v14 = vpack.c.b16 %v1905_v17, %v1898_v7  ;;  %5543 = vmatprep.subr.mxu1 %v2428_v32  ;;  %v1639_v49 = vrot.slane %v1638_v45, 2 }
 0x275   : > { %5544 = vmatpush3.msra.mxu1 %v2428_v32  ;;  %v1646_v37 = vadd.f32 %v1645_v60, %v1644_v8 }
 0x276   : > { %5531 = vmatprep.mubr.bf16.mxu0 %v1920_v14  ;;  %5545 = vmatprep.subr.mxu1 %v2427_v9  ;;  %v1640_v15 = vadd.f32 %v1639_v49, %v1638_v45  ;;  %v1649_v14 = vrot.slane %v1473_v13, 4 }
 0x277   : > { %5546 = vmatpush3.msra.mxu1 %v2427_v9 }
 0x278   : > { %5547 = vmatprep.subr.mxu1 %v2426_v40  ;;  %v1641_v42 = vrot.slane %v1640_v15, 1  ;;  %v1650_v9 = vadd.f32 %v1649_v14, %v1473_v13 }
 0x279   : > { %5548 = vmatpush3.msra.mxu1 %v2426_v40  ;;  %v1647_v40 = vrot.slane %v1646_v37, 1 }
 0x27a   : > { %5549 = vmatprep.subr.mxu1 %v2425_v12  ;;  %v1642_v24 = vadd.f32 %v1641_v42, %v1640_v15  ;;  %v1651_v13 = vrot.slane %v1650_v9, 2  ;;  %v1656_v42 = vadd.f32 %v1655_v20, %v1477_v3 }
 0x27b   : > { %5550 = vmatpush3.msra.mxu1 %v2425_v12  ;;  %v1648_v49 = vadd.f32 %v1647_v40, %v1646_v37 }
 0x27c   : > { %v1750_v15 = vmul.f32 0.125, %v1642_v24  ;;  %v1652_v37 = vadd.f32 %v1651_v13, %v1650_v9  ;;  %v1657_v24 = vrot.slane %v1656_v42, 2 }
 0x27e   : > { %v1653_v9 = vrot.slane %v1652_v37, 1 }
 0x2b6   : > { %v1482_v53 = vpop.f32.mrf.mxu0 }
 0x2b7   : > { %v1483_v43 = vadd.f32 %v1482_v53, %v6878_v39 }
 0x2b8   : > { %v1484_v28 = vpop.f32.mrf.mxu0 }
 0x2b9   : > { %v7016_v54 = vadd.f32 %v1484_v28, %v6866_v5  ;;  %v1661_v60 = vrot.slane %v1483_v43, 4 }
 0x2ba   : > { %v1486_v31 = vpop.f32.mrf.mxu0 }
 0x2bb   : > { %8238 = vst [vmem:[#allocation31_spill] sm:$0xff] %v7016_v54  ;;  %v1487_v28 = vadd.f32 %v1486_v31, %v6878_v39  ;;  %v1662_v40 = vadd.f32 %v1661_v60, %v1483_v43 }
 0x2bc   : > { %v1488_v52 = vpop.f32.mrf.mxu0 }
 0x2bd   : > { %v7019_v22 = vadd.f32 %v1488_v52, %v6866_v5  ;;  %v1667_v14 = vrot.slane %v1487_v28, 4  ;;  %v1663_v43 = vrot.slane %v1662_v40, 2 }
 0x2be   : > { %v1492_v51 = vpop.f32.mrf.mxu0 }
 0x2bf   : > { %8239 = vst [vmem:[#allocation32_spill] sm:$0xff] %v7019_v22  ;;  %v1493_v52 = vadd.f32 %v1492_v51, %v6878_v39  ;;  %v1668_v47 = vadd.f32 %v1667_v14, %v1487_v28  ;;  %v1664_v22 = vadd.f32 %v1663_v43, %v1662_v40 }
 0x2c0   : > { %v1494_v55 = vpop.f32.mrf.mxu0 }
 0x2c1   : > { %v7022_v16 = vadd.f32 %v1494_v55, %v6866_v5  ;;  %v1669_v28 = vrot.slane %v1668_v47, 2 }
 0x2c2   : > { %v1496_v56 = vpop.f32.mrf.mxu0 }
 0x2c3   : > { %8240 = vst [vmem:[#allocation33_spill] sm:$0xff] %v7022_v16  ;;  %v1497_v55 = vadd.f32 %v1496_v56, %v6878_v39 }
 0x2c4   : > { %v1498_v6 = vpop.f32.mrf.mxu0 }
 0x2c5   : > { %v7027_v7 = vadd.f32 %v1498_v6, %v6866_v5  ;;  %v1679_v0 = vrot.slane %v1497_v55, 4 }
 0x2c6   : > { %v1502_v17 = vpop.f32.mrf.mxu0 }
 0x2c7   : > { %8241 = vst [vmem:[#allocation34_spill] sm:$0xff] %v7027_v7  ;;  %v1503_v12 = vadd.f32 %v1502_v17, %v6878_v39 }
 0x2c8   : > { %v1504_v23 = vpop.f32.mrf.mxu0 }
 0x2c9   : > { %v7031_v41 = vadd.f32 %v1504_v23, %v6866_v5  ;;  %v1685_v6 = vrot.slane %v1503_v12, 4 }
 0x2ca   : > { %v1506_v32 = vpop.f32.mrf.mxu0 }
 0x2cb   : > { %8242 = vst [vmem:[#allocation35_spill] sm:$0xff] %v7031_v41  ;;  %v1507_v61 = vadd.f32 %v1506_v32, %v6878_v39  ;;  %v1673_v32 = vrot.slane %v1493_v52, 4  ;;  %v1686_v19 = vadd.f32 %v1685_v6, %v1503_v12 }
 0x2cc   : > { %v1508_v26 = vpop.f32.mrf.mxu0 }
 0x2cd   : > { %v7038_v21 = vadd.f32 %v1508_v26, %v6866_v5  ;;  %v1691_v45 = vrot.slane %v1507_v61, 4  ;;  %v1674_v3 = vadd.f32 %v1673_v32, %v1493_v52  ;;  %v1687_v12 = vrot.slane %v1686_v19, 2 }
 0x2ce   : > { %v1512_v8 = vpop.f32.mrf.mxu0  ;;  %v1658_v52 = vadd.f32 %v1657_v24, %v1656_v42 }
 0x2cf   : > { %8243 = vst [vmem:[#allocation36_spill] sm:$0xff] %v7038_v21  ;;  %v1513_v53 = vadd.f32 %v1512_v8, %v6878_v39  ;;  %v1692_v51 = vadd.f32 %v1691_v45, %v1507_v61  ;;  %v1751_v8 = vmul.f32 0.125, %v1648_v49  ;;  %v1680_v45 = vadd.f32 %v1679_v0, %v1497_v55 }
 0x2d0   : > { %v1514_v17 = vpop.f32.mrf.mxu0  ;;  %v1659_v54 = vrot.slane %v1658_v52, 1 }
 0x2d1   : > { %v1697_v31 = vrot.slane %v1513_v53, 4  ;;  %v7044_v23 = vadd.f32 %v1514_v17, %v6866_v5  ;;  %v1782_v17 = vpack.c.bf16 %v1750_v15, %v1750_v15  ;;  %v1693_v20 = vrot.slane %v1692_v51, 2 }
 0x2d2   : > { %v1516_v26 = vpop.f32.mrf.mxu0  ;;  %v1783_v49 = vpack.c.bf16 %v1751_v8, %v1751_v8  ;;  %v1675_v15 = vrot.slane %v1674_v3, 2 }
 0x2d3   : > { %8244 = vst [vmem:[#allocation37_spill] sm:$0xff] %v7044_v23  ;;  %v1698_v4 = vadd.f32 %v1697_v31, %v1513_v53  ;;  %v1517_v56 = vadd.f32 %v1516_v26, %v6878_v39  ;;  %v7054_v14 = vunpack.c.l.b16 %v1782_v17  ;;  %v1694_v0 = vadd.f32 %v1693_v20, %v1692_v51 }
 0x2d4   : > { %v1518_v35 = vpop.f32.mrf.mxu0  ;;  %v7057_v8 = vunpack.c.l.b16 %v1783_v49  ;;  %v1676_v42 = vadd.f32 %v1675_v15, %v1674_v3  ;;  %v1660_v3 = vadd.f32 %v1659_v54, %v1658_v52 }
 0x2d5   : > { %v1703_v21 = vrot.slane %v1517_v56, 4  ;;  %v7048_v41 = vadd.f32 %v1518_v35, %v6866_v5  ;;  %v1699_v23 = vrot.slane %v1698_v4, 2  ;;  %v1695_v24 = vrot.slane %v1694_v0, 1 }
 0x2d6   : > { %v1522_v61 = vpop.f32.mrf.mxu0  ;;  %v1677_v15 = vrot.slane %v1676_v42, 1  ;;  %v1753_v54 = vmul.f32 0.125, %v1660_v3 }
 0x2d7   : > { %8245 = vst [vmem:[#allocation38_spill] sm:$0xff] %v7048_v41  ;;  %v1704_v53 = vadd.f32 %v1703_v21, %v1517_v56  ;;  %v1523_v31 = vadd.f32 %v1522_v61, %v6878_v39  ;;  %v1681_v21 = vrot.slane %v1680_v45, 2  ;;  %v1700_v32 = vadd.f32 %v1699_v23, %v1698_v4 }
 0x2d8   : > { %v1524_v13 = vpop.f32.mrf.mxu0  ;;  %v1654_v61 = vadd.f32 %v1653_v9, %v1652_v37  ;;  %v1688_v41 = vadd.f32 %v1687_v12, %v1686_v19 }
 0x2d9   : > { %v1705_v60 = vrot.slane %v1704_v53, 2  ;;  %v1709_v6 = vrot.slane %v1523_v31, 4  ;;  %v7052_v35 = vadd.f32 %v1524_v13, %v6866_v5  ;;  %v1670_v13 = vadd.f32 %v1669_v28, %v1668_v47 }
 0x2da   : > { %v1526_v55 = vpop.f32.mrf.mxu0  ;;  %v1682_v23 = vadd.f32 %v1681_v21, %v1680_v45  ;;  %v1701_v20 = vrot.slane %v1700_v32, 1  ;;  %v1689_v37 = vrot.slane %v1688_v41, 1  ;;  %v1665_v47 = vrot.slane %v1664_v22, 1 }
 0x2db   : > { %8246 = vst [vmem:[#allocation39_spill] sm:$0xff] %v7052_v35  ;;  %v1710_v26 = vadd.f32 %v1709_v6, %v1523_v31  ;;  %v1527_v56 = vadd.f32 %v1526_v55, %v6878_v39  ;;  %v1706_v7 = vadd.f32 %v1705_v60, %v1704_v53  ;;  %v1752_v6 = vmul.f32 0.125, %v1654_v61 }
 0x2dc   : > { %v1528_v16 = vpop.f32.mrf.mxu0  ;;  %v1671_v9 = vrot.slane %v1670_v13, 1  ;;  %v1696_v28 = vadd.f32 %v1695_v24, %v1694_v0  ;;  %v1702_v55 = vadd.f32 %v1701_v20, %v1700_v32 }
 0x2dd   : > { %v1711_v35 = vrot.slane %v1710_v26, 2  ;;  %v1715_v17 = vrot.slane %v1527_v56, 4  ;;  %v7060_v51 = vadd.f32 %v1528_v16, %v6866_v5  ;;  %v1707_v19 = vrot.slane %v1706_v7, 1 }
 0x2de   : > { %v1532_v4 = vpop.f32.mrf.mxu0  ;;  %v1759_v52 = vmul.f32 0.125, %v1696_v28 }
 0x2df   : > { %8247 = vst [vmem:[#allocation40_spill] sm:$0xff] %v7060_v51  ;;  %v1712_v31 = vadd.f32 %v1711_v35, %v1710_v26  ;;  %v1716_v49 = vadd.f32 %v1715_v17, %v1527_v56  ;;  %v1533_v53 = vadd.f32 %v1532_v4, %v6878_v39  ;;  %v1683_v35 = vrot.slane %v1682_v23, 1 }
 0x2e0   : > { %v1534_v40 = vpop.f32.mrf.mxu0  ;;  %v1690_v26 = vadd.f32 %v1689_v37, %v1688_v41  ;;  %v1708_v56 = vadd.f32 %v1707_v19, %v1706_v7  ;;  %v1666_v4 = vadd.f32 %v1665_v47, %v1664_v22  ;;  %v1672_v51 = vadd.f32 %v1671_v9, %v1670_v13 }
 0x2e1   : > { %v1713_v43 = vrot.slane %v1712_v31, 1  ;;  %v1717_v12 = vrot.slane %v1716_v49, 2  ;;  %v1721_v60 = vrot.slane %v1533_v53, 4  ;;  %v7064_v16 = vadd.f32 %v1534_v40, %v6866_v5 }
 0x2e2   : > { %v1536_v45 = vpop.f32.mrf.mxu0  ;;  %v1678_v40 = vadd.f32 %v1677_v15, %v1676_v42  ;;  %v1760_v5 = vmul.f32 0.125, %v1702_v55  ;;  %v1758_v29 = vmul.f32 0.125, %v1690_v26  ;;  %v1761_v32 = vmul.f32 0.125, %v1708_v56 }
 0x2e3   : > { %8248 = vst [vmem:[#allocation41_spill] sm:$0xff] %v7064_v16  ;;  %v1718_v21 = vadd.f32 %v1717_v12, %v1716_v49  ;;  %v1722_v61 = vadd.f32 %v1721_v60, %v1533_v53  ;;  %v1537_v17 = vadd.f32 %v1536_v45, %v6878_v39  ;;  %v1714_v44 = vadd.f32 %v1713_v43, %v1712_v31 }
 0x2e4   : > { %v1684_v16 = vadd.f32 %v1683_v35, %v1682_v23  ;;  %v1784_v7 = vpack.c.bf16 %v1752_v6, %v1752_v6  ;;  %v1754_v49 = vmul.f32 0.125, %v1666_v4  ;;  %v1755_v37 = vmul.f32 0.125, %v1672_v51 }
 0x2e5   : > { %v1719_v18 = vrot.slane %v1718_v21, 1  ;;  %v1723_v0 = vrot.slane %v1722_v61, 2  ;;  %v1727_v24 = vrot.slane %v1537_v17, 4  ;;  %v1762_v39 = vmul.f32 0.125, %v1714_v44 }
 0x2e6   : > { %v1791_v22 = vpack.c.bf16 %v1759_v52, %v1759_v52  ;;  %v1785_v53 = vpack.c.bf16 %v1753_v54, %v1753_v54  ;;  %v1756_v47 = vmul.f32 0.125, %v1678_v40  ;;  %v1757_v9 = vmul.f32 0.125, %v1684_v16 }
 0x2e7   : > { %v1720_v57 = vadd.f32 %v1719_v18, %v1718_v21  ;;  %v1724_v20 = vadd.f32 %v1723_v0, %v1722_v61  ;;  %v1728_v41 = vadd.f32 %v1727_v24, %v1537_v17  ;;  %v1792_v43 = vpack.c.bf16 %v1760_v5, %v1760_v5 }
 0x2e8   : > { %v1790_v42 = vpack.c.bf16 %v1758_v29, %v1758_v29  ;;  %v1793_v23 = vpack.c.bf16 %v1761_v32, %v1761_v32  ;;  %v1871_v3 = vunpack.c.l.b16 %v1784_v7  ;;  %v1786_v28 = vpack.c.bf16 %v1754_v49, %v1754_v49 }
 0x2e9   : > { %v1763_v13 = vmul.f32 0.125, %v1720_v57  ;;  %v1725_v31 = vrot.slane %v1724_v20, 1  ;;  %v1729_v19 = vrot.slane %v1728_v41, 2  ;;  %v1787_v60 = vpack.c.bf16 %v1755_v37, %v1755_v37 }
 0x2ea   : > { %v1794_v45 = vpack.c.bf16 %v1762_v39, %v1762_v39  ;;  %v1878_v6 = vunpack.c.l.b16 %v1791_v22  ;;  %v1872_v35 = vunpack.c.l.b16 %v1785_v53  ;;  %v1788_v57 = vpack.c.bf16 %v1756_v47, %v1756_v47 }
 0x2eb   : > { %v1726_v12 = vadd.f32 %v1725_v31, %v1724_v20  ;;  %v1730_v18 = vadd.f32 %v1729_v19, %v1728_v41  ;;  %v1795_v15 = vpack.c.bf16 %v1763_v13, %v1763_v13  ;;  %v1789_v55 = vpack.c.bf16 %v1757_v9, %v1757_v9 }
 0x2ec   : > { %v1879_v21 = vunpack.c.l.b16 %v1792_v43  ;;  %v1877_v26 = vunpack.c.l.b16 %v1790_v42  ;;  %v1880_v56 = vunpack.c.l.b16 %v1793_v23  ;;  %v1906_v29 = vsel %vm1885_vm1, %v7057_v8, %v7054_v14  ;;  %v2424_v43 = vld [vmem:[%s8149_s14 + $0x38] sm:$0xff]  ;;  %v2423_v42 = vld [vmem:[%s8149_s14 + $0x30] sm:$0xff]  ;;  %v2422_v23 = vld [vmem:[%s8149_s14 + $0x28] sm:$0xff] }
 0x2ed   : > { %v1764_v51 = vmul.f32 0.125, %v1726_v12  ;;  %v1731_v44 = vrot.slane %v1730_v18, 1  ;;  %v1873_v61 = vunpack.c.l.b16 %v1786_v28  ;;  %v1881_v17 = vunpack.c.l.b16 %v1794_v45  ;;  %5551 = vmatprep.subr.mxu1 %v2424_v43  ;;  %v2421_v12 = vld [vmem:[%s8149_s14 + $0x20] sm:$0xff]  ;;  %v2418_v28 = vld [vmem:[%s8149_s14 + $0x8] sm:$0xff]  ;;  %v7107_v45 = vpop.f32.mrf.mxu0 }
 0x2ee   : > { %v1874_v4 = vunpack.c.l.b16 %v1787_v60  ;;  %v1913_v54 = vsel %vm1885_vm1, %v1878_v6, %v1877_v26  ;;  %v1882_v52 = vunpack.c.l.b16 %v1795_v15  ;;  %v1907_v24 = vsel %vm1887_vm2, %v1871_v3, %v1906_v29  ;;  %5552 = vmatpush3.msra.mxu1 %v2424_v43  ;;  %v2419_v3 = vld [vmem:[%s8149_s14 + $0x10] sm:$0xff]  ;;  %v2417_v60 = vld [vmem:[%s8149_s14] sm:$0xff] }
 0x2ef   : > { %v1796_v16 = vpack.c.bf16 %v1764_v51, %v1764_v51  ;;  %v1732_v5 = vadd.f32 %v1731_v44, %v1730_v18  ;;  %v1875_v40 = vunpack.c.l.b16 %v1788_v57  ;;  %v1914_v32 = vsel %vm1887_vm2, %v1879_v21, %v1913_v54  ;;  %5553 = vmatprep.subr.mxu1 %v2423_v42  ;;  %v2420_v18 = vld [vmem:[%s8149_s14 + $0x18] sm:$0xff]  ;;  %v7112_v44 = vld [vmem:[%s8142_s7] ss:$0 sm:$0xff] }
 0x2f0   : > { %v1908_v41 = vsel %vm1889_vm3, %v1872_v35, %v1907_v24  ;;  %v1876_v7 = vunpack.c.l.b16 %v1789_v55  ;;  %v1915_v49 = vsel %vm1889_vm3, %v1880_v56, %v1914_v32  ;;  %5554 = vmatpush3.msra.mxu1 %v2423_v42  ;;  %v6095_v6 = vmov 1966171168  }
 0x2f1   : > { %v1765_v0 = vmul.f32 0.125, %v1732_v5  ;;  %v1883_v20 = vunpack.c.l.b16 %v1796_v16  ;;  %v1909_v14 = vsel %vm1891_vm4, %v1873_v61, %v1908_v41  ;;  %v1916_v8 = vsel %vm1891_vm4, %v1881_v17, %v1915_v49  ;;  %5555 = vmatprep.subr.mxu1 %v2422_v23 }
 0x2f2   : > { %v1910_v39 = vsel %vm1893_vm5, %v1874_v4, %v1909_v14  ;;  %v1917_v22 = vsel %vm1893_vm5, %v1882_v52, %v1916_v8  ;;  %5556 = vmatpush3.msra.mxu1 %v2422_v23  ;;  %v2031_v15 = vunpack.c.l.s4 %v6095_v6 }
 0x2f3   : > { %v1797_v37 = vpack.c.bf16 %v1765_v0, %v1765_v0  ;;  %v1911_v31 = vsel %vm1895_vm6, %v1875_v40, %v1910_v39  ;;  %v1918_v19 = vsel %vm1895_vm6, %v1883_v20, %v1917_v22  ;;  %5557 = vmatprep.subr.mxu1 %v2421_v12 }
 0x2f4   : > { %v1912_v53 = vsel %vm1897_vm7, %v1876_v7, %v1911_v31  ;;  %5558 = vmatpush3.msra.mxu1 %v2421_v12  ;;  %v2032_v35 = vunpack.c.0.s8 %v2031_v15 }
 0x2f5   : > { %v1884_v13 = vunpack.c.l.b16 %v1797_v37  ;;  %5559 = vmatprep.subr.mxu1 %v2420_v18 }
 0x2f6   : > { %5560 = vmatpush3.msra.mxu1 %v2420_v18  ;;  %v7118_v56 = vsub.s32 %v2032_v35, %v6854_v2 }
 0x2f7   : > { %v1919_v47 = vsel %vm1897_vm7, %v1884_v13, %v1918_v19  ;;  %5561 = vmatprep.subr.mxu1 %v2419_v3 }
 0x2f8   : > { %v1921_v9 = vpack.c.b16 %v1919_v47, %v1912_v53  ;;  %5562 = vmatpush3.msra.mxu1 %v2419_v3 }
 0x2f9   : > { %5563 = vmatprep.subr.mxu1 %v2418_v28 }
 0x2fa   : > { %5532 = vmatmul.mubr.bf16.vlgmr.msra.gmra.mxu0 %v1921_v9  ;;  %5564 = vmatpush3.msra.mxu1 %v2418_v28 }
 0x2fb   : > { %5565 = vmatprep.subr.mxu1 %v2417_v60 }
 0x2fc   : > { %5566 = vmatpush3.msra.mxu1 %v2417_v60 }
 0x3ba   : > { %v5533_v51 = vpop.f32.mrf.mxu0 }
 0x3bb   : > { %v2015_v23 = vadd.f32 %v5533_v51, %v7112_v44 }
 0x3bc   : > { %v2006_v57 = vpop.f32.mrf.mxu0 }
 0x3bd   : > { %v2007_v55 = vadd.f32 %v7112_v44, %v2006_v57 }
 0x3be   : > { %v7115_v21 = vpop.f32.mrf.mxu0 }
 0x3bf   : > { %v2021_v26 = vmul.f32 0.25, %v2007_v55 }
 0x3c0   : > { %v2009_v5 = vpop.f32.mrf.mxu0 }
 0x3c1   : > { %v2029_v16 = vcombine.high %v2021_v26, %v2021_v26  ;;  %v2036_v29 = vrot.slane %v2021_v26, %v7118_v56  ;;  %v2010_v17 = vadd.f32 %v7112_v44, %v2009_v5 }
 0x3c3   : > { %v2044_v61 = vcombine.high %v2036_v29, %v2036_v29  ;;  %v2043_v4 = vrot.slane %v2029_v16, %v7118_v56  ;;  %v2052_v54 = vrot.slane %v2036_v29, %v7118_v56  ;;  %v2022_v0 = vmul.f32 0.25, %v2010_v17 }
 0x3c5   : > { %v2066_v52 = vrot.slane %v2044_v61, %v7118_v56  ;;  %v2074_v24 = vcombine.high %v2052_v54, %v2052_v54  ;;  %v2228_v40 = vrot.slane %v2052_v54, %v6872_v11  ;;  %v2045_v32 = vcombine.high %v2043_v4, %v2043_v4 }
 0x3c6   : > { %v2059_v20 = vrot.slane %v2043_v4, %v7118_v56  ;;  %v2085_v14 = vrot.slane %v2022_v0, %v7118_v56 }
 0x3c7   : > { %v2385_v41 = vmul.f32 %v2228_v40, %v6869_v62  ;;  %v2232_v7 = vrot.slane %v2066_v52, %v6872_v11  ;;  %v2236_v49 = vrot.slane %v2074_v24, %v6872_v11  ;;  %v2076_v37 = vcombine.high %v2066_v52, %v2066_v52 }
 0x3c8   : > { %v2244_v13 = vrot.slane %v2059_v20, %v6872_v11  ;;  %v2073_v31 = vrot.slane %v2045_v32, %v7118_v56  ;;  %v2075_v19 = vcombine.high %v2059_v20, %v2059_v20  ;;  %v2078_v62 = vcombine.high %v2022_v0, %v2022_v0 }
 0x3c9   : > { %5567 = vmatprep.mubr.f32.mxu1 %v2385_v41  ;;  %v2386_v8 = vmul.f32 %v2232_v7, %v6875_v33  ;;  %v2387_v39 = vmul.f32 %v2236_v49, %v6881_v59  ;;  %v2240_v22 = vrot.slane %v2076_v37, %v6872_v11  ;;  %v2093_v53 = vcombine.high %v2085_v14, %v2085_v14 }
 0x3ca   : > { %v2248_v9 = vrot.slane %v2073_v31, %v6872_v11  ;;  %v2077_v43 = vcombine.high %v2073_v31, %v2073_v31  ;;  %v2101_v33 = vrot.slane %v2085_v14, %v7118_v56  ;;  %v2389_v59 = vmul.f32 %v2244_v13, %v6890_v10  ;;  %v8250_v31 = vld [vmem:[#allocation28_spill] sm:$0xff] }
 0x3cb   : > { %5568 = vmatmul.mubr.f32.vlgmr.msra.gmra.mxu1 %v2386_v8  ;;  %v2388_v47 = vmul.f32 %v2240_v22, %v6886_v36  ;;  %v2252_v42 = vrot.slane %v2075_v19, %v6872_v11  ;;  %v2092_v12 = vrot.slane %v2078_v62, %v7118_v56  ;;  %v2115_v18 = vrot.slane %v2093_v53, %v7118_v56  ;;  %v8249_v22 = vld [vmem:[#allocation27_spill] sm:$0xff] }
 0x3cc   : > { %5570 = vmatprep.mubr.f32.mxu1 %v2387_v39  ;;  %v2390_v3 = vmul.f32 %v2248_v9, %v6893_v48  ;;  %v2256_v36 = vrot.slane %v2077_v43, %v6872_v11  ;;  %v2123_v28 = vcombine.high %v2101_v33, %v2101_v33  ;;  %v2260_v6 = vrot.slane %v2101_v33, %v6872_v11  ;;  %v8252_v33 = vld [vmem:[#allocation25_spill] sm:$0xff] }
 0x3cd   : > { %v2391_v60 = vmul.f32 %v2252_v42, %v6896_v25  ;;  %v2023_v10 = vmul.f32 0.25, %v2015_v23  ;;  %v2094_v15 = vcombine.high %v2092_v12, %v2092_v12  ;;  %v2264_v35 = vrot.slane %v2115_v18, %v6872_v11 }
 0x3ce   : > { %v2392_v51 = vmul.f32 %v2256_v36, %v6900_v46  ;;  %v2125_v57 = vcombine.high %v2115_v18, %v2115_v18  ;;  %v2108_v55 = vrot.slane %v2092_v12, %v7118_v56  ;;  %v2393_v48 = vmul.f32 %v2260_v6, %v6903_v63 }
 0x3cf   : > { %5571 = vmatmul.mubr.f32.gmra.mxu1 %v2388_v47  ;;  %v2268_v26 = vrot.slane %v2123_v28, %v6872_v11  ;;  %v2134_v25 = vrot.slane %v2023_v10, %v7118_v56  ;;  %v2394_v16 = vmul.f32 %v2264_v35, %v6912_v34  ;;  %v2122_v29 = vrot.slane %v2094_v15, %v7118_v56  ;;  %v8255_v35 = vld [vmem:[#allocation32_spill] sm:$0xff] }
 0x3d0   : > { %5573 = vmatprep.mubr.f32.mxu1 %v2389_v59  ;;  %v2272_v5 = vrot.slane %v2125_v57, %v6872_v11  ;;  %v2276_v61 = vrot.slane %v2108_v55, %v6872_v11  ;;  %v2124_v17 = vcombine.high %v2108_v55, %v2108_v55  ;;  %v2127_v4 = vcombine.high %v2023_v10, %v2023_v10  ;;  %v8253_v59 = vld [vmem:[#allocation30_spill] sm:$0xff] }
 0x3d1   : > { %v2395_v46 = vmul.f32 %v2268_v26, %v6919_v27  ;;  %v2142_v63 = vcombine.high %v2134_v25, %v2134_v25  ;;  %v2280_v52 = vrot.slane %v2122_v29, %v6872_v11  ;;  %v2126_v0 = vcombine.high %v2122_v29, %v2122_v29  ;;  %v8256_v26 = vld [vmem:[#allocation33_spill] sm:$0xff]  ;;  %v8257_v29 = vld [vmem:[#allocation34_spill] sm:$0xff] }
 0x3d2   : > { %v2396_v54 = vmul.f32 %v2272_v5, %v6923_v1  ;;  %v2150_v34 = vrot.slane %v2134_v25, %v7118_v56  ;;  %v2397_v24 = vmul.f32 %v2276_v61, %v6927_v58  ;;  %v2284_v40 = vrot.slane %v2124_v17, %v6872_v11 }
 0x3d3   : > { %5574 = vmatmul.mubr.f32.gmra.mxu1 %v2390_v3  ;;  %v2018_v27 = vadd.f32 %v7115_v21, %v7112_v44  ;;  %v2141_v32 = vrot.slane %v2127_v4, %v7118_v56  ;;  %v2164_v20 = vrot.slane %v2142_v63, %v7118_v56  ;;  %v2398_v1 = vmul.f32 %v2280_v52, %v6936_v50  ;;  %v8258_v63 = vld [vmem:[#allocation35_spill] sm:$0xff] }
 0x3d4   : > { %5576 = vmatprep.mubr.f32.mxu1 %v2391_v60  ;;  %v2288_v41 = vrot.slane %v2126_v0, %v6872_v11  ;;  %v2172_v7 = vcombine.high %v2150_v34, %v2150_v34  ;;  %v2399_v49 = vmul.f32 %v2284_v40, %v6943_v30  ;;  %v2292_v58 = vrot.slane %v2150_v34, %v6872_v11  ;;  %v8254_v60 = vld [vmem:[#allocation31_spill] sm:$0xff]  ;;  %v8259_v0 = vld [vmem:[#allocation36_spill] sm:$0xff] }
 0x3d5   : > { %v2024_v37 = vmul.f32 0.25, %v2018_v27  ;;  %v2143_v14 = vcombine.high %v2141_v32, %v2141_v32  ;;  %v2296_v21 = vrot.slane %v2164_v20, %v6872_v11  ;;  %v2174_v8 = vcombine.high %v2164_v20, %v2164_v20  ;;  %v8260_v27 = vld [vmem:[#allocation37_spill] sm:$0xff] }
 0x3d6   : > { %v2400_v44 = vmul.f32 %v2288_v41, %v6947_v38  ;;  %v2157_v39 = vrot.slane %v2141_v32, %v7118_v56  ;;  %v2401_v50 = vmul.f32 %v2292_v58, %v8249_v22  ;;  %v2300_v13 = vrot.slane %v2172_v7, %v6872_v11  ;;  %v8251_v38 = vld [vmem:[#allocation29_spill] sm:$0xff]  ;;  %v8261_v41 = vld [vmem:[#allocation38_spill] sm:$0xff] }
 0x3d7   : > { %5577 = vmatmul.mubr.f32.gmra.mxu1 %v2392_v51  ;;  %v2183_v30 = vrot.slane %v2024_v37, %v7118_v56  ;;  %v2402_v19 = vmul.f32 %v2296_v21, %v8250_v31  ;;  %v2304_v62 = vrot.slane %v2174_v8, %v6872_v11  ;;  %v2171_v53 = vrot.slane %v2143_v14, %v7118_v56  ;;  %v8263_v21 = vld [vmem:[#allocation40_spill] sm:$0xff] }
 0x3d8   : > { %5579 = vmatprep.mubr.f32.mxu1 %v2393_v48  ;;  %v2403_v47 = vmul.f32 %v2300_v13, %v8251_v38  ;;  %v2308_v9 = vrot.slane %v2157_v39, %v6872_v11  ;;  %v2173_v43 = vcombine.high %v2157_v39, %v2157_v39  ;;  %v1479_v42 = vadd.f32 %v8253_v59, %v8252_v33  ;;  %v8264_v39 = vld [vmem:[#allocation41_spill] sm:$0xff] }
 0x3d9   : > { %v2176_v23 = vcombine.high %v2024_v37, %v2024_v37  ;;  %v2191_v12 = vcombine.high %v2183_v30, %v2183_v30  ;;  %v2312_v3 = vrot.slane %v2171_v53, %v6872_v11  ;;  %v2175_v36 = vcombine.high %v2171_v53, %v2171_v53  ;;  %v8262_v37 = vld [vmem:[#allocation39_spill] sm:$0xff] }
 0x3da   : > { %v2404_v18 = vmul.f32 %v2304_v62, %v1479_v42  ;;  %v2199_v28 = vrot.slane %v2183_v30, %v7118_v56  ;;  %v2405_v6 = vmul.f32 %v2308_v9, %v8254_v60  ;;  %v2316_v10 = vrot.slane %v2173_v43, %v6872_v11  ;;  %v3267_v30 = vld [vmem:[%s8152_s17] sm:$0xff] }
 0x3db   : > { %5580 = vmatmul.mubr.f32.gmra.mxu1 %v2394_v16  ;;  %v2190_v15 = vrot.slane %v2176_v23, %v7118_v56  ;;  %v2213_v51 = vrot.slane %v2191_v12, %v7118_v56  ;;  %v2406_v57 = vmul.f32 %v2312_v3, %v8255_v35  ;;  %v2320_v55 = vrot.slane %v2175_v36, %v6872_v11 }
 0x3dc   : > { %5582 = vmatprep.mubr.f32.mxu1 %v2395_v46  ;;  %v2221_v48 = vcombine.high %v2199_v28, %v2199_v28  ;;  %v2407_v25 = vmul.f32 %v2316_v10, %v8256_v26  ;;  %v2324_v16 = vrot.slane %v2199_v28, %v6872_v11  ;;  %5733 = vmatprep.subr.mxu1 %v3267_v30 }
 0x3dd   : > { %v2192_v5 = vcombine.high %v2190_v15, %v2190_v15  ;;  %v2408_v46 = vmul.f32 %v2320_v55, %v8257_v29  ;;  %v2328_v61 = vrot.slane %v2213_v51, %v6872_v11  ;;  %v2223_v17 = vcombine.high %v2213_v51, %v2213_v51  ;;  %5615 = vmatprep.subr.mxu0 %v3267_v30 }
 0x3de   : > { %v2206_v4 = vrot.slane %v2190_v15, %v7118_v56  ;;  %v2332_v52 = vrot.slane %v2221_v48, %v6872_v11  ;;  %5734 = vmatpush3.msra.mxu1 %v3267_v30  ;;  %5616 = vmatpush3.msra.mxu0 %v3267_v30 }
 0x3df   : > { %5583 = vmatmul.mubr.f32.gmra.mxu1 %v2396_v54  ;;  %v2409_v54 = vmul.f32 %v2324_v16, %v8258_v63  ;;  %v2410_v34 = vmul.f32 %v2328_v61, %v8259_v0  ;;  %v2220_v40 = vrot.slane %v2192_v5, %v7118_v56 }
 0x3e0   : > { %5585 = vmatprep.mubr.f32.mxu1 %v2397_v24  ;;  %v2336_v24 = vrot.slane %v2223_v17, %v6872_v11  ;;  %v2411_v32 = vmul.f32 %v2332_v52, %v8260_v27  ;;  %v2340_v20 = vrot.slane %v2206_v4, %v6872_v11 }
 0x3e1   : > { %v2224_v58 = vcombine.high %v2220_v40, %v2220_v40 }
 0x3e2   : > { %v2412_v7 = vmul.f32 %v2336_v24, %v8261_v41  ;;  %v2413_v14 = vmul.f32 %v2340_v20, %v8262_v37 }
 0x3e3   : > { %5586 = vmatmul.mubr.f32.gmra.mxu1 %v2398_v1  ;;  %v2222_v1 = vcombine.high %v2206_v4, %v2206_v4  ;;  %v2352_v8 = vrot.slane %v2224_v58, %v6872_v11 }
 0x3e4   : > { %5588 = vmatprep.mubr.f32.mxu1 %v2399_v49  ;;  %v2344_v49 = vrot.slane %v2220_v40, %v6872_v11 }
 0x3e6   : > { %v2414_v56 = vmul.f32 %v2344_v49, %v8263_v21 }
 0x3e7   : > { %5589 = vmatmul.mubr.f32.gmra.mxu1 %v2400_v44  ;;  %v2348_v44 = vrot.slane %v2222_v1, %v6872_v11 }
 0x3e8   : > { %5591 = vmatprep.mubr.f32.mxu1 %v2401_v50  ;;  %v1539_v50 = vadd.f32 %v7107_v45, %v8252_v33 }
 0x3e9   : > { %v2415_v22 = vmul.f32 %v2348_v44, %v8264_v39 }
 0x3ea   : > { %v2416_v13 = vmul.f32 %v2352_v8, %v1539_v50 }
 0x3eb   : > { %5592 = vmatmul.mubr.f32.gmra.mxu1 %v2402_v19 }
 0x3ec   : > { %5594 = vmatprep.mubr.f32.mxu1 %v2403_v47 }
 0x3ef   : > { %5595 = vmatmul.mubr.f32.gmra.mxu1 %v2404_v18 }
 0x3f0   : > { %5597 = vmatprep.mubr.f32.mxu1 %v2405_v6 }
 0x3f3   : > { %5598 = vmatmul.mubr.f32.gmra.mxu1 %v2406_v57 }
 0x3f4   : > { %5600 = vmatprep.mubr.f32.mxu1 %v2407_v25 }
 0x3f7   : > { %5601 = vmatmul.mubr.f32.gmra.mxu1 %v2408_v46 }
 0x3f8   : > { %5603 = vmatprep.mubr.f32.mxu1 %v2409_v54 }
 0x3fb   : > { %5604 = vmatmul.mubr.f32.gmra.mxu1 %v2410_v34 }
 0x3fc   : > { %5606 = vmatprep.mubr.f32.mxu1 %v2411_v32 }
 0x3ff   : > { %5607 = vmatmul.mubr.f32.gmra.mxu1 %v2412_v7 }
 0x400   : > { %5609 = vmatprep.mubr.f32.mxu1 %v2413_v14 }
 0x403   : > { %5610 = vmatmul.mubr.f32.gmra.mxu1 %v2414_v56 }
 0x404   : > { %5612 = vmatprep.mubr.f32.mxu1 %v2415_v22 }
 0x407   : > { %5613 = vmatmul.mubr.f32.gmra.mxu1 %v2416_v13 }
 0x48b   : > { %v5569_v31 = vpop.f32.mrf.mxu1 }
 0x48c   : > { %v2666_v19 = vsel %vm2658_vm8, %v5569_v31, -inf }
 0x48d   : > { %v2667_v62 = vrot.slane %v2666_v19, 4  ;;  %v2499_v53 = vpop.f32.mrf.mxu1 }
 0x48e   : > { %v2659_v45 = vsel %vm2658_vm8, %v2499_v53, -inf }
 0x48f   : > { %v2668_v38 = vmax.f32 %v2666_v19, %v2667_v62  ;;  %v2660_v47 = vrot.slane %v2659_v45, 4  ;;  %v7219_v9 = vpop.f32.mrf.mxu1 }
 0x490   : > { %v2680_v43 = vsel %vm2658_vm8, %v7219_v9, -inf }
 0x491   : > { %v2669_v33 = vrot.slane %v2668_v38, 2  ;;  %v2661_v59 = vmax.f32 %v2659_v45, %v2660_v47  ;;  %v2681_v42 = vrot.slane %v2680_v43, 4  ;;  %v7223_v23 = vpop.f32.mrf.mxu1 }
 0x492   : > { %v2673_v12 = vsel %vm2658_vm8, %v7223_v23, -inf }
 0x493   : > { %v2670_v18 = vmax.f32 %v2668_v38, %v2669_v33  ;;  %v2662_v3 = vrot.slane %v2661_v59, 2  ;;  %v2682_v36 = vmax.f32 %v2680_v43, %v2681_v42  ;;  %v2674_v28 = vrot.slane %v2673_v12, 4  ;;  %v7227_v60 = vpop.f32.mrf.mxu1 }
 0x494   : > { %v2694_v6 = vsel %vm2658_vm8, %v7227_v60, -inf }
 0x495   : > { %v2671_v10 = vrot.slane %v2670_v18, 1  ;;  %v2663_v15 = vmax.f32 %v2661_v59, %v2662_v3  ;;  %v2683_v51 = vrot.slane %v2682_v36, 2  ;;  %v2675_v35 = vmax.f32 %v2673_v12, %v2674_v28  ;;  %v7231_v57 = vpop.f32.mrf.mxu1 }
 0x496   : > { %v2695_v55 = vrot.slane %v2694_v6, 4  ;;  %v2687_v48 = vsel %vm2658_vm8, %v7231_v57, -inf }
 0x497   : > { %v2672_v26 = vmax.f32 %v2670_v18, %v2671_v10  ;;  %v2664_v25 = vrot.slane %v2663_v15, 1  ;;  %v2684_v16 = vmax.f32 %v2682_v36, %v2683_v51  ;;  %v2676_v5 = vrot.slane %v2675_v35, 2  ;;  %v7235_v29 = vpop.f32.mrf.mxu1 }
 0x498   : > { %v2696_v46 = vmax.f32 %v2694_v6, %v2695_v55  ;;  %v2688_v61 = vrot.slane %v2687_v48, 4  ;;  %v2708_v17 = vsel %vm2658_vm8, %v7235_v29, -inf }
 0x499   : > { %v2884_v4 = vsub.f32 %v5569_v31, %v2672_v26  ;;  %v2665_v63 = vmax.f32 %v2663_v15, %v2664_v25  ;;  %v2685_v54 = vrot.slane %v2684_v16, 1  ;;  %v2677_v52 = vmax.f32 %v2675_v35, %v2676_v5  ;;  %v7239_v0 = vpop.f32.mrf.mxu1 }
 0x49a   : > { %v2697_v34 = vrot.slane %v2696_v46, 2  ;;  %v2689_v24 = vmax.f32 %v2687_v48, %v2688_v61  ;;  %v2709_v40 = vrot.slane %v2708_v17, 4  ;;  %v2701_v27 = vsel %vm2658_vm8, %v7239_v0, -inf  ;;  %v5790_v61 = vld [vmem:[%s8151_s16] sm:$0xff]  }
 0x49b   : > { %v2917_v32 = vmul.f32 1.442695, %v2884_v4  ;;  %v7243_v20 = vpop.f32.mrf.mxu1  ;;  %v2702_v49 = vrot.slane %v2701_v27, 4  ;;  %v2883_v58 = vsub.f32 %v2499_v53, %v2665_v63  ;;  %v2678_v37 = vrot.slane %v2677_v52, 1  ;;  %5699 = vmatprep.subr.bf16.mxu1 %v5790_v61 }
 0x49c   : > { %v2698_v1 = vmax.f32 %v2696_v46, %v2697_v34  ;;  %v2690_v41 = vrot.slane %v2689_v24, 2  ;;  %v2710_v7 = vmax.f32 %v2708_v17, %v2709_v40  ;;  %v2686_v44 = vmax.f32 %v2684_v16, %v2685_v54 }
 0x49d   : > { %v7245_v14 = vpop.f32.mrf.mxu1  ;;  %v2703_v8 = vmax.f32 %v2701_v27, %v2702_v49  ;;  %v2722_v39 = vsel %vm2658_vm8, %v7243_v20, -inf  ;;  %5895 = vpow2.f32 %v2917_v32  ;;  %v2915_v50 = vmul.f32 1.442695, %v2883_v58 }
 0x49e   : > { %v2699_v21 = vrot.slane %v2698_v1, 1  ;;  %v2711_v56 = vrot.slane %v2710_v7, 2  ;;  %v2691_v22 = vmax.f32 %v2689_v24, %v2690_v41  ;;  %v2679_v13 = vmax.f32 %v2677_v52, %v2678_v37 }
 0x49f   : > { %v2723_v30 = vrot.slane %v2722_v39, 4  ;;  %v2715_v31 = vsel %vm2658_vm8, %v7245_v14, -inf  ;;  %v7251_v19 = vpop.f32.mrf.mxu1  ;;  %v2886_v62 = vsub.f32 %v7219_v9, %v2686_v44  ;;  %v2704_v38 = vrot.slane %v2703_v8, 2 }
 0x4a0   : > { %v2700_v53 = vmax.f32 %v2698_v1, %v2699_v21  ;;  %v2712_v45 = vmax.f32 %v2710_v7, %v2711_v56  ;;  %v2716_v43 = vrot.slane %v2715_v31, 4  ;;  %v2692_v33 = vrot.slane %v2691_v22, 1 }
 0x4a1   : > { %v2724_v47 = vmax.f32 %v2722_v39, %v2723_v30  ;;  %v2736_v59 = vsel %vm2658_vm8, %v7251_v19, -inf  ;;  %5897 = vpow2.f32 %v2915_v50  ;;  %v2885_v42 = vsub.f32 %v7223_v23, %v2679_v13  ;;  %v7258_v10 = vpop.f32.mrf.mxu1 }
 0x4a2   : > { %v2921_v12 = vmul.f32 1.442695, %v2886_v62  ;;  %v2888_v18 = vsub.f32 %v7227_v60, %v2700_v53  ;;  %v2713_v3 = vrot.slane %v2712_v45, 1  ;;  %v2705_v36 = vmax.f32 %v2703_v8, %v2704_v38 }
 0x4a3   : > { %v2725_v28 = vrot.slane %v2724_v47, 2  ;;  %v2717_v6 = vmax.f32 %v2715_v31, %v2716_v43  ;;  %v2737_v9 = vrot.slane %v2736_v59, 4  ;;  %v2693_v15 = vmax.f32 %v2691_v22, %v2692_v33  ;;  %v7262_v60 = vpop.f32.mrf.mxu1 }
 0x4a4   : > { %v2919_v51 = vmul.f32 1.442695, %v2885_v42  ;;  %5899 = vpow2.f32 %v2921_v12  ;;  %v2925_v35 = vmul.f32 1.442695, %v2888_v18  ;;  %v2714_v55 = vmax.f32 %v2712_v45, %v2713_v3 }
 0x4a5   : > { %v2706_v48 = vrot.slane %v2705_v36, 1  ;;  %v2726_v26 = vmax.f32 %v2724_v47, %v2725_v28  ;;  %v2718_v25 = vrot.slane %v2717_v6, 2  ;;  %v2738_v16 = vmax.f32 %v2736_v59, %v2737_v9  ;;  %v7278_v44 = vpop.f32.mrf.mxu1 }
 0x4a6   : > { %v2729_v23 = vsel %vm2658_vm8, %v7258_v10, -inf  ;;  %v2887_v5 = vsub.f32 %v7231_v57, %v2693_v15  ;;  %5901 = vpow2.f32 %v2919_v51  ;;  %v2750_v63 = vsel %vm2658_vm8, %v7262_v60, -inf }
 0x4a7   : > { %5903 = vpow2.f32 %v2925_v35  ;;  %v2707_v17 = vmax.f32 %v2705_v36, %v2706_v48  ;;  %v2730_v4 = vrot.slane %v2729_v23, 4  ;;  %v2890_v54 = vsub.f32 %v7235_v29, %v2714_v55  ;;  %v7285_v30 = vpop.f32.mrf.mxu1 }
 0x4a8   : > { %v2727_v52 = vrot.slane %v2726_v26, 1  ;;  %v2719_v34 = vmax.f32 %v2717_v6, %v2718_v25  ;;  %v2739_v24 = vrot.slane %v2738_v16, 2  ;;  %v2923_v57 = vmul.f32 1.442695, %v2887_v5 }
 0x4a9   : > { %v2751_v27 = vrot.slane %v2750_v63, 4  ;;  %v2889_v1 = vsub.f32 %v7239_v0, %v2707_v17  ;;  %v2731_v41 = vmax.f32 %v2729_v23, %v2730_v4  ;;  %v2929_v7 = vmul.f32 1.442695, %v2890_v54  ;;  %v7296_v12 = vpop.f32.mrf.mxu1 }
 0x4aa   : > { %v7265_v46 = vpop.eup %5895  ;;  %v2728_v49 = vmax.f32 %v2726_v26, %v2727_v52  ;;  %v2720_v58 = vrot.slane %v2719_v34, 1  ;;  %v2740_v37 = vmax.f32 %v2738_v16, %v2739_v24  ;;  %5905 = vpow2.f32 %v2923_v57 }
 0x4ab   : > { %v2986_v40 = vsel %vm2658_vm8, %v7265_v46, 0.0  ;;  %v2752_v56 = vmax.f32 %v2750_v63, %v2751_v27  ;;  %v2927_v8 = vmul.f32 1.442695, %v2889_v1  ;;  %v2732_v39 = vrot.slane %v2731_v41, 2  ;;  %v7305_v26 = vpop.f32.mrf.mxu1 }
 0x4ac   : > { %v2987_v29 = vrot.slane %v2986_v40, 4  ;;  %5907 = vpow2.f32 %v2929_v7  ;;  %v2892_v0 = vsub.f32 %v7243_v20, %v2728_v49  ;;  %v2721_v50 = vmax.f32 %v2719_v34, %v2720_v58 }
 0x4ad   : > { %v2741_v13 = vrot.slane %v2740_v37, 1  ;;  %v2753_v53 = vrot.slane %v2752_v56, 2  ;;  %v2743_v45 = vsel %vm2658_vm8, %v7278_v44, -inf  ;;  %5909 = vpow2.f32 %v2927_v8 }
 0x4ae   : > { %v7275_v32 = vpop.eup %5897  ;;  %v2988_v31 = vadd.f32 %v2987_v29, %v2986_v40  ;;  %v2733_v43 = vmax.f32 %v2731_v41, %v2732_v39  ;;  %v2933_v20 = vmul.f32 1.442695, %v2892_v0  ;;  %v2891_v59 = vsub.f32 %v7245_v14, %v2721_v50 }
 0x4af   : > { %v2979_v21 = vsel %vm2658_vm8, %v7275_v32, 0.0  ;;  %v2742_v42 = vmax.f32 %v2740_v37, %v2741_v13  ;;  %v2744_v36 = vrot.slane %v2743_v45, 4  ;;  %v2754_v9 = vmax.f32 %v2752_v56, %v2753_v53 }
 0x4b0   : > { %v2980_v62 = vrot.slane %v2979_v21, 4  ;;  %v2989_v18 = vrot.slane %v2988_v31, 2  ;;  %v2734_v15 = vrot.slane %v2733_v43, 1  ;;  %v2764_v35 = vsel %vm2658_vm8, %v7285_v30, -inf }
 0x4b1   : > { %v7282_v22 = vpop.eup %5899  ;;  %v2745_v51 = vmax.f32 %v2743_v45, %v2744_v36  ;;  %5911 = vpow2.f32 %v2933_v20  ;;  %v2931_v14 = vmul.f32 1.442695, %v2891_v59  ;;  %v2894_v48 = vsub.f32 %v7251_v19, %v2742_v42  ;;  %v7311_v19 = vpop.f32.mrf.mxu1 }
 0x4b2   : > { %v3000_v47 = vsel %vm2658_vm8, %v7282_v22, 0.0  ;;  %v2981_v3 = vadd.f32 %v2980_v62, %v2979_v21  ;;  %v2990_v25 = vadd.f32 %v2989_v18, %v2988_v31  ;;  %v2755_v4 = vrot.slane %v2754_v9, 1 }
 0x4b3   : > { %v7289_v38 = vpop.eup %5901  ;;  %v3001_v28 = vrot.slane %v3000_v47, 4  ;;  %v2746_v5 = vrot.slane %v2745_v51, 2  ;;  %v2765_v63 = vrot.slane %v2764_v35, 4  ;;  %v2735_v52 = vmax.f32 %v2733_v43, %v2734_v15  ;;  %v7326_v53 = vpop.f32.mrf.mxu1 }
 0x4b4   : > { %v7293_v33 = vpop.eup %5903  ;;  %v2993_v6 = vsel %vm2658_vm8, %v7289_v38, 0.0  ;;  %v2982_v16 = vrot.slane %v2981_v3, 2  ;;  %v2757_v24 = vsel %vm2658_vm8, %v7296_v12, -inf  ;;  %5913 = vpow2.f32 %v2931_v14 }
 0x4b5   : > { %v3014_v55 = vsel %vm2658_vm8, %v7293_v33, 0.0  ;;  %v2994_v23 = vrot.slane %v2993_v6, 4  ;;  %v3002_v17 = vadd.f32 %v3001_v28, %v3000_v47  ;;  %v2747_v34 = vmax.f32 %v2745_v51, %v2746_v5 }
 0x4b6   : > { %v3015_v54 = vrot.slane %v3014_v55, 4  ;;  %v2937_v57 = vmul.f32 1.442695, %v2894_v48  ;;  %v2991_v27 = vrot.slane %v2990_v25, 1  ;;  %v7315_v1 = vadd.f32 %v2982_v16, %v2981_v3 }
 0x4b7   : > { %v7307_v61 = vpop.eup %5905  ;;  %v2995_v41 = vadd.f32 %v2994_v23, %v2993_v6  ;;  %v2756_v49 = vmax.f32 %v2754_v9, %v2755_v4  ;;  %v2748_v58 = vrot.slane %v2747_v34, 1  ;;  %v2766_v37 = vmax.f32 %v2764_v35, %v2765_v63  ;;  %v7333_v35 = vpop.f32.mrf.mxu1 }
 0x4b8   : > { %v3007_v7 = vsel %vm2658_vm8, %v7307_v61, 0.0  ;;  %v2758_v29 = vrot.slane %v2757_v24, 4  ;;  %v3003_v21 = vrot.slane %v3002_v17, 2  ;;  %v3016_v56 = vadd.f32 %v3015_v54, %v3014_v55 }
 0x4b9   : > { %v7313_v40 = vpop.eup %5907  ;;  %v2893_v8 = vsub.f32 %v7258_v10, %v2735_v52  ;;  %v2778_v39 = vsel %vm2658_vm8, %v7305_v26, -inf  ;;  %v2749_v13 = vmax.f32 %v2747_v34, %v2748_v58  ;;  %v2767_v31 = vrot.slane %v2766_v37, 2 }
 0x4ba   : > { %8265 = vst [vmem:[#allocation27_spill] sm:$0xff] %v7313_v40  ;;  %v7322_v0 = vpop.eup %5909  ;;  %v3028_v50 = vsel %vm2658_vm8, %v7313_v40, 0.0  ;;  %v2759_v62 = vmax.f32 %v2757_v24, %v2758_v29  ;;  %v2992_v45 = vadd.f32 %v2991_v27, %v2990_v25  ;;  %v2996_v47 = vrot.slane %v2995_v41, 2 }
 0x4bb   : > { %8266 = vst [vmem:[#allocation28_spill] sm:$0xff] %v7322_v0  ;;  %v3008_v43 = vrot.slane %v3007_v7, 4  ;;  %5915 = vpow2.f32 %v2937_v57  ;;  %v2896_v20 = vsub.f32 %v7262_v60, %v2756_v49  ;;  %v2768_v10 = vmax.f32 %v2766_v37, %v2767_v31  ;;  %v7341_v57 = vpop.f32.mrf.mxu1 }
 0x4bc   : > { %v2760_v59 = vrot.slane %v2759_v62, 2  ;;  %v2779_v42 = vrot.slane %v2778_v39, 4  ;;  %v3017_v18 = vrot.slane %v3016_v56, 2  ;;  %v3029_v3 = vrot.slane %v3028_v50, 4 }
 0x4bd   : > { %v3021_v36 = vsel %vm2658_vm8, %v7322_v0, 0.0  ;;  %v2935_v28 = vmul.f32 1.442695, %v2893_v8  ;;  %v2984_v6 = vrot.slane %v7315_v1, 1  ;;  %v2895_v9 = vsub.f32 %v7278_v44, %v2749_v13 }
 0x4be   : > { %v2769_v15 = vrot.slane %v2768_v10, 1  ;;  %v2761_v51 = vmax.f32 %v2759_v62, %v2760_v59  ;;  %v7335_v55 = vpop.eup %5911  ;;  %5917 = vrcp.f32 %v2992_v45  ;;  %v3004_v60 = vadd.f32 %v3003_v21, %v3002_v17  ;;  %v7349_v62 = vpop.f32.mrf.mxu1 }
 0x4bf   : > { %8267 = vst [vmem:[#allocation29_spill] sm:$0xff] %v7335_v55  ;;  %v2780_v14 = vmax.f32 %v2778_v39, %v2779_v42  ;;  %v2771_v48 = vsel %vm2658_vm8, %v7311_v19, -inf  ;;  %v2997_v25 = vadd.f32 %v2996_v47, %v2995_v41  ;;  %v3009_v16 = vadd.f32 %v3008_v43, %v3007_v7 }
 0x4c0   : > { %v3022_v23 = vrot.slane %v3021_v36, 4  ;;  %v2941_v5 = vmul.f32 1.442695, %v2896_v20  ;;  %v3018_v4 = vadd.f32 %v3017_v18, %v3016_v56  ;;  %v3030_v63 = vadd.f32 %v3029_v3, %v3028_v50 }
 0x4c1   : > { %5919 = vpow2.f32 %v2935_v28  ;;  %v2772_v44 = vrot.slane %v2771_v48, 4  ;;  %v3042_v54 = vsel %vm2658_vm8, %v7335_v55, 0.0  ;;  %v2939_v52 = vmul.f32 1.442695, %v2895_v9  ;;  %v7343_v17 = vpop.eup %5913 }
 0x4c2   : > { %v2770_v34 = vmax.f32 %v2768_v10, %v2769_v15  ;;  %v2762_v24 = vrot.slane %v2761_v51, 1  ;;  %8268 = vst [vmem:[#allocation25_spill] sm:$0xff] %v7343_v17  ;;  %v2781_v27 = vrot.slane %v2780_v14, 2  ;;  %v2792_v41 = vsel %vm2658_vm8, %v7326_v53, -inf }
 0x4c3   : > { %v2773_v49 = vmax.f32 %v2771_v48, %v2772_v44  ;;  %v2785_v7 = vsel %vm2658_vm8, %v7333_v35, -inf  ;;  %v3005_v58 = vrot.slane %v3004_v60, 1  ;;  %v3010_v37 = vrot.slane %v3009_v16, 2 }
 0x4c4   : > { %v3023_v29 = vadd.f32 %v3022_v23, %v3021_v36  ;;  %5921 = vpow2.f32 %v2941_v5  ;;  %v2998_v21 = vrot.slane %v2997_v25, 1  ;;  %v3019_v56 = vrot.slane %v3018_v4, 1 }
 0x4c5   : > { %v3031_v8 = vrot.slane %v3030_v63, 2  ;;  %v2793_v39 = vrot.slane %v2792_v41, 4  ;;  %v3043_v50 = vrot.slane %v3042_v54, 4  ;;  %5923 = vpow2.f32 %v2939_v52 }
 0x4c6   : > { %v2763_v13 = vmax.f32 %v2761_v51, %v2762_v24  ;;  %v2786_v31 = vrot.slane %v2785_v7, 4  ;;  %v7352_v45 = vadd.f32 %v2984_v6, %v7315_v1  ;;  %v2898_v47 = vsub.f32 %v7285_v30, %v2770_v34 }
 0x4c7   : > { %v2782_v43 = vmax.f32 %v2780_v14, %v2781_v27  ;;  %v2774_v20 = vrot.slane %v2773_v49, 2  ;;  %v7357_v59 = vadd.f32 %v3005_v58, %v3004_v60  ;;  %v3011_v42 = vadd.f32 %v3010_v37, %v3009_v16  ;;  %v7366_v14 = vpop.f32.mrf.mxu1 }
 0x4c8   : > { %v7355_v10 = vpop.eup %5915  ;;  %v3024_v18 = vrot.slane %v3023_v29, 2  ;;  %v2794_v3 = vmax.f32 %v2792_v41, %v2793_v39  ;;  %v3020_v36 = vadd.f32 %v3019_v56, %v3018_v4  ;;  %v3032_v28 = vadd.f32 %v3031_v8, %v3030_v63 }
 0x4c9   : > { %8269 = vst [vmem:[#allocation30_spill] sm:$0xff] %v7355_v10  ;;  %v2787_v9 = vmax.f32 %v2785_v7, %v2786_v31  ;;  %v2806_v15 = vsel %vm2658_vm8, %v7341_v57, -inf  ;;  %v7361_v51 = vadd.f32 %v2998_v21, %v2997_v25  ;;  %v3044_v1 = vadd.f32 %v3043_v50, %v3042_v54  ;;  %v7378_v7 = vpop.f32.mrf.mxu1 }
 0x4ca   : > { %v3035_v30 = vsel %vm2658_vm8, %v7343_v17, 0.0  ;;  %v2897_v6 = vsub.f32 %v7296_v12, %v2763_v13  ;;  %v2945_v60 = vmul.f32 1.442695, %v2898_v47  ;;  %v2783_v48 = vrot.slane %v2782_v43, 1 }
 0x4cb   : > { %v2775_v16 = vmax.f32 %v2773_v49, %v2774_v20  ;;  %v2799_v23 = vsel %vm2658_vm8, %v7349_v62, -inf  ;;  %v7370_v5 = vpop.eup %5917  ;;  %v3012_v4 = vrot.slane %v3011_v42, 1  ;;  %v3025_v63 = vadd.f32 %v3024_v18, %v3023_v29 }
 0x4cc   : > { %v2795_v25 = vrot.slane %v2794_v3, 2  ;;  %v2807_v44 = vrot.slane %v2806_v15, 4  ;;  %5925 = vrcp.f32 %v3020_v36  ;;  %v3033_v54 = vrot.slane %v3032_v28, 1 }
 0x4cd   : > { %v3036_v52 = vrot.slane %v3035_v30, 4  ;;  %v2788_v34 = vrot.slane %v2787_v9, 2  ;;  %v3056_v12 = vsel %vm2658_vm8, %v7355_v10, 0.0  ;;  %v2943_v27 = vmul.f32 1.442695, %v2897_v6 }
 0x4ce   : > { %v7372_v24 = vpop.eup %5919  ;;  %v2800_v49 = vrot.slane %v2799_v23, 4  ;;  %v2820_v41 = vsel %vm2658_vm8, %v7366_v14, -inf  ;;  %v3045_v58 = vrot.slane %v3044_v1, 2  ;;  %5927 = vpow2.f32 %v2945_v60 }
 0x4cf   : > { %8270 = vst [vmem:[#allocation31_spill] sm:$0xff] %v7372_v24  ;;  %v2784_v37 = vmax.f32 %v2782_v43, %v2783_v48  ;;  %v2776_v29 = vrot.slane %v2775_v16, 1  ;;  %v7380_v21 = vadd.f32 %v3012_v4, %v3011_v42  ;;  %v3026_v56 = vrot.slane %v3025_v63, 1  ;;  %v7388_v43 = vpop.f32.mrf.mxu1 }
 0x4d0   : > { %v2796_v8 = vmax.f32 %v2794_v3, %v2795_v25  ;;  %v2808_v39 = vmax.f32 %v2806_v15, %v2807_v44  ;;  %v3037_v13 = vadd.f32 %v3036_v52, %v3035_v30  ;;  %v2789_v31 = vmax.f32 %v2787_v9, %v2788_v34 }
 0x4d1   : > { %v7382_v50 = vpop.eup %5921  ;;  %v2821_v47 = vrot.slane %v2820_v41, 4  ;;  %v2813_v20 = vsel %vm2658_vm8, %v7378_v7, -inf  ;;  %v7386_v18 = vadd.f32 %v3033_v54, %v3032_v28  ;;  %v3057_v36 = vrot.slane %v3056_v12, 4 }
 0x4d2   : > { %8271 = vst [vmem:[#allocation32_spill] sm:$0xff] %v7382_v50  ;;  %5929 = vpow2.f32 %v2943_v27  ;;  %v2801_v6 = vmax.f32 %v2799_v23, %v2800_v49  ;;  %v7390_v42 = vpop.eup %5923  ;;  %v7392_v60 = vadd.f32 %v3045_v58, %v3044_v1  ;;  %v3049_v3 = vsel %vm2658_vm8, %v7372_v24, 0.0  ;;  %v7403_v49 = vpop.f32.mrf.mxu1 }
 0x4d3   : > { %8272 = vst [vmem:[#allocation33_spill] sm:$0xff] %v7390_v42  ;;  %v2900_v9 = vsub.f32 %v7305_v26, %v2784_v37  ;;  %v2777_v15 = vmax.f32 %v2775_v16, %v2776_v29  ;;  %v3070_v30 = vsel %vm2658_vm8, %v7382_v50, 0.0  ;;  %v2797_v28 = vrot.slane %v2796_v8, 1 }
 0x4d4   : > { %v2809_v48 = vrot.slane %v2808_v39, 2  ;;  %v2814_v4 = vrot.slane %v2813_v20, 4  ;;  %v7399_v25 = vadd.f32 %v3026_v56, %v3025_v63  ;;  %v3038_v23 = vrot.slane %v3037_v13, 2 }
 0x4d5   : > { %v2790_v44 = vrot.slane %v2789_v31, 1  ;;  %v2822_v54 = vmax.f32 %v2820_v41, %v2821_v47  ;;  %v3058_v52 = vadd.f32 %v3057_v36, %v3056_v12  ;;  %v3050_v1 = vrot.slane %v3049_v3, 4 }
 0x4d6   : > { %v3063_v34 = vsel %vm2658_vm8, %v7390_v42, 0.0  ;;  %v2802_v27 = vrot.slane %v2801_v6, 2  ;;  %v3071_v26 = vrot.slane %v3070_v30, 4  ;;  %v2949_v16 = vmul.f32 1.442695, %v2900_v9 }
 0x4d7   : > { %v2899_v58 = vsub.f32 %v7311_v19, %v2777_v15  ;;  %v2834_v37 = vsel %vm2658_vm8, %v7388_v43, -inf  ;;  %v2798_v29 = vmax.f32 %v2796_v8, %v2797_v28  ;;  %v2810_v56 = vmax.f32 %v2808_v39, %v2809_v48  ;;  %v7415_v15 = vpop.f32.mrf.mxu1 }
 0x4d8   : > { %v2815_v41 = vmax.f32 %v2813_v20, %v2814_v4  ;;  %v7409_v12 = vadd.f32 %v3038_v23, %v3037_v13  ;;  %v3064_v47 = vrot.slane %v3063_v34, 4  ;;  %v2791_v36 = vmax.f32 %v2789_v31, %v2790_v44 }
 0x4d9   : > { %v2823_v11 = vrot.slane %v2822_v54, 2  ;;  %v7411_v2 = vpop.eup %5925  ;;  %v3051_v50 = vadd.f32 %v3050_v1, %v3049_v3  ;;  %v2803_v10 = vmax.f32 %v2801_v6, %v2802_v27  ;;  %v2835_v9 = vrot.slane %v2834_v37, 4  ;;  %v7428_v24 = vpop.f32.mrf.mxu1 }
 0x4da   : > { %v2827_v19 = vsel %vm2658_vm8, %v7403_v49, -inf  ;;  %v3059_v42 = vrot.slane %v3058_v52, 2  ;;  %v3072_v63 = vadd.f32 %v3071_v26, %v3070_v30  ;;  %5931 = vpow2.f32 %v2949_v16 }
 0x4db   : > { %v2947_v8 = vmul.f32 1.442695, %v2899_v58  ;;  %v7417_v39 = vpop.eup %5927  ;;  %v2902_v13 = vsub.f32 %v7326_v53, %v2798_v29  ;;  %v2811_v31 = vrot.slane %v2810_v56, 1  ;;  %v2816_v20 = vrot.slane %v2815_v41, 2  ;;  %v7433_v17 = vpop.f32.mrf.mxu1 }
 0x4dc   : > { %8273 = vst [vmem:[#allocation34_spill] sm:$0xff] %v7417_v39  ;;  %v2828_v28 = vrot.slane %v2827_v19, 4  ;;  %v3065_v48 = vadd.f32 %v3064_v47, %v3063_v34  ;;  %v2901_v6 = vsub.f32 %v7333_v35, %v2791_v36  ;;  %v2824_v3 = vmax.f32 %v2822_v54, %v2823_v11 }
 0x4dd   : > { %v2848_v4 = vsel %vm2658_vm8, %v7415_v15, -inf  ;;  %v3052_v23 = vrot.slane %v3051_v50, 2  ;;  %v2804_v44 = vrot.slane %v2803_v10, 1  ;;  %v2836_v1 = vmax.f32 %v2834_v37, %v2835_v9 }
 0x4de   : > { %v2829_v30 = vmax.f32 %v2827_v19, %v2828_v28  ;;  %v3073_v26 = vrot.slane %v3072_v63, 2  ;;  %v3084_v53 = vsel %vm2658_vm8, %v7417_v39, 0.0  ;;  %5933 = vpow2.f32 %v2947_v8 }
 0x4df   : > { %v7423_v27 = vpop.eup %5929  ;;  %v2849_v16 = vrot.slane %v2848_v4, 4  ;;  %v3040_v34 = vrot.slane %v7409_v12, 1  ;;  %v2953_v58 = vmul.f32 1.442695, %v2902_v13  ;;  %v2812_v35 = vmax.f32 %v2810_v56, %v2811_v31 }
 0x4e0   : > { %8274 = vst [vmem:[#allocation35_spill] sm:$0xff] %v7423_v27  ;;  %v2817_v11 = vmax.f32 %v2815_v41, %v2816_v20  ;;  %v3066_v54 = vrot.slane %v3065_v48, 2  ;;  %v2951_v29 = vmul.f32 1.442695, %v2901_v6  ;;  %v2825_v47 = vrot.slane %v2824_v3, 1 }
 0x4e1   : > { %v2830_v36 = vrot.slane %v2829_v30, 2  ;;  %v3085_v37 = vrot.slane %v3084_v53, 4  ;;  %v3077_v9 = vsel %vm2658_vm8, %v7423_v27, 0.0  ;;  %v2805_v19 = vmax.f32 %v2803_v10, %v2804_v44 }
 0x4e2   : > { %v2837_v28 = vrot.slane %v2836_v1, 2  ;;  %v3060_v39 = vadd.f32 %v3059_v42, %v3058_v52  ;;  %v3053_v8 = vadd.f32 %v3052_v23, %v3051_v50  ;;  %v3074_v55 = vadd.f32 %v3073_v26, %v3072_v63 }
 0x4e3   : > { %v2850_v40 = vmax.f32 %v2848_v4, %v2849_v16  ;;  %5935 = vpow2.f32 %v2953_v58  ;;  %v2904_v56 = vsub.f32 %v7341_v57, %v2812_v35  ;;  %v2818_v41 = vrot.slane %v2817_v11, 1  ;;  %v7449_v16 = vpop.f32.mrf.mxu1 }
 0x4e4   : > { %v2831_v13 = vmax.f32 %v2829_v30, %v2830_v36  ;;  %v3067_v31 = vadd.f32 %v3066_v54, %v3065_v48  ;;  %v3078_v20 = vrot.slane %v3077_v9, 4  ;;  %5937 = vpow2.f32 %v2951_v29 }
 0x4e5   : > { %v2826_v6 = vmax.f32 %v2824_v3, %v2825_v47  ;;  %v3086_v0 = vadd.f32 %v3085_v37, %v3084_v53  ;;  %v2903_v27 = vsub.f32 %v7349_v62, %v2805_v19  ;;  %v2838_v10 = vmax.f32 %v2836_v1, %v2837_v28 }
 0x4e6   : > { %v2841_v50 = vsel %vm2658_vm8, %v7428_v24, -inf  ;;  %v8275_v42 = vrot.slane %v7392_v60, 1  ;;  %v3061_v57 = vrot.slane %v3060_v39, 1  ;;  %v3054_v63 = vrot.slane %v3053_v8, 1 }
 0x4e7   : > { %v2851_v48 = vrot.slane %v2850_v40, 2  ;;  %v7443_v4 = vpop.eup %5931  ;;  %v7446_v3 = vadd.f32 %v3040_v34, %v7409_v12  ;;  %v2957_v23 = vmul.f32 1.442695, %v2904_v56  ;;  %v2819_v44 = vmax.f32 %v2817_v11, %v2818_v41 }
 0x4e8   : > { %v7441_v52 = vadd.f32 %v8275_v42, %v7392_v60  ;;  %v2832_v62 = vrot.slane %v2831_v13, 1  ;;  %v3075_v1 = vrot.slane %v3074_v55, 1  ;;  %v3079_v30 = vadd.f32 %v3078_v20, %v3077_v9 }
 0x4e9   : > { %v2906_v26 = vsub.f32 %v7366_v14, %v2826_v6  ;;  %v2842_v53 = vrot.slane %v2841_v50, 4  ;;  %v3068_v60 = vrot.slane %v3067_v31, 1  ;;  %v3087_v58 = vrot.slane %v3086_v0, 2 }
 0x4ea   : > { %v2955_v35 = vmul.f32 1.442695, %v2903_v27  ;;  %v2839_v54 = vrot.slane %v2838_v10, 1  ;;  %v7453_v29 = vmul.f32 %v7411_v2, %v7293_v33  ;;  %v7455_v12 = vadd.f32 %v3061_v57, %v3060_v39  ;;  %v7468_v39 = vpop.f32.mrf.mxu1 }
 0x4eb   : > { %v7457_v34 = vadd.f32 %v3054_v63, %v3053_v8  ;;  %v2852_v11 = vmax.f32 %v2850_v40, %v2851_v48  ;;  %v7459_v47 = vpop.eup %5933  ;;  %v7463_v14 = vsel %vm2658_vm8, %v7443_v4, 0.0  ;;  %5939 = vpow2.f32 %v2957_v23 }
 0x4ec   : > { %v2905_v36 = vsub.f32 %v7378_v7, %v2819_v44  ;;  %v2833_v27 = vmax.f32 %v2831_v13, %v2832_v62  ;;  %v7466_v37 = vadd.f32 %v3075_v1, %v3074_v55  ;;  %v3080_v9 = vrot.slane %v3079_v30, 2  ;;  %v7486_v42 = vpop.f32.mrf.mxu1 }
 0x4ed   : > { %v2961_v2 = vmul.f32 1.442695, %v2906_v26  ;;  %v2843_v33 = vmax.f32 %v2841_v50, %v2842_v53  ;;  %v7470_v19 = vadd.f32 %v3068_v60, %v3067_v31  ;;  %v7472_v40 = vadd.f32 %v3087_v58, %v3086_v0 }
 0x4ee   : > { %5941 = vpow2.f32 %v2955_v35  ;;  %v2840_v28 = vmax.f32 %v2838_v10, %v2839_v54  ;;  %v3099_v8 = vrot.slane %v7463_v14, 4  ;;  %v3091_v56 = vsel %vm2658_vm8, %v7459_v47, 0.0 }
 0x4ef   : > { %v2853_v7 = vrot.slane %v2852_v11, 1  ;;  %v2844_v41 = vrot.slane %v2843_v33, 2  ;;  %v2959_v55 = vmul.f32 1.442695, %v2905_v36  ;;  %v2907_v13 = vsub.f32 %v7403_v49, %v2833_v27 }
 0x4f0   : > { %v2862_v20 = vsel %vm2658_vm8, %v7433_v17, -inf  ;;  %v2855_v31 = vsel %vm2658_vm8, %v7449_v16, -inf  ;;  %v7482_v0 = vpop.eup %5935  ;;  %v7484_v6 = vadd.f32 %v3080_v9, %v3079_v30  ;;  %5943 = vpow2.f32 %v2961_v2 }
 0x4f1   : > { %v2845_v10 = vmax.f32 %v2843_v33, %v2844_v41  ;;  %v2863_v50 = vrot.slane %v2862_v20, 4  ;;  %v7488_v57 = vpop.eup %5937  ;;  %v3092_v63 = vrot.slane %v3091_v56, 4  ;;  %v2908_v49 = vsub.f32 %v7388_v43, %v2840_v28 }
 0x4f2   : > { %v2856_v48 = vrot.slane %v2855_v31, 4  ;;  %v2876_v23 = vsel %vm2658_vm8, %v7468_v39, -inf  ;;  %v2854_v44 = vmax.f32 %v2852_v11, %v2853_v7  ;;  %5945 = vpow2.f32 %v2959_v55 }
 0x4f3   : > { %v2846_v62 = vrot.slane %v2845_v10, 1  ;;  %v2864_v1 = vmax.f32 %v2862_v20, %v2863_v50  ;;  %v2877_v26 = vrot.slane %v2876_v23, 4  ;;  %v2963_v30 = vmul.f32 1.442695, %v2907_v13 }
 0x4f4   : > { %v2857_v53 = vmax.f32 %v2855_v31, %v2856_v48  ;;  %v2869_v60 = vsel %vm2658_vm8, %v7486_v42, -inf  ;;  %v3112_v58 = vsel %vm2658_vm8, %v7482_v0, 0.0  ;;  %v3105_v36 = vsel %vm2658_vm8, %v7488_v57, 0.0 }
 0x4f5   : > { %v2847_v35 = vmax.f32 %v2845_v10, %v2846_v62  ;;  %v2865_v54 = vrot.slane %v2864_v1, 2  ;;  %v2878_v43 = vmax.f32 %v2876_v23, %v2877_v26  ;;  %v2965_v27 = vmul.f32 1.442695, %v2908_v49 }
 0x4f6   : > { %v2858_v11 = vrot.slane %v2857_v53, 2  ;;  %v2870_v9 = vrot.slane %v2869_v60, 4  ;;  %v2910_v2 = vsub.f32 %v7415_v15, %v2854_v44  ;;  %v3113_v41 = vrot.slane %v3112_v58, 4 }
 0x4f7   : > { %v2909_v33 = vsub.f32 %v7428_v24, %v2847_v35  ;;  %v2866_v28 = vmax.f32 %v2864_v1, %v2865_v54  ;;  %v2879_v7 = vrot.slane %v2878_v43, 2  ;;  %5947 = vpow2.f32 %v2963_v30 }
 0x4f8   : > { %v2859_v55 = vmax.f32 %v2857_v53, %v2858_v11  ;;  %v2871_v13 = vmax.f32 %v2869_v60, %v2870_v9  ;;  %v7501_v20 = vpop.eup %5939  ;;  %5949 = vrcp.f32 %v7352_v45  ;;  %v3106_v49 = vrot.slane %v3105_v36, 4 }
 0x4f9   : > { %v2967_v31 = vmul.f32 1.442695, %v2909_v33  ;;  %v2867_v10 = vrot.slane %v2866_v28, 1  ;;  %v2880_v50 = vmax.f32 %v2878_v43, %v2879_v7  ;;  %5951 = vpow2.f32 %v2965_v27 }
 0x4fa   : > { %v2860_v48 = vrot.slane %v2859_v55, 1  ;;  %v2872_v23 = vrot.slane %v2871_v13, 2  ;;  %v3100_v24 = vadd.f32 %v3099_v8, %v7463_v14  ;;  %v2969_v44 = vmul.f32 1.442695, %v2910_v2 }
 0x4fb   : > { %v7504_v15 = vpop.eup %5941  ;;  %v2868_v62 = vmax.f32 %v2866_v28, %v2867_v10  ;;  %v2881_v1 = vrot.slane %v2880_v50, 1  ;;  %v3093_v26 = vadd.f32 %v3092_v63, %v3091_v56  ;;  %v3114_v30 = vadd.f32 %v3113_v41, %v3112_v58 }
 0x4fc   : > { %v3126_v53 = vsel %vm2658_vm8, %v7501_v20, 0.0  ;;  %v2861_v60 = vmax.f32 %v2859_v55, %v2860_v48  ;;  %5953 = vpow2.f32 %v2967_v31  ;;  %v2873_v54 = vmax.f32 %v2871_v13, %v2872_v23 }
 0x4fd   : > { %v2912_v45 = vsub.f32 %v7433_v17, %v2868_v62  ;;  %v2882_v35 = vmax.f32 %v2880_v50, %v2881_v1  ;;  %v7510_v43 = vpop.eup %5943  ;;  %v3107_v27 = vadd.f32 %v3106_v49, %v3105_v36  ;;  %v3119_v14 = vsel %vm2658_vm8, %v7504_v15, 0.0  ;;  %v3931_v36 = vld [vmem:[%s8150_s15] sm:$0xf] }
 0x4fe   : > { %v2911_v8 = vsub.f32 %v7449_v16, %v2861_v60  ;;  %5955 = vrcp.f32 %v7361_v51  ;;  %v2874_v58 = vrot.slane %v2873_v54, 1  ;;  %v3101_v11 = vrot.slane %v3100_v24, 2  ;;  %5735 = vmatprep.subr.msk.bf16.mxu0 %vm3980_vm9, %v3931_v36 }
 0x4ff   : > { %5957 = vpow2.f32 %v2969_v44  ;;  %v2973_v56 = vmul.f32 1.442695, %v2912_v45  ;;  %v2914_v63 = vsub.f32 %v7468_v39, %v2882_v35  ;;  %v3094_v9 = vrot.slane %v3093_v26, 2  ;;  %v7521_v2 = vpop.eup %5945 }
 0x500   : > { %v2971_v17 = vmul.f32 1.442695, %v2911_v8  ;;  %5959 = vrcp.f32 %v7357_v59  ;;  %v3120_v33 = vrot.slane %v3119_v14, 4  ;;  %v2875_v51 = vmax.f32 %v2873_v54, %v2874_v58 }
 0x501   : > { %5961 = vpow2.f32 %v2973_v56  ;;  %v2977_v16 = vmul.f32 1.442695, %v2914_v63  ;;  %v3115_v28 = vrot.slane %v3114_v30, 2  ;;  %v3127_v7 = vrot.slane %v3126_v53, 4 }
 0x502   : > { %5963 = vpow2.f32 %v2971_v17  ;;  %v3089_v39 = vrot.slane %v7472_v40, 1  ;;  %v3108_v41 = vrot.slane %v3107_v27, 2  ;;  %v2913_v59 = vsub.f32 %v7486_v42, %v2875_v51 }
 0x503   : > { %5965 = vpow2.f32 %v2977_v16  ;;  %v3082_v55 = vrot.slane %v7484_v6, 1  ;;  %v3102_v13 = vadd.f32 %v3101_v11, %v3100_v24  ;;  %v3133_v31 = vsel %vm2658_vm8, %v7521_v2, 0.0 }
 0x504   : > { %5967 = vrcp.f32 %v7380_v21  ;;  %v7530_v10 = vpop.eup %5947  ;;  %v3121_v50 = vadd.f32 %v3120_v33, %v3119_v14  ;;  %v3140_v49 = vsel %vm2658_vm8, %v7510_v43, 0.0  ;;  %v2975_v48 = vmul.f32 1.442695, %v2913_v59 }
 0x505   : > { %5969 = vrcp.f32 %v7399_v25  ;;  %v5950_v42 = vpop.eup %5949  ;;  %v3095_v23 = vadd.f32 %v3094_v9, %v3093_v26  ;;  %v3116_v44 = vadd.f32 %v3115_v28, %v3114_v30  ;;  %v3128_v62 = vadd.f32 %v3127_v7, %v3126_v53 }
 0x506   : > { %5971 = vrcp.f32 %v7386_v18  ;;  %v7536_v24 = vpop.eup %5951  ;;  %v3109_v1 = vadd.f32 %v3108_v41, %v3107_v27  ;;  %v3134_v60 = vrot.slane %v3133_v31, 4  ;;  %v3235_v21 = vmul.f32 %v5950_v42, %v7275_v32 }
 0x507   : > { %5973 = vpow2.f32 %v2975_v48  ;;  %v3141_v45 = vrot.slane %v3140_v49, 4  ;;  %v3236_v35 = vmul.f32 %v7370_v5, %v7265_v46  ;;  %v3982_v54 = vsel %vm3980_vm9, %v3931_v36, 0 }
 0x508   : > { %5975 = vrcp.f32 %v7446_v3  ;;  %v7544_v25 = vadd.f32 %v3089_v39, %v7472_v40  ;;  %v3122_v26 = vrot.slane %v3121_v50, 2  ;;  %v3147_v18 = vsel %vm2658_vm8, %v7530_v10, 0.0  ;;  %5617 = vmatprep.mubr.msk.f32.mxu0 %vm2658_vm8, %v3235_v21 }
 0x509   : > { %5977 = vrcp.f32 %v7441_v52  ;;  %v7550_v32 = vpop.eup %5953  ;;  %v3103_v30 = vrot.slane %v3102_v13, 1  ;;  %v3096_v53 = vrot.slane %v3095_v23, 1  ;;  %v3154_v46 = vsel %vm2658_vm8, %v7536_v24, 0.0  ;;  %5618 = vmatmul.mubr.msk.f32.vlgmr.msra.gmra.mxu0 %vm2658_vm8, %v3236_v35 }
 0x50a   : > { %5979 = vrcp.f32 %v7457_v34  ;;  %v3083_v3 = vadd.f32 %v3082_v55, %v7484_v6  ;;  %v3117_v40 = vrot.slane %v3116_v44, 1  ;;  %v3129_v27 = vrot.slane %v3128_v62, 2  ;;  %5666 = vmatpush3.bf16.msra.mxu0 %v3982_v54 }
 0x50b   : > { %v5956_v5 = vpop.eup %5955  ;;  %v3135_v14 = vadd.f32 %v3134_v60, %v3133_v31  ;;  %v3110_v52 = vrot.slane %v3109_v1, 1  ;;  %v3142_v56 = vadd.f32 %v3141_v45, %v3140_v49  ;;  %v3148_v63 = vrot.slane %v3147_v18, 4  ;;  %v8276_v60 = vld [vmem:[#allocation28_spill] sm:$0xff] }
 0x50c   : > { %v7557_v8 = vpop.eup %5957  ;;  %v3237_v58 = vmul.f32 %v5956_v5, %v7289_v38  ;;  %v3123_v9 = vadd.f32 %v3122_v26, %v3121_v50  ;;  %v3155_v17 = vrot.slane %v3154_v46, 4  ;;  %v3161_v34 = vsel %vm2658_vm8, %v7550_v32, 0.0 }
 0x50d   : > { %v5960_v11 = vpop.eup %5959  ;;  %5981 = vrcp.f32 %v7470_v19  ;;  %v3104_v36 = vadd.f32 %v3103_v30, %v3102_v13  ;;  %v3097_v33 = vadd.f32 %v3096_v53, %v3095_v23  ;;  %v7570_v38 = vadd.f32 %v3129_v27, %v3128_v62  ;;  %v6031_v27 = vld [vmem:[%s8151_s16] sm:$0xff]  }
 0x50e   : > { %v7563_v6 = vpop.eup %5961  ;;  %5620 = vmatprep.mubr.msk.f32.mxu0 %vm2658_vm8, %v3237_v58  ;;  %v3238_v16 = vmul.f32 %v5960_v11, %v7282_v22  ;;  %5983 = vrcp.f32 %v7455_v12  ;;  %v3136_v28 = vrot.slane %v3135_v14, 2  ;;  %v3915_v7 = vpack.c.bf16 %v3236_v35, %v3235_v21  ;;  %v8279_v11 = vld [vmem:[#allocation29_spill] sm:$0xff] }
 0x50f   : > { %v7568_v51 = vpop.eup %5963  ;;  %5985 = vrcp.f32 %v7466_v37  ;;  %v7575_v19 = vadd.f32 %v3117_v40, %v3116_v44  ;;  %v3111_v41 = vadd.f32 %v3110_v52, %v3109_v1  ;;  %v3149_v59 = vadd.f32 %v3148_v63, %v3147_v18 }
 0x510   : > { %v7573_v39 = vpop.eup %5965  ;;  %v3162_v55 = vrot.slane %v3161_v34, 4  ;;  %5621 = vmatmul.mubr.msk.f32.gmra.mxu0 %vm2658_vm8, %v3238_v16  ;;  %v3124_v13 = vrot.slane %v3123_v9, 1  ;;  %v3143_v12 = vrot.slane %v3142_v56, 2  ;;  %v3156_v31 = vadd.f32 %v3155_v17, %v3154_v46 }
 0x511   : > { %v5968_v22 = vpop.eup %5967  ;;  %v3168_v50 = vsel %vm2658_vm8, %v7557_v8, 0.0  ;;  %5667 = vmatprep.mubr.msk.bf16.mxu0 %vm2658_vm8, %v3915_v7  ;;  %v3175_v37 = vsel %vm2658_vm8, %v7568_v51, 0.0  ;;  %v3916_v48 = vpack.c.bf16 %v3238_v16, %v3237_v58  ;;  %5987 = vrcp.f32 %v3083_v3 }
 0x512   : > { %v5970_v49 = vpop.eup %5969  ;;  %v3239_v42 = vmul.f32 %v5968_v22, %v7307_v61  ;;  %v3131_v44 = vrot.slane %v7570_v38, 1  ;;  %v3137_v62 = vadd.f32 %v3136_v28, %v3135_v14  ;;  %v3182_v1 = vsel %vm2658_vm8, %v7563_v6, 0.0  ;;  %v8277_v14 = vld [vmem:[#allocation25_spill] sm:$0xff] }
 0x513   : > { %v5972_v23 = vpop.eup %5971  ;;  %v3241_v21 = vmul.f32 %v5970_v49, %v8276_v60  ;;  %v3150_v35 = vrot.slane %v3149_v59, 2  ;;  %v3169_v54 = vrot.slane %v3168_v50, 4  ;;  %v3163_v26 = vadd.f32 %v3162_v55, %v3161_v34  ;;  %v8280_v49 = vld [vmem:[#allocation31_spill] sm:$0xff] }
 0x514   : > { %v7588_v45 = vpop.eup %5973  ;;  %5623 = vmatprep.mubr.msk.f32.mxu1 %vm2658_vm8, %v3239_v42  ;;  %5668 = vmatmul.mubr.msk.bf16.vlgmr.msra.gmra.mxu0 %vm2658_vm8, %v3916_v48  ;;  %v3917_v61 = vpack.c.bf16 %v7453_v29, %v3239_v42  ;;  %v3144_v30 = vadd.f32 %v3143_v12, %v3142_v56  ;;  %v3157_v53 = vrot.slane %v3156_v31, 2  ;;  %v3176_v46 = vrot.slane %v3175_v37, 4 }
 0x515   : > { %v5976_v18 = vpop.eup %5975  ;;  %5624 = vmatmul.mubr.msk.f32.vlgmr.msra.gmra.mxu1 %vm2658_vm8, %v7453_v29  ;;  %5989 = vrcp.f32 %v3097_v33  ;;  %v3125_v3 = vadd.f32 %v3124_v13, %v3123_v9  ;;  %v3183_v40 = vrot.slane %v3182_v1, 4  ;;  %v3189_v63 = vsel %vm2658_vm8, %v7588_v45, 0.0  ;;  %v8278_v29 = vld [vmem:[#allocation27_spill] sm:$0xff] }
 0x516   : > { %v5978_v5 = vpop.eup %5977  ;;  %5700 = vmatpush3.bf16.msra.mxu1 %v6031_v27  ;;  %5671 = vmatprep.mubr.msk.bf16.mxu0 %vm2658_vm8, %v3917_v61  ;;  %v3243_v52 = vmul.f32 %v5976_v18, %v8277_v14  ;;  %5991 = vrcp.f32 %v7544_v25  ;;  %v3242_v58 = vmul.f32 %v5972_v23, %v8278_v29  ;;  %v3138_v17 = vrot.slane %v3137_v62, 1 }
 0x517   : > { %v5980_v56 = vpop.eup %5979  ;;  %5626 = vmatprep.mubr.msk.f32.mxu1 %vm2658_vm8, %v3241_v21  ;;  %v3244_v9 = vmul.f32 %v5978_v5, %v8279_v11  ;;  %5993 = vrcp.f32 %v3104_v36  ;;  %v3151_v34 = vadd.f32 %v3150_v35, %v3149_v59  ;;  %v3170_v33 = vadd.f32 %v3169_v54, %v3168_v50 }
 0x518   : > { %v3164_v16 = vrot.slane %v3163_v26, 2  ;;  %v3158_v28 = vadd.f32 %v3157_v53, %v3156_v31  ;;  %v3177_v7 = vadd.f32 %v3176_v46, %v3175_v37  ;;  %v3196_v25 = vsel %vm2658_vm8, %v7573_v39, 0.0  ;;  %v8283_v46 = vld [vmem:[#allocation32_spill] sm:$0xff] }
 0x519   : > { %5627 = vmatmul.mubr.msk.f32.gmra.mxu1 %vm2658_vm8, %v3242_v58  ;;  %v3919_v55 = vpack.c.bf16 %v3244_v9, %v3243_v52  ;;  %v3190_v13 = vrot.slane %v3189_v63, 4  ;;  %v3918_v12 = vpack.c.bf16 %v3242_v58, %v3241_v21  ;;  %v3245_v48 = vmul.f32 %v5980_v56, %v8280_v49  ;;  %v8281_v21 = vld [vmem:[#allocation33_spill] sm:$0xff]  ;;  %v8284_v58 = vld [vmem:[#allocation35_spill] sm:$0xff] }
 0x51a   : > { %v5982_v22 = vpop.eup %5981  ;;  %5629 = vmatprep.mubr.msk.f32.mxu1 %vm2658_vm8, %v3243_v52  ;;  %5995 = vrcp.f32 %v3111_v41  ;;  %v3132_v59 = vadd.f32 %v3131_v44, %v7570_v38  ;;  %v3184_v50 = vadd.f32 %v3183_v40, %v3182_v1  ;;  %v3145_v37 = vrot.slane %v3144_v30, 1 }
 0x51b   : > { %v5984_v36 = vpop.eup %5983  ;;  %v3152_v42 = vrot.slane %v3151_v34, 1  ;;  %v3171_v23 = vrot.slane %v3170_v33, 2  ;;  %v3165_v60 = vadd.f32 %v3164_v16, %v3163_v26  ;;  %v3178_v35 = vrot.slane %v3177_v7, 2  ;;  %v8282_v26 = vld [vmem:[#allocation30_spill] sm:$0xff] }
 0x51c   : > { %v5986_v31 = vpop.eup %5985  ;;  %5672 = vmatmul.mubr.msk.bf16.gmra.mxu0 %vm2658_vm8, %v3918_v12  ;;  %v3197_v54 = vrot.slane %v3196_v25, 4  ;;  %v3247_v61 = vmul.f32 %v5982_v22, %v8281_v21  ;;  %5997 = vrcp.f32 %v3125_v3  ;;  %v3139_v41 = vadd.f32 %v3138_v17, %v3137_v62  ;;  %v8285_v12 = vld [vmem:[#allocation34_spill] sm:$0xff] }
 0x51d   : > { %5630 = vmatmul.mubr.msk.f32.gmra.mxu1 %vm2658_vm8, %v3244_v9  ;;  %5675 = vmatprep.mubr.msk.bf16.mxu0 %vm2658_vm8, %v3919_v55  ;;  %v3159_v18 = vrot.slane %v3158_v28, 1  ;;  %v3191_v38 = vadd.f32 %v3190_v13, %v3189_v63  ;;  %5999 = vrcp.f32 %v7575_v19  ;;  %v3185_v1 = vrot.slane %v3184_v50, 2 }
 0x51e   : > { %5632 = vmatprep.mubr.msk.f32.mxu1 %vm2658_vm8, %v3245_v48  ;;  %v5988_v44 = vpop.eup %5987  ;;  %v3246_v53 = vmul.f32 %v5984_v36, %v8282_v26  ;;  %v3248_v5 = vmul.f32 %v5986_v31, %v8283_v46  ;;  %6001 = vrcp.f32 %v3132_v59  ;;  %v3146_v40 = vadd.f32 %v3145_v37, %v3144_v30 }
 0x51f   : > { %v3153_v27 = vadd.f32 %v3152_v42, %v3151_v34  ;;  %v3172_v14 = vadd.f32 %v3171_v23, %v3170_v33  ;;  %v3166_v52 = vrot.slane %v3165_v60, 1  ;;  %v3179_v56 = vadd.f32 %v3178_v35, %v3177_v7 }
 0x520   : > { %v3198_v3 = vadd.f32 %v3197_v54, %v3196_v25  ;;  %v3921_v62 = vpack.c.bf16 %v3248_v5, %v3247_v61  ;;  %v3192_v29 = vrot.slane %v3191_v38, 2  ;;  %v3920_v19 = vpack.c.bf16 %v3246_v53, %v3245_v48 }
 0x521   : > { %5633 = vmatmul.mubr.msk.f32.gmra.mxu1 %vm2658_vm8, %v3246_v53  ;;  %v3249_v11 = vmul.f32 %v5988_v44, %v8284_v58  ;;  %6003 = vrcp.f32 %v3139_v41  ;;  %v3160_v17 = vadd.f32 %v3159_v18, %v3158_v28  ;;  %v3186_v16 = vadd.f32 %v3185_v1, %v3184_v50  ;;  %v8288_v58 = vld [vmem:[#allocation10_spill] sm:$0xff] }
 0x522   : > { %v5990_v63 = vpop.eup %5989  ;;  %5635 = vmatprep.mubr.msk.f32.mxu1 %vm2658_vm8, %v3247_v61  ;;  %v3173_v34 = vrot.slane %v3172_v14, 1  ;;  %v3180_v33 = vrot.slane %v3179_v56, 1  ;;  %6005 = vrcp.f32 %v3153_v27  ;;  %v3167_v25 = vadd.f32 %v3166_v52, %v3165_v60 }
 0x523   : > { %v5992_v9 = vpop.eup %5991  ;;  %v3251_v7 = vmul.f32 %v5990_v63, %v7459_v47  ;;  %v3199_v55 = vrot.slane %v3198_v3, 2  ;;  %v3193_v22 = vadd.f32 %v3192_v29, %v3191_v38  ;;  %6007 = vrcp.f32 %v3146_v40 }
 0x524   : > { %v5994_v30 = vpop.eup %5993  ;;  %5676 = vmatmul.mubr.msk.bf16.gmra.mxu0 %vm2658_vm8, %v3920_v19  ;;  %v3187_v13 = vrot.slane %v3186_v16, 1  ;;  %v3250_v49 = vmul.f32 %v5992_v9, %v8285_v12  ;;  %6009 = vrcp.f32 %v3160_v17  ;;  %v3174_v36 = vadd.f32 %v3173_v34, %v3172_v14  ;;  %v8290_v9 = vld [vmem:[#allocation12_spill] sm:$0xff]  ;;  %v8292_v17 = vld [vmem:[#allocation14_spill] sm:$0xff]  ;;  %v8295_v34 = vld [vmem:[#allocation17_spill] sm:$0xff] }
 0x525   : > { %5636 = vmatmul.mubr.msk.f32.gmra.mxu1 %vm2658_vm8, %v3248_v5  ;;  %5679 = vmatprep.mubr.msk.bf16.mxu0 %vm2658_vm8, %v3921_v62  ;;  %v3252_v48 = vmul.f32 %v5994_v30, %v7443_v4  ;;  %v3181_v59 = vadd.f32 %v3180_v33, %v3179_v56  ;;  %v3194_v31 = vrot.slane %v3193_v22, 1  ;;  %6011 = vrcp.f32 %v3167_v25  ;;  %v8294_v30 = vld [vmem:[#allocation16_spill] sm:$0xff]  ;;  %v8296_v33 = vld [vmem:[#allocation18_spill] sm:$0xff] }
 0x526   : > { %5638 = vmatprep.mubr.msk.f32.mxu1 %vm2658_vm8, %v3249_v11  ;;  %v3922_v37 = vpack.c.bf16 %v3250_v49, %v3249_v11  ;;  %v3188_v60 = vadd.f32 %v3187_v13, %v3186_v16  ;;  %v3200_v35 = vadd.f32 %v3199_v55, %v3198_v3  ;;  %v8289_v11 = vld [vmem:[#allocation11_spill] sm:$0xff]  ;;  %v8298_v25 = vld [vmem:[#allocation20_spill] sm:$0xff]  ;;  %v8299_v55 = vld [vmem:[#allocation21_spill] sm:$0xff]  ;;  %v8302_v13 = vmov 0  }
 0x527   : > { %v5996_v28 = vpop.eup %5995  ;;  %v3923_v50 = vpack.c.bf16 %v3252_v48, %v3251_v7  ;;  %6013 = vrcp.f32 %v3181_v59  ;;  %v3195_v21 = vadd.f32 %v3194_v31, %v3193_v22  ;;  %v8293_v16 = vld [vmem:[#allocation15_spill] sm:$0xff]  ;;  %v8300_v22 = vld [vmem:[#allocation22_spill] sm:$0xff]  ;;  %v5800_v31 = vld [vmem:[%s8143_s8 + $0x40] ss:$8 sps:$4 sm:$0xff]  }
 0x528   : > { %v3253_v42 = vmul.f32 %v5996_v28, %v7488_v57  ;;  %6015 = vrcp.f32 %v3174_v36  ;;  %v3201_v57 = vrot.slane %v3200_v35, 1  ;;  %v8301_v28 = vld [vmem:[#allocation24_spill] sm:$0xff]  ;;  %v5793_v12 = vld [vmem:[%s8143_s8 + $0x74] ss:$8 sps:$4 sm:$0xff]  }
 0x529   : > { %5639 = vmatmul.mubr.msk.f32.gmra.mxu1 %vm2658_vm8, %v3250_v49  ;;  %v5998_v47 = vpop.eup %5997  ;;  %6017 = vrcp.f32 %v3188_v60  ;;  %v5791_v49 = vld [vmem:[%s8143_s8 + $0x70] ss:$8 sps:$4 sm:$0xff]   ;;  %4774 = vmatprep.subr.bf16.mxu1 %v5793_v12  ;;  %v5794_v36 = vld [vmem:[%s8143_s8 + $0x60] ss:$8 sps:$4 sm:$0xff]   ;;  %v5799_v59 = vld [vmem:[%s8143_s8 + $0x54] ss:$8 sps:$4 sm:$0xff]  }
 0x52a   : > { %5641 = vmatprep.mubr.msk.f32.mxu1 %vm2658_vm8, %v3251_v7  ;;  %v6000_v23 = vpop.eup %5999  ;;  %v3255_v4 = vmul.f32 %v5998_v47, %v7504_v15  ;;  %6019 = vrcp.f32 %v3195_v21  ;;  %v3202_v53 = vadd.f32 %v3201_v57, %v3200_v35  ;;  %v8297_v7 = vld [vmem:[#allocation19_spill] sm:$0xff]  ;;  %v5802_v47 = vld [vmem:[%s8143_s8 + $0x44] ss:$8 sps:$4 sm:$0xff]   ;;  %v5806_v60 = vld [vmem:[%s8143_s8 + $0x20] ss:$8 sps:$4 sm:$0xff]  }
 0x52b   : > { %v6002_v54 = vpop.eup %6001  ;;  %v3254_v41 = vmul.f32 %v6000_v23, %v7482_v0  ;;  %v5808_v23 = vld [vmem:[%s8143_s8 + $0x24] ss:$8 sps:$4 sm:$0xff]  }
 0x52c   : > { %5680 = vmatmul.mubr.msk.bf16.gmra.mxu0 %vm2658_vm8, %v3922_v37  ;;  %v3256_v18 = vmul.f32 %v6002_v54, %v7501_v20  ;;  %6021 = vrcp.f32 %v3202_v53  ;;  %v5805_v37 = vld [vmem:[%s8143_s8 + $0x34] ss:$8 sps:$4 sm:$0xff]   ;;  %v7742_v35 = vld [vmem:[%s8153_s18] sm:$0xff] }
 0x52d   : > { %5642 = vmatmul.mubr.msk.f32.gmra.mxu1 %vm2658_vm8, %v3252_v48  ;;  %5683 = vmatprep.mubr.msk.bf16.mxu0 %vm2658_vm8, %v3923_v50  ;;  %v3924_v1 = vpack.c.bf16 %v3254_v41, %v3253_v42  ;;  %v5796_v48 = vld [vmem:[%s8143_s8 + $0x64] ss:$8 sps:$4 sm:$0xff]   ;;  %v5797_v50 = vld [vmem:[%s8143_s8 + $0x50] ss:$8 sps:$4 sm:$0xff]  }
 0x52e   : > { %5644 = vmatprep.mubr.msk.f32.mxu1 %vm2658_vm8, %v3253_v42  ;;  %v6004_v61 = vpop.eup %6003  ;;  %v3925_v38 = vpack.c.bf16 %v3256_v18, %v3255_v4  ;;  %v5803_v42 = vld [vmem:[%s8143_s8 + $0x30] ss:$8 sps:$4 sm:$0xff]  }
 0x52f   : > { %v6006_v44 = vpop.eup %6005  ;;  %v3257_v15 = vmul.f32 %v6004_v61, %v7521_v2  ;;  %v5809_v61 = vld [vmem:[%s8143_s8 + $0x10] ss:$8 sps:$4 sm:$0xff]  }
 0x530   : > { %v6008_v26 = vpop.eup %6007  ;;  %v3259_v0 = vmul.f32 %v6006_v44, %v7530_v10  ;;  %v5814_v44 = vld [vmem:[%s8143_s8 + $0x4] ss:$8 sps:$4 sm:$0xff]  }
 0x531   : > { %5645 = vmatmul.mubr.msk.f32.gmra.mxu1 %vm2658_vm8, %v3254_v41  ;;  %v6010_v46 = vpop.eup %6009  ;;  %v3258_v5 = vmul.f32 %v6008_v26, %v7510_v43 }
 0x532   : > { %5647 = vmatprep.mubr.msk.f32.mxu1 %vm2658_vm8, %v3255_v4  ;;  %v6012_v20 = vpop.eup %6011  ;;  %v3260_v40 = vmul.f32 %v6010_v46, %v7536_v24  ;;  %v5811_v4 = vld [vmem:[%s8143_s8 + $0x14] ss:$8 sps:$4 sm:$0xff]  }
 0x533   : > { %v3926_v14 = vpack.c.bf16 %v3258_v5, %v3257_v15  ;;  %v3261_v52 = vmul.f32 %v6012_v20, %v7550_v32 }
 0x534   : > { %5684 = vmatmul.mubr.msk.bf16.gmra.mxu0 %vm2658_vm8, %v3924_v1  ;;  %v3927_v2 = vpack.c.bf16 %v3260_v40, %v3259_v0  ;;  %v6014_v27 = vpop.eup %6013 }
 0x535   : > { %5648 = vmatmul.mubr.msk.f32.gmra.mxu1 %vm2658_vm8, %v3256_v18  ;;  %5687 = vmatprep.mubr.msk.bf16.mxu0 %vm2658_vm8, %v3925_v38  ;;  %v6016_v56 = vpop.eup %6015  ;;  %v3263_v43 = vmul.f32 %v6014_v27, %v7568_v51 }
 0x536   : > { %5650 = vmatprep.mubr.msk.f32.mxu1 %vm2658_vm8, %v3257_v15  ;;  %v6018_v3 = vpop.eup %6017  ;;  %v3262_v24 = vmul.f32 %v6016_v56, %v7557_v8  ;;  %v5812_v15 = vld [vmem:[%s8143_s8] ss:$8 sps:$4 sm:$0xff]  }
 0x537   : > { %v6020_v10 = vpop.eup %6019  ;;  %v3264_v62 = vmul.f32 %v6018_v3, %v7563_v6  ;;  %v8286_v6 = vld [vmem:[#allocation8_spill] sm:$0xff] }
 0x538   : > { %v3928_v63 = vpack.c.bf16 %v3262_v24, %v3261_v52  ;;  %v3265_v29 = vmul.f32 %v6020_v10, %v7588_v45  ;;  %v8287_v45 = vld [vmem:[#allocation9_spill] sm:$0xff] }
 0x539   : > { %5651 = vmatmul.mubr.msk.f32.gmra.mxu1 %vm2658_vm8, %v3258_v5  ;;  %v3929_v32 = vpack.c.bf16 %v3264_v62, %v3263_v43  ;;  %v6022_v19 = vpop.eup %6021 }
 0x53a   : > { %5653 = vmatprep.mubr.msk.f32.mxu1 %vm2658_vm8, %v3259_v0  ;;  %v3266_v8 = vmul.f32 %v6022_v19, %v7573_v39  ;;  %v8291_v39 = vld [vmem:[#allocation13_spill] sm:$0xff] }
 0x53c   : > { %5688 = vmatmul.mubr.msk.bf16.gmra.mxu0 %vm2658_vm8, %v3926_v14  ;;  %v3930_v51 = vpack.c.bf16 %v3266_v8, %v3265_v29 }
 0x53d   : > { %5654 = vmatmul.mubr.msk.f32.gmra.mxu1 %vm2658_vm8, %v3260_v40  ;;  %5691 = vmatprep.mubr.msk.bf16.mxu0 %vm2658_vm8, %v3927_v2 }
 0x53e   : > { %5656 = vmatprep.mubr.msk.f32.mxu1 %vm2658_vm8, %v3261_v52 }
 0x541   : > { %5657 = vmatmul.mubr.msk.f32.gmra.mxu1 %vm2658_vm8, %v3262_v24 }
 0x542   : > { %5659 = vmatprep.mubr.msk.f32.mxu1 %vm2658_vm8, %v3263_v43 }
 0x544   : > { %5692 = vmatmul.mubr.msk.bf16.gmra.mxu0 %vm2658_vm8, %v3928_v63 }
 0x545   : > { %5660 = vmatmul.mubr.msk.f32.gmra.mxu1 %vm2658_vm8, %v3264_v62  ;;  %5695 = vmatprep.mubr.msk.bf16.mxu0 %vm2658_vm8, %v3929_v32 }
 0x546   : > { %5662 = vmatprep.mubr.msk.f32.mxu1 %vm2658_vm8, %v3265_v29 }
 0x549   : > { %5663 = vmatmul.mubr.msk.f32.gmra.mxu1 %vm2658_vm8, %v3266_v8 }
 0x54a   : > { %5701 = vmatprep.mubr.msk.bf16.mxu1 %vm700_vm0, %v8286_v6 }
 0x54c   : > { %5696 = vmatmul.mubr.msk.bf16.gmra.mxu0 %vm2658_vm8, %v3930_v51 }
 0x54d   : > { %5702 = vmatmul.mubr.msk.bf16.vlgmr.msra.gmra.mxu1 %vm700_vm0, %v8287_v45 }
 0x54e   : > { %5705 = vmatprep.mubr.msk.bf16.mxu1 %vm700_vm0, %v8288_v58  ;;  %4775 = vmatpush1.bf16.msra.mxu1 %v5791_v49 }
 0x54f   : > { %4776 = vmatprep.subr.bf16.mxu1 %v5796_v48 }
 0x552   : > { %4777 = vmatpush1.bf16.msra.mxu1 %v5794_v36 }
 0x553   : > { %4778 = vmatprep.subr.bf16.mxu1 %v5799_v59 }
 0x555   : > { %5706 = vmatmul.mubr.msk.bf16.gmra.mxu1 %vm700_vm0, %v8289_v11 }
 0x556   : > { %5709 = vmatprep.mubr.msk.bf16.mxu1 %vm700_vm0, %v8290_v9  ;;  %4779 = vmatpush1.bf16.msra.mxu1 %v5797_v50 }
 0x557   : > { %4780 = vmatprep.subr.bf16.mxu1 %v5802_v47 }
 0x55a   : > { %4781 = vmatpush1.bf16.msra.mxu1 %v5800_v31 }
 0x55b   : > { %4782 = vmatprep.subr.bf16.mxu1 %v5805_v37 }
 0x55d   : > { %5710 = vmatmul.mubr.msk.bf16.gmra.mxu1 %vm700_vm0, %v8291_v39 }
 0x55e   : > { %5713 = vmatprep.mubr.msk.bf16.mxu1 %vm700_vm0, %v8292_v17  ;;  %4783 = vmatpush1.bf16.msra.mxu1 %v5803_v42 }
 0x55f   : > { %4784 = vmatprep.subr.bf16.mxu1 %v5808_v23 }
 0x562   : > { %4785 = vmatpush1.bf16.msra.mxu1 %v5806_v60 }
 0x563   : > { %4786 = vmatprep.subr.bf16.mxu1 %v5811_v4 }
 0x565   : > { %5714 = vmatmul.mubr.msk.bf16.gmra.mxu1 %vm700_vm0, %v8293_v16 }
 0x566   : > { %5717 = vmatprep.mubr.msk.bf16.mxu1 %vm700_vm0, %v8294_v30  ;;  %4787 = vmatpush1.bf16.msra.mxu1 %v5809_v61 }
 0x567   : > { %4788 = vmatprep.subr.bf16.mxu1 %v5814_v44 }
 0x56a   : > { %4789 = vmatpush1.bf16.msra.mxu1 %v5812_v15 }
 0x56d   : > { %5718 = vmatmul.mubr.msk.bf16.gmra.mxu1 %vm700_vm0, %v8295_v34 }
 0x56e   : > { %5721 = vmatprep.mubr.msk.bf16.mxu1 %vm700_vm0, %v8296_v33 }
 0x575   : > { %5722 = vmatmul.mubr.msk.bf16.gmra.mxu1 %vm700_vm0, %v8297_v7 }
 0x576   : > { %5725 = vmatprep.mubr.msk.bf16.mxu1 %vm700_vm0, %v8298_v25 }
 0x57d   : > { %5726 = vmatmul.mubr.msk.bf16.gmra.mxu1 %vm700_vm0, %v8299_v55 }
 0x57e   : > { %5729 = vmatprep.mubr.msk.bf16.mxu1 %vm700_vm0, %v8300_v22 }
 0x585   : > { %5730 = vmatmul.mubr.msk.bf16.gmra.mxu1 %vm700_vm0, %v8301_v28 }
 0x586   : > { %4806 = vmatprep.mubr.bf16.mxu1 %v8302_v13 }
 0x5c9   : > { %v5619_v54 = vpop.f32.mrf.mxu0 }
 0x5ca   : > { %v3591_v21 = vmul.f32 %v5619_v54, %v7742_v35 }
 0x5cb   : > { %v3430_v57 = vpop.f32.mrf.mxu0 }
 0x5cc   : > { %v3630_v41 = vsel %vm3622_vm10, %v3591_v21, 0.0  ;;  %v3590_v18 = vmul.f32 %v7742_v35, %v3430_v57 }
 0x5cd   : > { %v3631_v38 = vrot.slane %v3630_v41, 4 }
 0x5ce   : > { %v3623_v1 = vsel %vm3622_vm10, %v3590_v18, 0.0 }
 0x5cf   : > { %v3632_v26 = vadd.f32 %v3631_v38, %v3630_v41  ;;  %v3624_v53 = vrot.slane %v3623_v1, 4 }
 0x5d0   : > { %v5622_v46 = vpop.f32.mrf.mxu0 }
 0x5d1   : > { %v3593_v0 = vmul.f32 %v5622_v46, %v7742_v35  ;;  %v3633_v20 = vrot.slane %v3632_v26, 2  ;;  %v3625_v5 = vadd.f32 %v3624_v53, %v3623_v1 }
 0x5d2   : > { %v3440_v40 = vpop.f32.mrf.mxu0 }
 0x5d3   : > { %v3644_v2 = vsel %vm3622_vm10, %v3593_v0, 0.0  ;;  %v3592_v27 = vmul.f32 %v7742_v35, %v3440_v40  ;;  %v3634_v14 = vadd.f32 %v3633_v20, %v3632_v26  ;;  %v3626_v52 = vrot.slane %v3625_v5, 2 }
 0x5d4   : > { %v3645_v56 = vrot.slane %v3644_v2, 4  ;;  %v7784_v1 = vpop.f32.mrf.mxu0 }
 0x5d5   : > { %v3637_v3 = vsel %vm3622_vm10, %v3592_v27, 0.0  ;;  %v5625_v43 = vpop.f32.mrf.mxu1  ;;  %v3627_v10 = vadd.f32 %v3626_v52, %v3625_v5  ;;  %v3635_v29 = vrot.slane %v3634_v14, 1 }
 0x5d6   : > { %v3646_v24 = vadd.f32 %v3645_v56, %v3644_v2  ;;  %v3638_v62 = vrot.slane %v3637_v3, 4  ;;  %v3595_v32 = vmul.f32 %v5625_v43, %v7742_v35 }
 0x5d7   : > { %v3450_v63 = vpop.f32.mrf.mxu1  ;;  %v3628_v19 = vrot.slane %v3627_v10, 1  ;;  %v3636_v33 = vadd.f32 %v3635_v29, %v3634_v14 }
 0x5d8   : > { %v3647_v8 = vrot.slane %v3646_v24, 2  ;;  %v3639_v6 = vadd.f32 %v3638_v62, %v3637_v3  ;;  %v3658_v51 = vsel %vm3622_vm10, %v3595_v32, 0.0  ;;  %v3594_v45 = vmul.f32 %v7742_v35, %v3450_v63 }
 0x5d9   : > { %v5628_v58 = vpop.f32.mrf.mxu1  ;;  %v3659_v39 = vrot.slane %v3658_v51, 4  ;;  %v3629_v17 = vadd.f32 %v3628_v19, %v3627_v10 }
 0x5da   : > { %v3648_v11 = vadd.f32 %v3647_v8, %v3646_v24  ;;  %v3640_v9 = vrot.slane %v3639_v6, 2  ;;  %v3651_v16 = vsel %vm3622_vm10, %v3594_v45, 0.0  ;;  %v3597_v30 = vmul.f32 %v5628_v58, %v7742_v35  ;;  %v7796_v24 = vpop.f32.mrf.mxu0 }
 0x5db   : > { %v3460_v34 = vpop.f32.mrf.mxu1  ;;  %v3660_v25 = vadd.f32 %v3659_v39, %v3658_v51  ;;  %v3652_v22 = vrot.slane %v3651_v16, 4  ;;  %v3879_v50 = vsel %vm1885_vm1, %v3636_v33, %v3629_v17 }
 0x5dc   : > { %v3641_v7 = vadd.f32 %v3640_v9, %v3639_v6  ;;  %v3649_v55 = vrot.slane %v3648_v11, 1  ;;  %v3672_v28 = vsel %vm3622_vm10, %v3597_v30, 0.0  ;;  %v3596_v12 = vmul.f32 %v7742_v35, %v3460_v34 }
 0x5dd   : > { %v5631_v49 = vpop.f32.mrf.mxu1  ;;  %v3661_v36 = vrot.slane %v3660_v25, 2  ;;  %v3673_v59 = vrot.slane %v3672_v28, 4  ;;  %v3653_v47 = vadd.f32 %v3652_v22, %v3651_v16 }
 0x5de   : > { %v3642_v48 = vrot.slane %v3641_v7, 1  ;;  %v3665_v31 = vsel %vm3622_vm10, %v3596_v12, 0.0  ;;  %v3599_v37 = vmul.f32 %v5631_v49, %v7742_v35  ;;  %v3650_v21 = vadd.f32 %v3649_v55, %v3648_v11 }
 0x5df   : > { %v3470_v42 = vpop.f32.mrf.mxu1  ;;  %v3662_v60 = vadd.f32 %v3661_v36, %v3660_v25  ;;  %v3674_v54 = vadd.f32 %v3673_v59, %v3672_v28  ;;  %v3666_v4 = vrot.slane %v3665_v31, 4  ;;  %v3654_v61 = vrot.slane %v3653_v47, 2 }
 0x5e0   : > { %v3643_v23 = vadd.f32 %v3642_v48, %v3641_v7  ;;  %v3686_v57 = vsel %vm3622_vm10, %v3599_v37, 0.0  ;;  %v3598_v41 = vmul.f32 %v7742_v35, %v3470_v42  ;;  %v7804_v7 = vpop.f32.mrf.mxu0 }
 0x5e1   : > { %v5634_v18 = vpop.f32.mrf.mxu1  ;;  %v3663_v44 = vrot.slane %v3662_v60, 1  ;;  %v3675_v15 = vrot.slane %v3674_v54, 2  ;;  %v3667_v26 = vadd.f32 %v3666_v4, %v3665_v31  ;;  %v3655_v53 = vadd.f32 %v3654_v61, %v3653_v47 }
 0x5e2   : > { %v3880_v38 = vsel %vm1887_vm2, %v3643_v23, %v3879_v50  ;;  %v3687_v0 = vrot.slane %v3686_v57, 4  ;;  %v3679_v20 = vsel %vm3622_vm10, %v3598_v41, 0.0  ;;  %v3601_v3 = vmul.f32 %v5634_v18, %v7742_v35 }
 0x5e3   : > { %v3881_v46 = vsel %vm1889_vm3, %v3650_v21, %v3880_v38  ;;  %v3480_v5 = vpop.f32.mrf.mxu1  ;;  %v3664_v40 = vadd.f32 %v3663_v44, %v3662_v60  ;;  %v3676_v2 = vadd.f32 %v3675_v15, %v3674_v54  ;;  %v3668_v27 = vrot.slane %v3667_v26, 2  ;;  %v7818_v21 = vpop.f32.mrf.mxu0 }
 0x5e4   : > { %v3680_v14 = vrot.slane %v3679_v20, 4  ;;  %v3656_v52 = vrot.slane %v3655_v53, 1  ;;  %v3688_v56 = vadd.f32 %v3687_v0, %v3686_v57  ;;  %v3600_v43 = vmul.f32 %v7742_v35, %v3480_v5 }
 0x5e5   : > { %v5637_v10 = vpop.f32.mrf.mxu1  ;;  %v3677_v62 = vrot.slane %v3676_v2, 1  ;;  %v3669_v32 = vadd.f32 %v3668_v27, %v3667_v26  ;;  %v3700_v6 = vsel %vm3622_vm10, %v3601_v3, 0.0 }
 0x5e6   : > { %v3681_v63 = vadd.f32 %v3680_v14, %v3679_v20  ;;  %v3603_v29 = vmul.f32 %v5637_v10, %v7742_v35  ;;  %v3657_v19 = vadd.f32 %v3656_v52, %v3655_v53  ;;  %v3689_v8 = vrot.slane %v3688_v56, 2 }
 0x5e7   : > { %v3693_v51 = vsel %vm3622_vm10, %v3600_v43, 0.0  ;;  %v3490_v45 = vpop.f32.mrf.mxu1  ;;  %v3678_v58 = vadd.f32 %v3677_v62, %v3676_v2  ;;  %v3670_v11 = vrot.slane %v3669_v32, 1  ;;  %v3701_v39 = vrot.slane %v3700_v6, 4 }
 0x5e8   : > { %v3682_v9 = vrot.slane %v3681_v63, 2  ;;  %v3882_v17 = vsel %vm1891_vm4, %v3657_v19, %v3881_v46  ;;  %v3690_v16 = vadd.f32 %v3689_v8, %v3688_v56  ;;  %v3694_v30 = vrot.slane %v3693_v51, 4  ;;  %v7825_v56 = vpop.f32.mrf.mxu0 }
 0x5e9   : > { %v3714_v34 = vsel %vm3622_vm10, %v3603_v29, 0.0  ;;  %v5640_v33 = vpop.f32.mrf.mxu1  ;;  %v3671_v25 = vadd.f32 %v3670_v11, %v3669_v32  ;;  %v3883_v55 = vsel %vm1893_vm5, %v3664_v40, %v3882_v17  ;;  %v3702_v28 = vadd.f32 %v3701_v39, %v3700_v6 }
 0x5ea   : > { %v3683_v22 = vadd.f32 %v3682_v9, %v3681_v63  ;;  %v3691_v12 = vrot.slane %v3690_v16, 1  ;;  %v3695_v49 = vadd.f32 %v3694_v30, %v3693_v51  ;;  %v3715_v48 = vrot.slane %v3714_v34, 4  ;;  %v7833_v30 = vpop.f32.mrf.mxu0 }
 0x5eb   : > { %v3602_v36 = vmul.f32 %v7742_v35, %v3490_v45  ;;  %v3500_v59 = vpop.f32.mrf.mxu1  ;;  %v3884_v50 = vsel %vm1895_vm6, %v3671_v25, %v3883_v55  ;;  %v3703_v31 = vrot.slane %v3702_v28, 2  ;;  %v3605_v37 = vmul.f32 %v5640_v33, %v7742_v35 }
 0x5ec   : > { %v3684_v47 = vrot.slane %v3683_v22, 1  ;;  %v3885_v42 = vsel %vm1897_vm7, %v3678_v58, %v3884_v50  ;;  %v3692_v23 = vadd.f32 %v3691_v12, %v3690_v16  ;;  %v3696_v60 = vrot.slane %v3695_v49, 2  ;;  %v5817_v12 = vld [vmem:[%s8145_s10 + $0x70] sm:$0xff]  }
 0x5ed   : > { %v3716_v54 = vadd.f32 %v3715_v48, %v3714_v34  ;;  %v5643_v4 = vpop.f32.mrf.mxu1  ;;  %3911 = vst.msk [vmem:[%s7810_s28] sm:$0xff] %vm3622_vm10, %v3885_v42  ;;  %v3704_v57 = vadd.f32 %v3703_v31, %v3702_v28  ;;  %v3707_v41 = vsel %vm3622_vm10, %v3602_v36, 0.0  ;;  %v3728_v18 = vsel %vm3622_vm10, %v3605_v37, 0.0  ;;  %v5816_v28 = vld [vmem:[%s8145_s10 + $0x38] sm:$0xff]  }
 0x5ee   : > { %v3685_v61 = vadd.f32 %v3684_v47, %v3683_v22  ;;  %v3697_v38 = vadd.f32 %v3696_v60, %v3695_v49  ;;  %v3708_v15 = vrot.slane %v3707_v41, 4  ;;  %v3729_v26 = vrot.slane %v3728_v18, 4  ;;  %v5815_v22 = vld [vmem:[%s8145_s10 + $0x78] sm:$0xff]  }
 0x5ef   : > { %v3717_v44 = vrot.slane %v3716_v54, 2  ;;  %v3510_v53 = vpop.f32.mrf.mxu1  ;;  %v3705_v0 = vrot.slane %v3704_v57, 1  ;;  %v3604_v20 = vmul.f32 %v7742_v35, %v3500_v59  ;;  %v3607_v5 = vmul.f32 %v5643_v4, %v7742_v35  ;;  %5487 = vmatprep.subr.bf16.mxu0 %v5815_v22 }
 0x5f0   : > { %v3886_v46 = vsel %vm1885_vm1, %v3692_v23, %v3685_v61  ;;  %v3698_v40 = vrot.slane %v3697_v38, 1  ;;  %v3709_v27 = vadd.f32 %v3708_v15, %v3707_v41  ;;  %v3730_v14 = vadd.f32 %v3729_v26, %v3728_v18  ;;  %5488 = vmatpush3.bf16.msra.mxu0 %v5816_v28  ;;  %v7852_v41 = vpop.f32.mrf.mxu0  ;;  %v5819_v26 = vld [vmem:[%s8145_s10 + $0x68] sm:$0xff]  }
 0x5f1   : > { %v3718_v2 = vadd.f32 %v3717_v44, %v3716_v54  ;;  %v5646_v52 = vpop.f32.mrf.mxu1  ;;  %v3706_v3 = vadd.f32 %v3705_v0, %v3704_v57  ;;  %v3721_v43 = vsel %vm3622_vm10, %v3604_v20, 0.0  ;;  %v3742_v10 = vsel %vm3622_vm10, %v3607_v5, 0.0  ;;  %v5818_v57 = vld [vmem:[%s8145_s10 + $0x30] sm:$0xff]   ;;  %5489 = vmatprep.subr.bf16.mxu0 %v5817_v12 }
 0x5f2   : > { %v3606_v62 = vmul.f32 %v7742_v35, %v3510_v53  ;;  %v3699_v32 = vadd.f32 %v3698_v40, %v3697_v38  ;;  %v3710_v29 = vrot.slane %v3709_v27, 2  ;;  %v3731_v19 = vrot.slane %v3730_v14, 2 }
 0x5f3   : > { %v3719_v63 = vrot.slane %v3718_v2, 1  ;;  %v3520_v8 = vpop.f32.mrf.mxu1  ;;  %v3722_v6 = vrot.slane %v3721_v43, 4  ;;  %v3743_v51 = vrot.slane %v3742_v10, 4  ;;  %v3609_v58 = vmul.f32 %v5646_v52, %v7742_v35 }
 0x5f4   : > { %v3735_v45 = vsel %vm3622_vm10, %v3606_v62, 0.0  ;;  %v3887_v11 = vsel %vm1887_vm2, %v3699_v32, %v3886_v46  ;;  %v3711_v39 = vadd.f32 %v3710_v29, %v3709_v27  ;;  %v3732_v17 = vadd.f32 %v3731_v19, %v3730_v14  ;;  %5490 = vmatpush3.bf16.msra.mxu0 %v5818_v57  ;;  %v5820_v32 = vld [vmem:[%s8145_s10 + $0x28] sm:$0xff]  }
 0x5f5   : > { %v3720_v9 = vadd.f32 %v3719_v63, %v3718_v2  ;;  %v5649_v16 = vpop.f32.mrf.mxu1  ;;  %v3888_v34 = vsel %vm1889_vm3, %v3706_v3, %v3887_v11  ;;  %v3723_v33 = vadd.f32 %v3722_v6, %v3721_v43  ;;  %v3744_v25 = vadd.f32 %v3743_v51, %v3742_v10  ;;  %v7865_v63 = vpop.f32.mrf.mxu0  ;;  %5491 = vmatprep.subr.bf16.mxu0 %v5819_v26  ;;  %v5821_v51 = vld [vmem:[%s8145_s10 + $0x60] sm:$0xff]  }
 0x5f6   : > { %v3736_v55 = vrot.slane %v3735_v45, 4  ;;  %v3712_v49 = vrot.slane %v3711_v39, 1  ;;  %v3733_v48 = vrot.slane %v3732_v17, 1  ;;  %v3756_v36 = vsel %vm3622_vm10, %v3609_v58, 0.0 }
 0x5f7   : > { %v3608_v59 = vmul.f32 %v7742_v35, %v3520_v8  ;;  %v3530_v50 = vpop.f32.mrf.mxu1  ;;  %v3724_v47 = vrot.slane %v3723_v33, 2  ;;  %v3745_v31 = vrot.slane %v3744_v25, 2  ;;  %v3757_v42 = vrot.slane %v3756_v36, 4 }
 0x5f8   : > { %v3737_v37 = vadd.f32 %v3736_v55, %v3735_v45  ;;  %v3713_v23 = vadd.f32 %v3712_v49, %v3711_v39  ;;  %v3734_v60 = vadd.f32 %v3733_v48, %v3732_v17  ;;  %v3611_v4 = vmul.f32 %v5649_v16, %v7742_v35  ;;  %5492 = vmatpush3.bf16.msra.mxu0 %v5820_v32  ;;  %v5822_v49 = vld [vmem:[%s8145_s10 + $0x20] sm:$0xff]   ;;  %v7877_v48 = vpop.f32.mrf.mxu0 }
 0x5f9   : > { %v3749_v54 = vsel %vm3622_vm10, %v3608_v59, 0.0  ;;  %v5652_v61 = vpop.f32.mrf.mxu1  ;;  %v3725_v18 = vadd.f32 %v3724_v47, %v3723_v33  ;;  %v3746_v38 = vadd.f32 %v3745_v31, %v3744_v25  ;;  %v3758_v15 = vadd.f32 %v3757_v42, %v3756_v36  ;;  %5493 = vmatprep.subr.bf16.mxu0 %v5821_v51  ;;  %v5823_v31 = vld [vmem:[%s8145_s10 + $0x58] sm:$0xff]  }
 0x5fa   : > { %v3738_v44 = vrot.slane %v3737_v37, 2  ;;  %v3889_v53 = vsel %vm1891_vm4, %v3713_v23, %v3888_v34  ;;  %v3750_v46 = vrot.slane %v3749_v54, 4  ;;  %v3770_v0 = vsel %vm3622_vm10, %v3611_v4, 0.0 }
 0x5fb   : > { %v3610_v20 = vmul.f32 %v7742_v35, %v3530_v50  ;;  %v3540_v5 = vpop.f32.mrf.mxu1  ;;  %v3726_v40 = vrot.slane %v3725_v18, 1  ;;  %v3890_v2 = vsel %vm1893_vm5, %v3720_v9, %v3889_v53  ;;  %v3747_v27 = vrot.slane %v3746_v38, 1 }
 0x5fc   : > { %v3739_v14 = vadd.f32 %v3738_v44, %v3737_v37  ;;  %v3759_v52 = vrot.slane %v3758_v15, 2  ;;  %v3751_v3 = vadd.f32 %v3750_v46, %v3749_v54  ;;  %v3771_v43 = vrot.slane %v3770_v0, 4  ;;  %5494 = vmatpush3.bf16.msra.mxu0 %v5822_v49  ;;  %v5824_v46 = vld [vmem:[%s8145_s10 + $0x18] sm:$0xff]  }
 0x5fd   : > { %v3763_v10 = vsel %vm3622_vm10, %v3610_v20, 0.0  ;;  %v5655_v62 = vpop.f32.mrf.mxu1  ;;  %v3727_v29 = vadd.f32 %v3726_v40, %v3725_v18  ;;  %v3748_v19 = vadd.f32 %v3747_v27, %v3746_v38  ;;  %v3613_v9 = vmul.f32 %v5652_v61, %v7742_v35  ;;  %5495 = vmatprep.subr.bf16.mxu0 %v5823_v31 }
 0x5fe   : > { %v3740_v8 = vrot.slane %v3739_v14, 1  ;;  %v3764_v6 = vrot.slane %v3763_v10, 4  ;;  %v3760_v45 = vadd.f32 %v3759_v52, %v3758_v15  ;;  %v3752_v58 = vrot.slane %v3751_v3, 2 }
 0x5ff   : > { %v3772_v11 = vadd.f32 %v3771_v43, %v3770_v0  ;;  %v3550_v39 = vpop.f32.mrf.mxu1  ;;  %v3891_v17 = vsel %vm1895_vm6, %v3727_v29, %v3890_v2  ;;  %v3612_v33 = vmul.f32 %v7742_v35, %v3540_v5  ;;  %v3784_v50 = vsel %vm3622_vm10, %v3613_v9, 0.0  ;;  %v7893_v0 = vpop.f32.mrf.mxu0 }
 0x600   : > { %v3741_v16 = vadd.f32 %v3740_v8, %v3739_v14  ;;  %v3765_v34 = vadd.f32 %v3764_v6, %v3763_v10  ;;  %v3892_v25 = vsel %vm1897_vm7, %v3734_v60, %v3891_v17  ;;  %v3761_v55 = vrot.slane %v3760_v45, 1  ;;  %5496 = vmatpush3.bf16.msra.mxu0 %v5824_v46 }
 0x601   : > { %v3753_v22 = vadd.f32 %v3752_v58, %v3751_v3  ;;  %v3773_v28 = vrot.slane %v3772_v11, 2  ;;  %v5658_v12 = vpop.f32.mrf.mxu1  ;;  %3912 = vst.msk [vmem:[%s7810_s28 + $0x8] sm:$0xff] %vm3622_vm10, %v3892_v25  ;;  %v3777_v47 = vsel %vm3622_vm10, %v3612_v33, 0.0  ;;  %v3785_v60 = vrot.slane %v3784_v50, 4  ;;  %v7901_v58 = vpop.f32.mrf.mxu0 }
 0x602   : > { %v3893_v36 = vsel %vm1885_vm1, %v3748_v19, %v3741_v16  ;;  %v3766_v59 = vrot.slane %v3765_v34, 2  ;;  %v3762_v37 = vadd.f32 %v3761_v55, %v3760_v45  ;;  %v3778_v61 = vrot.slane %v3777_v47, 4 }
 0x603   : > { %v3754_v42 = vrot.slane %v3753_v22, 1  ;;  %v3774_v23 = vadd.f32 %v3773_v28, %v3772_v11  ;;  %v3560_v54 = vpop.f32.mrf.mxu1  ;;  %v3615_v57 = vmul.f32 %v5655_v62, %v7742_v35  ;;  %v3614_v18 = vmul.f32 %v7742_v35, %v3550_v39 }
 0x604   : > { %v3767_v4 = vadd.f32 %v3766_v59, %v3765_v34  ;;  %v3786_v15 = vadd.f32 %v3785_v60, %v3784_v50  ;;  %v3617_v26 = vmul.f32 %v5658_v12, %v7742_v35  ;;  %v3779_v5 = vadd.f32 %v3778_v61, %v3777_v47 }
 0x605   : > { %v3755_v38 = vadd.f32 %v3754_v42, %v3753_v22  ;;  %v3775_v44 = vrot.slane %v3774_v23, 1  ;;  %v5661_v53 = vpop.f32.mrf.mxu1  ;;  %v3798_v40 = vsel %vm3622_vm10, %v3615_v57, 0.0  ;;  %v3791_v2 = vsel %vm3622_vm10, %v3614_v18, 0.0 }
 0x606   : > { %v3768_v20 = vrot.slane %v3767_v4, 1  ;;  %v3787_v52 = vrot.slane %v3786_v15, 2  ;;  %v3799_v3 = vrot.slane %v3798_v40, 4  ;;  %v3780_v32 = vrot.slane %v3779_v5, 2 }
 0x607   : > { %v3894_v27 = vsel %vm1887_vm2, %v3755_v38, %v3893_v36  ;;  %v3776_v14 = vadd.f32 %v3775_v44, %v3774_v23  ;;  %v3570_v43 = vpop.f32.mrf.mxu1  ;;  %v3792_v29 = vrot.slane %v3791_v2, 4  ;;  %v3812_v6 = vsel %vm3622_vm10, %v3617_v26, 0.0 }
 0x608   : > { %v3769_v10 = vadd.f32 %v3768_v20, %v3767_v4  ;;  %v3895_v62 = vsel %vm1889_vm3, %v3762_v37, %v3894_v27  ;;  %v3788_v19 = vadd.f32 %v3787_v52, %v3786_v15  ;;  %v3800_v8 = vadd.f32 %v3799_v3, %v3798_v40  ;;  %v7908_v37 = vpop.f32.mrf.mxu0 }
 0x609   : > { %v3616_v51 = vmul.f32 %v7742_v35, %v3560_v54  ;;  %v5664_v45 = vpop.f32.mrf.mxu1  ;;  %v3781_v9 = vadd.f32 %v3780_v32, %v3779_v5  ;;  %v3793_v39 = vadd.f32 %v3792_v29, %v3791_v2  ;;  %v3813_v17 = vrot.slane %v3812_v6, 4 }
 0x60a   : > { %v3896_v11 = vsel %vm1891_vm4, %v3769_v10, %v3895_v62  ;;  %v3789_v16 = vrot.slane %v3788_v19, 1  ;;  %v3801_v33 = vrot.slane %v3800_v8, 2  ;;  %v3619_v50 = vmul.f32 %v5661_v53, %v7742_v35  ;;  %v7915_v2 = vpop.f32.mrf.mxu0 }
 0x60b   : > { %v3897_v34 = vsel %vm1893_vm5, %v3776_v14, %v3896_v11  ;;  %v3805_v25 = vsel %vm3622_vm10, %v3616_v51, 0.0  ;;  %v3580_v55 = vpop.f32.mrf.mxu1  ;;  %v3782_v22 = vrot.slane %v3781_v9, 1  ;;  %v3794_v28 = vrot.slane %v3793_v39, 2 }
 0x60c   : > { %v3814_v12 = vadd.f32 %v3813_v17, %v3812_v6  ;;  %v3806_v49 = vrot.slane %v3805_v25, 4  ;;  %v3790_v36 = vadd.f32 %v3789_v16, %v3788_v19  ;;  %v3802_v59 = vadd.f32 %v3801_v33, %v3800_v8  ;;  %v7923_v17 = vpop.f32.mrf.mxu0 }
 0x60d   : > { %v3618_v47 = vmul.f32 %v7742_v35, %v3570_v43  ;;  %v5703_v31 = vpop.f32.mrf.mxu1  ;;  %v3783_v42 = vadd.f32 %v3782_v22, %v3781_v9  ;;  %v3795_v23 = vadd.f32 %v3794_v28, %v3793_v39  ;;  %v3826_v61 = vsel %vm3622_vm10, %v3619_v50, 0.0 }
 0x60e   : > { %v3815_v60 = vrot.slane %v3814_v12, 2  ;;  %v3807_v54 = vadd.f32 %v3806_v49, %v3805_v25  ;;  %v3803_v4 = vrot.slane %v3802_v59, 1  ;;  %v3621_v18 = vmul.f32 %v5664_v45, %v7742_v35 }
 0x60f   : > { %v3819_v57 = vsel %vm3622_vm10, %v3618_v47, 0.0  ;;  %v4187_v38 = vpop.f32.mrf.mxu1  ;;  %v3898_v44 = vsel %vm1895_vm6, %v3783_v42, %v3897_v34  ;;  %v3796_v15 = vrot.slane %v3795_v23, 1  ;;  %v3827_v20 = vrot.slane %v3826_v61, 4 }
 0x610   : > { %v3816_v26 = vadd.f32 %v3815_v60, %v3814_v12  ;;  %v3808_v53 = vrot.slane %v3807_v54, 2  ;;  %v3899_v46 = vsel %vm1897_vm7, %v3790_v36, %v3898_v44  ;;  %v3820_v5 = vrot.slane %v3819_v57, 4 }
 0x611   : > { %v5704_v40 = vpop.f32.mrf.mxu1  ;;  %3913 = vst.msk [vmem:[%s7810_s28 + $0x10] sm:$0xff] %vm3622_vm10, %v3899_v46  ;;  %v3804_v27 = vadd.f32 %v3803_v4, %v3802_v59  ;;  %v3840_v52 = vsel %vm3622_vm10, %v3621_v18, 0.0  ;;  %v3828_v3 = vadd.f32 %v3827_v20, %v3826_v61  ;;  %v3620_v62 = vmul.f32 %v7742_v35, %v3580_v55 }
 0x612   : > { %v3809_v14 = vadd.f32 %v3808_v53, %v3807_v54  ;;  %v3821_v43 = vadd.f32 %v3820_v5, %v3819_v57  ;;  %v3841_v10 = vrot.slane %v3840_v52, 4  ;;  %v3797_v29 = vadd.f32 %v3796_v15, %v3795_v23  ;;  %v7929_v23 = vpop.f32.mrf.mxu0 }
 0x613   : > { %v4190_v32 = vpop.f32.mrf.mxu1  ;;  %v3817_v19 = vrot.slane %v3816_v26, 1  ;;  %v4316_v6 = vmul.f32 %v5703_v31, %v7784_v1  ;;  %v3829_v51 = vrot.slane %v3828_v3, 2  ;;  %v3833_v9 = vsel %vm3622_vm10, %v3620_v62, 0.0 }
 0x614   : > { %v3810_v8 = vrot.slane %v3809_v14, 1  ;;  %v3822_v45 = vrot.slane %v3821_v43, 2  ;;  %v3842_v11 = vadd.f32 %v3841_v10, %v3840_v52  ;;  %v3834_v34 = vrot.slane %v3833_v9, 4 }
 0x615   : > { %v5707_v39 = vpop.f32.mrf.mxu1  ;;  %v4358_v33 = vrot.slane %v4316_v6, 4  ;;  %v4314_v25 = vmul.f32 %v4187_v38, %v7796_v24  ;;  %v3830_v35 = vadd.f32 %v3829_v51, %v3828_v3  ;;  %v4317_v28 = vmul.f32 %v5704_v40, %v7804_v7 }
 0x616   : > { %v3811_v16 = vadd.f32 %v3810_v8, %v3809_v14  ;;  %v3823_v55 = vadd.f32 %v3822_v45, %v3821_v43  ;;  %v3843_v22 = vrot.slane %v3842_v11, 2  ;;  %v3900_v1 = vsel %vm1885_vm1, %v3804_v27, %v3797_v29 }
 0x617   : > { %v4203_v12 = vpop.f32.mrf.mxu1  ;;  %v3835_v49 = vadd.f32 %v3834_v34, %v3833_v9  ;;  %v4359_v36 = vadd.f32 %v4358_v33, %v4316_v6  ;;  %v4346_v59 = vrot.slane %v4314_v25, 4  ;;  %v3818_v60 = vadd.f32 %v3817_v19, %v3816_v26  ;;  %v7934_v26 = vpop.f32.mrf.mxu0 }
 0x618   : > { %v3901_v50 = vsel %vm1887_vm2, %v3811_v16, %v3900_v1  ;;  %v3824_v47 = vrot.slane %v3823_v55, 1  ;;  %v3844_v31 = vadd.f32 %v3843_v22, %v3842_v11  ;;  %v4364_v4 = vrot.slane %v4317_v28, 4 }
 0x619   : > { %v5708_v42 = vpop.f32.mrf.mxu1  ;;  %v3836_v24 = vrot.slane %v3835_v49, 2  ;;  %v4347_v54 = vadd.f32 %v4346_v59, %v4314_v25  ;;  %v3831_v61 = vrot.slane %v3830_v35, 1  ;;  %v4360_v7 = vrot.slane %v4359_v36, 2  ;;  %v7939_v11 = vpop.f32.mrf.mxu0 }
 0x61a   : > { %v3825_v57 = vadd.f32 %v3824_v47, %v3823_v55  ;;  %v4315_v18 = vmul.f32 %v4190_v32, %v7818_v21  ;;  %v3902_v44 = vsel %vm1889_vm3, %v3818_v60, %v3901_v50  ;;  %v4365_v53 = vadd.f32 %v4364_v4, %v4317_v28 }
 0x61b   : > { %v4206_v38 = vpop.f32.mrf.mxu1  ;;  %v3837_v15 = vadd.f32 %v3836_v24, %v3835_v49  ;;  %v3845_v46 = vrot.slane %v3844_v31, 1  ;;  %v4348_v20 = vrot.slane %v4347_v54, 2  ;;  %v4320_v40 = vmul.f32 %v5707_v39, %v7825_v56  ;;  %v7947_v49 = vpop.f32.mrf.mxu0 }
 0x61c   : > { %v4352_v5 = vrot.slane %v4315_v18, 4  ;;  %v3903_v14 = vsel %vm1891_vm4, %v3825_v57, %v3902_v44  ;;  %v3832_v3 = vadd.f32 %v3831_v61, %v3830_v35  ;;  %v4361_v43 = vadd.f32 %v4360_v7, %v4359_v36 }
 0x61d   : > { %v5711_v27 = vpop.f32.mrf.mxu1  ;;  %v3838_v52 = vrot.slane %v3837_v15, 1  ;;  %v4382_v21 = vrot.slane %v4320_v40, 4  ;;  %v4366_v29 = vrot.slane %v4365_v53, 2  ;;  %v4318_v19 = vmul.f32 %v4203_v12, %v7833_v30  ;;  %v7951_v7 = vpop.f32.mrf.mxu0 }
 0x61e   : > { %v4353_v10 = vadd.f32 %v4352_v5, %v4315_v18  ;;  %v3846_v8 = vadd.f32 %v3845_v46, %v3844_v31  ;;  %v3904_v6 = vsel %vm1893_vm5, %v3832_v3, %v3903_v14  ;;  %v4349_v56 = vadd.f32 %v4348_v20, %v4347_v54 }
 0x61f   : > { %v4219_v62 = vpop.f32.mrf.mxu1  ;;  %v3839_v32 = vadd.f32 %v3838_v52, %v3837_v15  ;;  %v4383_v39 = vadd.f32 %v4382_v21, %v4320_v40  ;;  %v4321_v16 = vmul.f32 %v5708_v42, %v7852_v41  ;;  %v4362_v33 = vrot.slane %v4361_v43, 1  ;;  %v7954_v3 = vpop.f32.mrf.mxu0 }
 0x620   : > { %v4354_v51 = vrot.slane %v4353_v10, 2  ;;  %v4367_v30 = vadd.f32 %v4366_v29, %v4365_v53  ;;  %v4370_v55 = vrot.slane %v4318_v19, 4  ;;  %v4350_v22 = vrot.slane %v4349_v56, 1 }
 0x621   : > { %v5712_v45 = vpop.f32.mrf.mxu1  ;;  %v3905_v9 = vsel %vm1895_vm6, %v3839_v32, %v3904_v6  ;;  %v4319_v12 = vmul.f32 %v4206_v38, %v7865_v63  ;;  %v4384_v36 = vrot.slane %v4383_v39, 2  ;;  %v4388_v59 = vrot.slane %v4321_v16, 4 }
 0x622   : > { %v3906_v34 = vsel %vm1897_vm7, %v3846_v8, %v3905_v9  ;;  %v4355_v25 = vadd.f32 %v4354_v51, %v4353_v10  ;;  %v4324_v41 = vmul.f32 %v5711_v27, %v7877_v48  ;;  %v4363_v50 = vadd.f32 %v4362_v33, %v4361_v43  ;;  %v7958_v33 = vpop.f32.mrf.mxu0 }
 0x623   : > { %v4222_v35 = vpop.f32.mrf.mxu1  ;;  %3914 = vst.msk [vmem:[%s7810_s28 + $0x18] sm:$0xff] %vm3622_vm10, %v3906_v34  ;;  %v4376_v47 = vrot.slane %v4319_v12, 4  ;;  %v4368_v42 = vrot.slane %v4367_v30, 1  ;;  %v4371_v60 = vadd.f32 %v4370_v55, %v4318_v19  ;;  %v4322_v54 = vmul.f32 %v4219_v62, %v7893_v0  ;;  %s6032_s28 = scalar_lea.vmem %s8091_s26, 512 }
 0x624   : > { %v4356_v28 = vrot.slane %v4355_v25, 1  ;;  %v4406_v24 = vrot.slane %v4324_v41, 4  ;;  %v4351_v4 = vadd.f32 %v4350_v22, %v4349_v56  ;;  %v4385_v63 = vadd.f32 %v4384_v36, %v4383_v39  ;;  %p6033_p12 = scmp.ne.s32.totalorder %s8091_s26, %s6032_s28  ;;  %p6040_p2 = scmp.lt.s32.totalorder %s6038_s3, %s6032_s28 }
 0x625   : > { %v5715_v1 = vpop.f32.mrf.mxu1  ;;  %v4389_v18 = vadd.f32 %v4388_v59, %v4321_v16  ;;  %v4394_v44 = vrot.slane %v4322_v54, 4  ;;  %v4540_v15 = vpack.c.bf16 %v4363_v50, %v4363_v50  ;;  %v4377_v53 = vadd.f32 %v4376_v47, %v4319_v12 }
 0x626   : > { %v4357_v61 = vadd.f32 %v4356_v28, %v4355_v25  ;;  %v4407_v38 = vadd.f32 %v4406_v24, %v4324_v41  ;;  %v4325_v48 = vmul.f32 %v5712_v45, %v7901_v58  ;;  %v4369_v20 = vadd.f32 %v4368_v42, %v4367_v30  ;;  %p6034_p13 = pnand %p6033_p12, %p6242_p5  ;;  %p6041_p3 = por %p6040_p2, %p6039_p1 }
 0x627   : > { %v4235_v31 = vpop.f32.mrf.mxu1  ;;  %v4372_v5 = vrot.slane %v4371_v60, 2  ;;  %v4395_v27 = vadd.f32 %v4394_v44, %v4322_v54  ;;  %v4538_v43 = vpack.c.bf16 %v4351_v4, %v4351_v4  ;;  %v4386_v10 = vrot.slane %v4385_v63, 1 }
 0x628   : > { %v4408_v40 = vrot.slane %v4407_v38, 2  ;;  %v4539_v14 = vpack.c.bf16 %v4357_v61, %v4357_v61  ;;  %v4412_v0 = vrot.slane %v4325_v48, 4  ;;  %v4390_v21 = vrot.slane %v4389_v18, 2  ;;  %p6035_p0 = pneg %p6034_p13 }
 0x629   : > { %v5716_v57 = vpop.f32.mrf.mxu1  ;;  %v4378_v62 = vrot.slane %v4377_v53, 2  ;;  %v4396_v29 = vrot.slane %v4395_v27, 2  ;;  %v4632_v6 = vunpack.c.l.b16 %v4540_v15  ;;  %v4541_v58 = vpack.c.bf16 %v4369_v20, %v4369_v20 }
 0x62a   : > { %v4409_v32 = vadd.f32 %v4408_v40, %v4407_v38  ;;  %v4413_v19 = vadd.f32 %v4412_v0, %v4325_v48  ;;  %v4373_v56 = vadd.f32 %v4372_v5, %v4371_v60  ;;  %v4323_v51 = vmul.f32 %v4222_v35, %v7908_v37  ;;  %p6042_p4 = pnand %p6041_p3, %p6035_p0 }
 0x62b   : > { %v4238_v46 = vpop.f32.mrf.mxu1  ;;  %v4631_v45 = vunpack.c.l.b16 %v4539_v14  ;;  %v4397_v9 = vadd.f32 %v4396_v29, %v4395_v27  ;;  %v4328_v16 = vmul.f32 %v5715_v1, %v7915_v2  ;;  %v4630_v25 = vunpack.c.l.b16 %v4538_v43 }
 0x62c   : > { %v4414_v39 = vrot.slane %v4413_v19, 2  ;;  %v7960_v30 = vadd.f32 %v4390_v21, %v4389_v18  ;;  %v4400_v55 = vrot.slane %v4323_v51, 4  ;;  %v4326_v22 = vmul.f32 %v4235_v31, %v7923_v17  ;;  %v7973_v17 = vpop.f32.mrf.mxu0 }
 0x62d   : > { %v5719_v52 = vpop.f32.mrf.mxu1  ;;  %v7963_v28 = vadd.f32 %v4386_v10, %v4385_v63  ;;  %v4379_v12 = vadd.f32 %v4378_v62, %v4377_v53  ;;  %v4410_v36 = vrot.slane %v4409_v32, 1  ;;  %v4430_v59 = vrot.slane %v4328_v16, 4 }
 0x62e   : > { %v4398_v35 = vrot.slane %v4397_v9, 1  ;;  %v4401_v41 = vadd.f32 %v4400_v55, %v4323_v51  ;;  %v4418_v50 = vrot.slane %v4326_v22, 4  ;;  %v4329_v2 = vmul.f32 %v5716_v57, %v7929_v23  ;;  %v7984_v0 = vpop.f32.mrf.mxu0 }
 0x62f   : > { %v4251_v8 = vpop.f32.mrf.mxu1  ;;  %v7968_v1 = vunpack.c.l.b16 %v4541_v58  ;;  %v4662_v47 = vsel %vm1885_vm1, %v4631_v45, %v4630_v25  ;;  %v4374_v42 = vrot.slane %v4373_v56, 1  ;;  %v4415_v60 = vadd.f32 %v4414_v39, %v4413_v19 }
 0x630   : > { %v4402_v31 = vrot.slane %v4401_v41, 2  ;;  %v4431_v54 = vadd.f32 %v4430_v59, %v4328_v16  ;;  %v4419_v4 = vadd.f32 %v4418_v50, %v4326_v22  ;;  %v4436_v61 = vrot.slane %v4329_v2, 4  ;;  %v7991_v25 = vpop.f32.mrf.mxu0 }
 0x631   : > { %v5720_v34 = vpop.f32.mrf.mxu1  ;;  %v4544_v63 = vpack.c.bf16 %v7963_v28, %v7963_v28  ;;  %v4392_v18 = vrot.slane %v7960_v30, 1  ;;  %v4380_v23 = vrot.slane %v4379_v12, 1  ;;  %v4411_v57 = vadd.f32 %v4410_v36, %v4409_v32 }
 0x632   : > { %v4399_v44 = vadd.f32 %v4398_v35, %v4397_v9  ;;  %v4403_v15 = vadd.f32 %v4402_v31, %v4401_v41  ;;  %v4420_v53 = vrot.slane %v4419_v4, 2  ;;  %v4437_v48 = vadd.f32 %v4436_v61, %v4329_v2 }
 0x633   : > { %v7965_v37 = vpop.f32.mrf.mxu1  ;;  %v4663_v20 = vsel %vm1887_vm2, %v4632_v6, %v4662_v47  ;;  %v4375_v5 = vadd.f32 %v4374_v42, %v4373_v56  ;;  %v4416_v40 = vrot.slane %v4415_v60, 1  ;;  %v4327_v27 = vmul.f32 %v4238_v46, %v7934_v26 }
 0x634   : > { %v4404_v43 = vrot.slane %v4403_v15, 1  ;;  %v4432_v10 = vrot.slane %v4431_v54, 2  ;;  %v4421_v21 = vadd.f32 %v4420_v53, %v4419_v4  ;;  %v4332_v62 = vmul.f32 %v5719_v52, %v7939_v11 }
 0x635   : > { %v7971_v24 = vpop.f32.mrf.mxu1  ;;  %v4381_v32 = vadd.f32 %v4380_v23, %v4379_v12  ;;  %v4438_v29 = vrot.slane %v4437_v48, 2  ;;  %v4424_v19 = vrot.slane %v4327_v27, 4  ;;  %v4330_v58 = vmul.f32 %v4251_v8, %v7947_v49 }
 0x636   : > { %v4548_v51 = vpack.c.bf16 %v4411_v57, %v4411_v57  ;;  %v4546_v6 = vpack.c.bf16 %v4399_v44, %v4399_v44  ;;  %v4405_v56 = vadd.f32 %v4404_v43, %v4403_v15  ;;  %v4454_v45 = vrot.slane %v4332_v62, 4 }
 0x637   : > { %v7978_v38 = vpop.f32.mrf.mxu1  ;;  %v4422_v26 = vrot.slane %v4421_v21, 1  ;;  %v4425_v46 = vadd.f32 %v4424_v19, %v4327_v27  ;;  %v4442_v39 = vrot.slane %v4330_v58, 4  ;;  %v4333_v16 = vmul.f32 %v5720_v34, %v7951_v7  ;;  %v5693_v7 = vpop.f32.mrf.mxu0 }
 0x638   : > { %v4417_v55 = vadd.f32 %v4416_v40, %v4415_v60  ;;  %v4547_v11 = vpack.c.bf16 %v4405_v56, %v4405_v56  ;;  %v4433_v52 = vadd.f32 %v4432_v10, %v4431_v54  ;;  %v4455_v22 = vadd.f32 %v4454_v45, %v4332_v62 }
 0x639   : > { %v7982_v14 = vpop.f32.mrf.mxu1  ;;  %v4439_v12 = vadd.f32 %v4438_v29, %v4437_v48  ;;  %v4426_v36 = vrot.slane %v4425_v46, 2  ;;  %v4443_v49 = vadd.f32 %v4442_v39, %v4330_v58  ;;  %v4460_v8 = vrot.slane %v4333_v16, 4 }
 0x63a   : > { %v4542_v59 = vpack.c.bf16 %v4375_v5, %v4375_v5  ;;  %v4638_v35 = vunpack.c.l.b16 %v4546_v6  ;;  %v4639_v41 = vunpack.c.l.b16 %v4547_v11  ;;  %v4456_v50 = vrot.slane %v4455_v22, 2 }
 0x63b   : > { %v7988_v9 = vpop.f32.mrf.mxu1  ;;  %v4423_v47 = vadd.f32 %v4422_v26, %v4421_v21  ;;  %v4427_v42 = vadd.f32 %v4426_v36, %v4425_v46  ;;  %v4444_v31 = vrot.slane %v4443_v49, 2  ;;  %v4461_v4 = vadd.f32 %v4460_v8, %v4333_v16 }
 0x63c   : > { %v4543_v34 = vpack.c.bf16 %v4381_v32, %v4381_v32  ;;  %v4640_v61 = vunpack.c.l.b16 %v4548_v51  ;;  %v4549_v60 = vpack.c.bf16 %v4417_v55, %v4417_v55  ;;  %v4669_v54 = vsel %vm1885_vm1, %v4639_v41, %v4638_v35  ;;  %v4114_v32 = vpop.f32.mrf.mxu0 }
 0x63d   : > { %v5727_v2 = vpop.f32.mrf.mxu1  ;;  %v4434_v23 = vrot.slane %v4433_v52, 1  ;;  %v4440_v57 = vrot.slane %v4439_v12, 1  ;;  %v4428_v44 = vrot.slane %v4427_v42, 1  ;;  %v4462_v15 = vrot.slane %v4461_v4, 2 }
 0x63e   : > { %v4664_v53 = vsel %vm1889_vm3, %v7968_v1, %v4663_v20  ;;  %v7997_v48 = vadd.f32 %v4392_v18, %v7960_v30  ;;  %v4457_v5 = vadd.f32 %v4456_v50, %v4455_v22  ;;  %v4331_v40 = vmul.f32 %v7965_v37, %v7954_v3 }
 0x63f   : > { %v4283_v27 = vpop.f32.mrf.mxu1  ;;  %v4634_v43 = vunpack.c.l.b16 %v4542_v59  ;;  %v4670_v10 = vsel %vm1887_vm2, %v4640_v61, %v4669_v54  ;;  %v4550_v21 = vpack.c.bf16 %v4423_v47, %v4423_v47  ;;  %v4445_v62 = vadd.f32 %v4444_v31, %v4443_v49 }
 0x640   : > { %v4429_v29 = vadd.f32 %v4428_v44, %v4427_v42  ;;  %v4463_v19 = vadd.f32 %v4462_v15, %v4461_v4  ;;  %v4448_v58 = vrot.slane %v4331_v40, 4  ;;  %v4334_v1 = vmul.f32 %v7978_v38, %v7973_v17  ;;  %v5694_v38 = vpop.f32.mrf.mxu0 }
 0x641   : > { %v4635_v20 = vunpack.c.l.b16 %v4543_v34  ;;  %v4641_v30 = vunpack.c.l.b16 %v4549_v60  ;;  %v4435_v18 = vadd.f32 %v4434_v23, %v4433_v52  ;;  %v8004_v51 = vadd.f32 %v4440_v57, %v4439_v12  ;;  %v5728_v45 = vpop.f32.mrf.mxu1 }
 0x642   : > { %v4458_v6 = vrot.slane %v4457_v5, 1  ;;  %v4449_v3 = vadd.f32 %v4448_v58, %v4331_v40  ;;  %v4336_v37 = vmul.f32 %v7971_v24, %v7958_v33  ;;  %v4466_v56 = vrot.slane %v4334_v1, 4  ;;  %v4117_v47 = vpop.f32.mrf.mxu0 }
 0x643   : > { %v4636_v26 = vunpack.c.l.b16 %v4544_v63  ;;  %v4665_v46 = vsel %vm1891_vm4, %v4634_v43, %v4664_v53  ;;  %v4642_v39 = vunpack.c.l.b16 %v4550_v21  ;;  %v4671_v17 = vsel %vm1889_vm3, %v4641_v30, %v4670_v10  ;;  %v4286_v8 = vpop.f32.mrf.mxu1 }
 0x644   : > { %v4551_v16 = vpack.c.bf16 %v4429_v29, %v4429_v29  ;;  %v4446_v55 = vrot.slane %v4445_v62, 1  ;;  %v4464_v11 = vrot.slane %v4463_v19, 1  ;;  %v4450_v52 = vrot.slane %v4449_v3, 2 }
 0x645   : > { %v4545_v22 = vpack.c.bf16 %v7997_v48, %v7997_v48  ;;  %v4666_v33 = vsel %vm1893_vm5, %v4635_v20, %v4665_v46  ;;  %v4552_v24 = vpack.c.bf16 %v4435_v18, %v4435_v18  ;;  %v4337_v28 = vmul.f32 %v7982_v14, %v7984_v0  ;;  %v5731_v15 = vpop.f32.mrf.mxu1 }
 0x646   : > { %v4553_v63 = vpack.c.bf16 %v8004_v51, %v8004_v51  ;;  %v4459_v12 = vadd.f32 %v4458_v6, %v4457_v5  ;;  %v4478_v36 = vrot.slane %v4336_v37, 4  ;;  %v4467_v49 = vadd.f32 %v4466_v56, %v4334_v1 }
 0x647   : > { %v4672_v59 = vsel %vm1891_vm4, %v4642_v39, %v4671_v17  ;;  %v4451_v35 = vadd.f32 %v4450_v52, %v4449_v3  ;;  %v4335_v41 = vmul.f32 %v7988_v9, %v7991_v25  ;;  %v4340_v50 = vmul.f32 %v5727_v2, %v5693_v7  ;;  %v5697_v9 = vpop.f32.mrf.mxu0  ;;  %v4299_v1 = vpop.f32.mrf.mxu1 }
 0x648   : > { %v4643_v42 = vunpack.c.l.b16 %v4551_v16  ;;  %v4447_v31 = vadd.f32 %v4446_v55, %v4445_v62  ;;  %v4465_v4 = vadd.f32 %v4464_v11, %v4463_v19  ;;  %v4338_v34 = vmul.f32 %v4283_v27, %v4114_v32 }
 0x649   : > { %v4484_v14 = vrot.slane %v4337_v28, 4  ;;  %v4472_v0 = vrot.slane %v4335_v41, 4  ;;  %v4502_v61 = vrot.slane %v4340_v50, 4  ;;  %v4341_v60 = vmul.f32 %v5728_v45, %v5694_v38  ;;  %v4130_v6 = vpop.f32.mrf.mxu0 }
 0x64a   : > { %v4556_v54 = vpack.c.bf16 %v4459_v12, %v4459_v12  ;;  %v4479_v23 = vadd.f32 %v4478_v36, %v4336_v37  ;;  %v4468_v57 = vrot.slane %v4467_v49, 2  ;;  %v4490_v44 = vrot.slane %v4338_v34, 4 }
 0x64b   : > { %v4452_v53 = vrot.slane %v4451_v35, 1  ;;  %v4473_v48 = vadd.f32 %v4472_v0, %v4335_v41  ;;  %v4503_v5 = vadd.f32 %v4502_v61, %v4340_v50  ;;  %v4508_v40 = vrot.slane %v4341_v60, 4 }
 0x64c   : > { %v4673_v25 = vsel %vm1893_vm5, %v4643_v42, %v4672_v59  ;;  %v4554_v2 = vpack.c.bf16 %v4447_v31, %v4447_v31  ;;  %v4557_v7 = vpack.c.bf16 %v4465_v4, %v4465_v4  ;;  %v4491_v43 = vadd.f32 %v4490_v44, %v4338_v34 }
 0x64d   : > { %v4485_v27 = vadd.f32 %v4484_v14, %v4337_v28  ;;  %v4474_v10 = vrot.slane %v4473_v48, 2  ;;  %v4504_v21 = vrot.slane %v4503_v5, 2  ;;  %v4509_v62 = vadd.f32 %v4508_v40, %v4341_v60 }
 0x64e   : > { %v4644_v32 = vunpack.c.l.b16 %v4552_v24  ;;  %v4480_v29 = vrot.slane %v4479_v23, 2  ;;  %v4469_v19 = vadd.f32 %v4468_v57, %v4467_v49  ;;  %v4492_v58 = vrot.slane %v4491_v43, 2 }
 0x64f   : > { %v4637_v20 = vunpack.c.l.b16 %v4545_v22  ;;  %v4667_v30 = vsel %vm1895_vm6, %v4636_v26, %v4666_v33  ;;  %v4645_v18 = vunpack.c.l.b16 %v4553_v63  ;;  %v4453_v51 = vadd.f32 %v4452_v53, %v4451_v35  ;;  %v5732_v22 = vpop.f32.mrf.mxu1  ;;  %v5698_v63 = vpop.f32.mrf.mxu0 }
 0x650   : > { %v4674_v3 = vsel %vm1895_vm6, %v4644_v32, %v4673_v25  ;;  %v8026_v37 = vunpack.c.l.b16 %v4556_v54  ;;  %v4475_v56 = vadd.f32 %v4474_v10, %v4473_v48  ;;  %v4505_v45 = vadd.f32 %v4504_v21, %v4503_v5 }
 0x651   : > { %v4646_v46 = vunpack.c.l.b16 %v4554_v2  ;;  %v8028_v39 = vunpack.c.l.b16 %v4557_v7  ;;  %v4486_v17 = vrot.slane %v4485_v27, 2  ;;  %v4510_v38 = vrot.slane %v4509_v62, 2  ;;  %v4133_v54 = vpop.f32.mrf.mxu0 }
 0x652   : > { %v4481_v16 = vadd.f32 %v4480_v29, %v4479_v23  ;;  %v4470_v55 = vrot.slane %v4469_v19, 1  ;;  %v4493_v11 = vadd.f32 %v4492_v58, %v4491_v43  ;;  %v4339_v52 = vmul.f32 %v4286_v8, %v4117_v47  ;;  %v4302_v47 = vpop.f32.mrf.mxu1 }
 0x653   : > { %v4555_v26 = vpack.c.bf16 %v4453_v51, %v4453_v51  ;;  %v4668_v33 = vsel %vm1897_vm7, %v4637_v20, %v4667_v30  ;;  %v4675_v24 = vsel %vm1897_vm7, %v4645_v18, %v4674_v3  ;;  %v4344_v28 = vmul.f32 %v5731_v15, %v5697_v9 }
 0x654   : > { %v4476_v12 = vrot.slane %v4475_v56, 1  ;;  %v4506_v36 = vrot.slane %v4505_v45, 1  ;;  %v4496_v49 = vrot.slane %v4339_v52, 4  ;;  %v4690_v59 = vpack.c.b16 %v4675_v24, %v4668_v33 }
 0x655   : > { %v4487_v35 = vadd.f32 %v4486_v17, %v4485_v27  ;;  %v4511_v41 = vadd.f32 %v4510_v38, %v4509_v62  ;;  %v4526_v50 = vrot.slane %v4344_v28, 4  ;;  %v4342_v42 = vmul.f32 %v4299_v1, %v4130_v6 }
 0x656   : > { %v4482_v31 = vrot.slane %v4481_v16, 1  ;;  %v4494_v4 = vrot.slane %v4493_v11, 1  ;;  %v4497_v34 = vadd.f32 %v4496_v49, %v4339_v52  ;;  %4807 = vmatmul.mubr.bf16.vlgmr.msra.gmra.mxu1 %v4690_v59  ;;  %v4345_v8 = vmul.f32 %v5732_v22, %v5698_v63 }
 0x657   : > { %v4647_v14 = vunpack.c.l.b16 %v4555_v26  ;;  %v4471_v0 = vadd.f32 %v4470_v55, %v4469_v19  ;;  %v4527_v61 = vadd.f32 %v4526_v50, %v4344_v28  ;;  %v4514_v60 = vrot.slane %v4342_v42, 4  ;;  %4816 = vmatprep.mubr.bf16.mxu1 %v8302_v13 }
 0x658   : > { %v4477_v23 = vadd.f32 %v4476_v12, %v4475_v56  ;;  %v4507_v57 = vadd.f32 %v4506_v36, %v4505_v45  ;;  %v4498_v44 = vrot.slane %v4497_v34, 2  ;;  %v4532_v15 = vrot.slane %v4345_v8, 4 }
 0x659   : > { %v4512_v53 = vrot.slane %v4511_v41, 1  ;;  %v4528_v48 = vrot.slane %v4527_v61, 2  ;;  %v4515_v5 = vadd.f32 %v4514_v60, %v4342_v42  ;;  %v4343_v40 = vmul.f32 %v4302_v47, %v4133_v54 }
 0x65a   : > { %v4488_v9 = vrot.slane %v4487_v35, 1  ;;  %v4495_v25 = vadd.f32 %v4494_v4, %v4493_v11  ;;  %v4499_v2 = vadd.f32 %v4498_v44, %v4497_v34  ;;  %v4533_v7 = vadd.f32 %v4532_v15, %v4345_v8 }
 0x65b   : > { %v4558_v43 = vpack.c.bf16 %v4471_v0, %v4471_v0  ;;  %v4529_v27 = vadd.f32 %v4528_v48, %v4527_v61  ;;  %v4516_v10 = vrot.slane %v4515_v5, 2  ;;  %v4520_v21 = vrot.slane %v4343_v40, 4 }
 0x65c   : > { %v4676_v62 = vsel %vm1885_vm1, %v4647_v14, %v4646_v46  ;;  %v4559_v13 = vpack.c.bf16 %v4477_v23, %v4477_v23  ;;  %v4500_v32 = vrot.slane %v4499_v2, 1  ;;  %v4534_v29 = vrot.slane %v4533_v7, 2 }
 0x65d   : > { %v4564_v19 = vpack.c.bf16 %v4507_v57, %v4507_v57  ;;  %v4513_v58 = vadd.f32 %v4512_v53, %v4511_v41  ;;  %v4517_v1 = vadd.f32 %v4516_v10, %v4515_v5  ;;  %v4521_v20 = vadd.f32 %v4520_v21, %v4343_v40  ;;  %v5830_v10 = vld [vmem:[%s8145_s10] sm:$0xff]  }
 0x65e   : > { %v4562_v30 = vpack.c.bf16 %v4495_v25, %v4495_v25  ;;  %v4501_v18 = vadd.f32 %v4500_v32, %v4499_v2  ;;  %v4530_v51 = vrot.slane %v4529_v27, 1  ;;  %v4535_v6 = vadd.f32 %v4534_v29, %v4533_v7  ;;  %v5825_v25 = vld [vmem:[%s8145_s10 + $0x50] sm:$0xff]   ;;  %v5827_v7 = vld [vmem:[%s8145_s10 + $0x48] sm:$0xff]   ;;  %v4586_v21 = vld [vmem:[%s8144_s9] sm:$0x3] }
 0x65f   : > { %v4483_v3 = vadd.f32 %v4482_v31, %v4481_v16  ;;  %v4489_v56 = vadd.f32 %v4488_v9, %v4487_v35  ;;  %v4518_v45 = vrot.slane %v4517_v1, 1  ;;  %v4522_v17 = vrot.slane %v4521_v20, 2  ;;  %v5826_v2 = vld [vmem:[%s8145_s10 + $0x10] sm:$0xff]   ;;  %5497 = vmatprep.subr.bf16.mxu0 %v5825_v25 }
 0x660   : > { %v4677_v38 = vsel %vm1887_vm2, %v8026_v37, %v4676_v62  ;;  %v4650_v55 = vunpack.c.l.b16 %v4558_v43  ;;  %v4563_v46 = vpack.c.bf16 %v4501_v18, %v4501_v18  ;;  %v4536_v11 = vrot.slane %v4535_v6, 1  ;;  %5498 = vmatpush3.bf16.msra.mxu0 %v5826_v2  ;;  %v5828_v43 = vld [vmem:[%s8145_s10 + $0x8] sm:$0xff]  }
 0x661   : > { %v4651_v52 = vunpack.c.l.b16 %v4559_v13  ;;  %v4565_v22 = vpack.c.bf16 %v4513_v58, %v4513_v58  ;;  %v4519_v26 = vadd.f32 %v4518_v45, %v4517_v1  ;;  %v4523_v33 = vadd.f32 %v4522_v17, %v4521_v20  ;;  %5499 = vmatprep.subr.bf16.mxu0 %v5827_v7  ;;  %v8304_v13 = vld [vmem:[#allocation23_spill] sm:$0xff] }
 0x662   : > { %v4656_v24 = vunpack.c.l.b16 %v4564_v19  ;;  %v4654_v28 = vunpack.c.l.b16 %v4562_v30  ;;  %v4655_v63 = vunpack.c.l.b16 %v4563_v46  ;;  %v4531_v12 = vadd.f32 %v4530_v51, %v4529_v27  ;;  %v5829_v27 = vld [vmem:[%s8145_s10 + $0x40] sm:$0xff]   ;;  %v8306_v19 = vld [vmem:[#allocation26_spill] sm:$0xff] }
 0x663   : > { %v4566_v36 = vpack.c.bf16 %v4519_v26, %v4519_v26  ;;  %v4537_v49 = vadd.f32 %v4536_v11, %v4535_v6  ;;  %v4524_v16 = vrot.slane %v4523_v33, 1  ;;  %v4678_v59 = vsel %vm1889_vm3, %v8028_v39, %v4677_v38 }
 0x664   : > { %v4560_v35 = vpack.c.bf16 %v4483_v3, %v4483_v3  ;;  %v4683_v37 = vsel %vm1885_vm1, %v4655_v63, %v4654_v28  ;;  %v4657_v41 = vunpack.c.l.b16 %v4565_v22  ;;  %v4561_v31 = vpack.c.bf16 %v4489_v56, %v4489_v56  ;;  %5500 = vmatpush3.bf16.msra.mxu0 %v5828_v43 }
 0x665   : > { %v4684_v50 = vsel %vm1887_vm2, %v4656_v24, %v4683_v37  ;;  %v4525_v42 = vadd.f32 %v4524_v16, %v4523_v33  ;;  %v4568_v4 = vpack.c.bf16 %v4531_v12, %v4531_v12  ;;  %v4658_v34 = vunpack.c.l.b16 %v4566_v36  ;;  %5501 = vmatprep.subr.bf16.mxu0 %v5829_v27 }
 0x666   : > { %v4679_v8 = vsel %vm1891_vm4, %v4650_v55, %v4678_v59  ;;  %v4569_v47 = vpack.c.bf16 %v4537_v49, %v4537_v49  ;;  %v4685_v61 = vsel %vm1889_vm3, %v4657_v41, %v4684_v50  ;;  %v4652_v60 = vunpack.c.l.b16 %v4560_v35  ;;  %v5337_v50 = vld [vmem:[%s8146_s11] ss:$0 sm:$0xff] }
 0x667   : > { %v4567_v14 = vpack.c.bf16 %v4525_v42, %v4525_v42  ;;  %v4680_v0 = vsel %vm1893_vm5, %v4651_v52, %v4679_v8  ;;  %v4660_v54 = vunpack.c.l.b16 %v4568_v4  ;;  %v4686_v57 = vsel %vm1891_vm4, %v4658_v34, %v4685_v61 }
 0x668   : > { %v4681_v23 = vsel %vm1895_vm6, %v4652_v60, %v4680_v0  ;;  %v4653_v44 = vunpack.c.l.b16 %v4561_v31  ;;  %v4661_v15 = vunpack.c.l.b16 %v4569_v47  ;;  %5502 = vmatpush3.bf16.msra.mxu0 %v5830_v10  ;;  %v8305_v32 = vsub.s32 1, %v8304_v13 }
 0x669   : > { %v4659_v39 = vunpack.c.l.b16 %v4567_v14  ;;  %v4591_v58 = vrot.slane %v4586_v21, %v8306_v19 }
 0x66a   : > { %v4682_v5 = vsel %vm1897_vm7, %v4653_v44, %v4681_v23  ;;  %v4595_v29 = vrot.slane %v4586_v21, %v8305_v32 }
 0x66b   : > { %v4687_v53 = vsel %vm1893_vm5, %v4659_v39, %v4686_v57 }
 0x66c   : > { %v4688_v48 = vsel %vm1895_vm6, %v4660_v54, %v4687_v53 }
 0x66d   : > { %v4689_v40 = vsel %vm1897_vm7, %v4661_v15, %v4688_v48 }
 0x66e   : > { %v4691_v9 = vpack.c.b16 %v4689_v40, %v4682_v5 }
 0x670   : > { %4817 = vmatmul.mubr.bf16.gmra.mxu1 %v4691_v9 }
 0x716   : > { %v4808_v62 = vpop.f32.mrf.mxu1 }
 0x717   : > { %v4809_v51 = vadd.f32 %v4808_v62, %v4591_v58 }
 0x718   : > { %v4810_v1 = vpop.f32.mrf.mxu1 }
 0x719   : > { %v4811_v30 = vadd.f32 %v4810_v1, %v4595_v29  ;;  %v4827_v38 = vmax.f32 %v4809_v51, 0.0 }
 0x71a   : > { %v4812_v20 = vpop.f32.mrf.mxu1 }
 0x71b   : > { %v4813_v18 = vadd.f32 %v4812_v20, %v4591_v58  ;;  %v4828_v45 = vmax.f32 %v4811_v30, 0.0 }
 0x71c   : > { %v4814_v6 = vpop.f32.mrf.mxu1 }
 0x71d   : > { %v4815_v3 = vadd.f32 %v4814_v6, %v4595_v29  ;;  %v4829_v56 = vmax.f32 %v4813_v18, 0.0  ;;  %v5354_v18 = vld [vmem:[%s8147_s12] ss:$0 sm:$0xff] }
 0x71e   : > { %v5355_v6 = vld [vmem:[%s8148_s13] ss:$0 sm:$0xff] }
 0x71f   : > { %v4830_v17 = vmax.f32 %v4815_v3, 0.0  ;;  %v4835_v46 = vpack.c.bf16 %v4829_v56, %v4827_v38 }
 0x721   : > { %v4836_v55 = vpack.c.bf16 %v4830_v17, %v4828_v45 }
 0x723   : > { %5006 = vmatprep.mubr.bf16.mxu0 %v4836_v55 }
 0x724   : > { %5007 = vmatmul.mubr.bf16.vlgmr.msra.gmra.mxu0 %v4835_v46 }
 0x730   : > { %v4818_v11 = vpop.f32.mrf.mxu1 }
 0x731   : > { %v4819_v24 = vadd.f32 %v4818_v11, %v4591_v58 }
 0x732   : > { %v4820_v52 = vpop.f32.mrf.mxu1 }
 0x733   : > { %v4821_v26 = vadd.f32 %v4820_v52, %v4595_v29  ;;  %v4831_v16 = vmax.f32 %v4819_v24, 0.0 }
 0x734   : > { %v4822_v22 = vpop.f32.mrf.mxu1 }
 0x735   : > { %v4823_v33 = vadd.f32 %v4822_v22, %v4591_v58  ;;  %v4832_v36 = vmax.f32 %v4821_v26, 0.0 }
 0x736   : > { %v4824_v28 = vpop.f32.mrf.mxu1 }
 0x737   : > { %v4825_v63 = vadd.f32 %v4824_v28, %v4595_v29  ;;  %v4833_v12 = vmax.f32 %v4823_v33, 0.0 }
 0x739   : > { %v4834_v49 = vmax.f32 %v4825_v63, 0.0  ;;  %v4837_v35 = vpack.c.bf16 %v4833_v12, %v4831_v16 }
 0x73b   : > { %v4838_v59 = vpack.c.bf16 %v4834_v49, %v4832_v36 }
 0x73d   : > { %5014 = vmatprep.mubr.bf16.mxu0 %v4838_v59 }
 0x73e   : > { %5015 = vmatmul.mubr.bf16.gmra.mxu0 %v4837_v35 }
 0x7e4   : > { %v5503_v37 = vpop.f32.mrf.mxu0 }
 0x7e6   : > { %v5504_v41 = vpop.f32.mrf.mxu0 }
 0x7e7   : > { %v5505_v42 = vadd.f32 %v5504_v41, %v5503_v37 }
 0x7e8   : > { %v5506_v31 = vpop.f32.mrf.mxu0 }
 0x7e9   : > { %v5009_v4 = vadd.f32 %v5505_v42, %v5337_v50 }
 0x7ea   : > { %v5507_v34 = vpop.f32.mrf.mxu0 }
 0x7eb   : > { %v5508_v8 = vadd.f32 %v5507_v34, %v5506_v31  ;;  %5023 = vadd.xlane.f32.xlu0 %v5009_v4 }
 0x7ed   : > { %v5012_v47 = vadd.f32 %v5508_v8, %v5337_v50 }
 0x7ef   : > { %5025 = vadd.xlane.f32.xlu1 %v5012_v47 }
 0x7fe   : > { %v5509_v14 = vpop.f32.mrf.mxu0 }
 0x800   : > { %v5510_v0 = vpop.f32.mrf.mxu0 }
 0x801   : > { %v5511_v61 = vadd.f32 %v5510_v0, %v5509_v14 }
 0x802   : > { %v5512_v60 = vpop.f32.mrf.mxu0 }
 0x803   : > { %v5017_v39 = vadd.f32 %v5511_v61, %v5337_v50 }
 0x804   : > { %v5513_v54 = vpop.f32.mrf.mxu0 }
 0x805   : > { %v5514_v23 = vadd.f32 %v5513_v54, %v5512_v60  ;;  %5027 = vadd.xlane.f32.xlu0 %v5017_v39 }
 0x807   : > { %v5020_v57 = vadd.f32 %v5514_v23, %v5337_v50 }
 0x809   : > { %5029 = vadd.xlane.f32.xlu1 %v5020_v57 }
 0x874   : > { %v5024_v44 = vpop.xlane.xlu0 %5023 }
 0x875   : > { %v5032_v15 = vmul.f32 0.0078125, %v5024_v44 }
 0x877   : > { %v5036_v53 = vsub.f32 %v5009_v4, %v5032_v15 }
 0x878   : > { %v5026_v48 = vpop.xlane.xlu1 %5025 }
 0x879   : > { %v5033_v5 = vmul.f32 0.0078125, %v5026_v48  ;;  %v5040_v40 = vmul.f32 %v5036_v53, %v5036_v53 }
 0x87b   : > { %v5037_v9 = vsub.f32 %v5012_v47, %v5033_v5  ;;  %5044 = vadd.xlane.f32.xlu0 %v5040_v40 }
 0x87d   : > { %v5041_v25 = vmul.f32 %v5037_v9, %v5037_v9 }
 0x87f   : > { %5046 = vadd.xlane.f32.xlu1 %v5041_v25 }
 0x88e   : > { %v5028_v2 = vpop.xlane.xlu0 %5027 }
 0x88f   : > { %v5034_v7 = vmul.f32 0.0078125, %v5028_v2 }
 0x891   : > { %v5038_v43 = vsub.f32 %v5017_v39, %v5034_v7 }
 0x892   : > { %v5030_v27 = vpop.xlane.xlu1 %5029 }
 0x893   : > { %v5035_v10 = vmul.f32 0.0078125, %v5030_v27  ;;  %v5042_v21 = vmul.f32 %v5038_v43, %v5038_v43 }
 0x895   : > { %v5039_v62 = vsub.f32 %v5020_v57, %v5035_v10  ;;  %5048 = vadd.xlane.f32.xlu0 %v5042_v21 }
 0x897   : > { %v5043_v13 = vmul.f32 %v5039_v62, %v5039_v62 }
 0x899   : > { %5050 = vadd.xlane.f32.xlu1 %v5043_v13 }
 0x904   : > { %v5045_v32 = vpop.xlane.xlu0 %5044 }
 0x905   : > { %v5052_v29 = vmul.f32 0.0078125, %v5045_v32 }
 0x907   : > { %v5056_v19 = vadd.f32 1e-05, %v5052_v29 }
 0x908   : > { %v5047_v58 = vpop.xlane.xlu1 %5046 }
 0x909   : > { %6023 = vrsqrt.f32 %v5056_v19  ;;  %v5053_v1 = vmul.f32 0.0078125, %v5047_v58 }
 0x90b   : > { %v5057_v20 = vadd.f32 1e-05, %v5053_v1 }
 0x90d   : > { %6025 = vrsqrt.f32 %v5057_v20 }
 0x916   : > { %v6024_v30 = vpop.eup %6023 }
 0x917   : > { %v5064_v51 = vmul.f32 %v6024_v30, %v5036_v53 }
 0x919   : > { %v5075_v3 = vmul.f32 %v5354_v18, %v5064_v51 }
 0x91a   : > { %v6026_v56 = vpop.eup %6025 }
 0x91b   : > { %v5086_v45 = vadd.f32 %v5355_v6, %v5075_v3  ;;  %v5065_v17 = vmul.f32 %v6026_v56, %v5037_v9 }
 0x91d   : > { %v5076_v38 = vmul.f32 %v5354_v18, %v5065_v17  ;;  %5090 = vst [vmem:[%s640_s30] sm:$0xff] %v5086_v45 }
 0x91e   : > { %v5049_v55 = vpop.xlane.xlu0 %5048 }
 0x91f   : > { %v5087_v46 = vadd.f32 %v5355_v6, %v5076_v38  ;;  %v5054_v11 = vmul.f32 0.0078125, %v5049_v55 }
 0x921   : > { %v5058_v52 = vadd.f32 1e-05, %v5054_v11  ;;  %5091 = vst [vmem:[%s640_s30 + $0x8] sm:$0xff] %v5087_v46 }
 0x922   : > { %v5051_v22 = vpop.xlane.xlu1 %5050 }
 0x923   : > { %6027 = vrsqrt.f32 %v5058_v52  ;;  %v5055_v26 = vmul.f32 0.0078125, %v5051_v22 }
 0x925   : > { %v5059_v33 = vadd.f32 1e-05, %v5055_v26 }
 0x927   : > { %6029 = vrsqrt.f32 %v5059_v33 }
 0x930   : > { %v6028_v24 = vpop.eup %6027 }
 0x931   : > { %v5066_v28 = vmul.f32 %v6028_v24, %v5038_v43 }
 0x933   : > { %v5077_v63 = vmul.f32 %v5354_v18, %v5066_v28 }
 0x934   : > { %v6030_v12 = vpop.eup %6029 }
 0x935   : > { %v5088_v36 = vadd.f32 %v5355_v6, %v5077_v63  ;;  %v5067_v49 = vmul.f32 %v6030_v12, %v5039_v62 }
 0x937   : > { %v5078_v16 = vmul.f32 %v5354_v18, %v5067_v49  ;;  %5092 = vst [vmem:[%s640_s30 + $0x10] sm:$0xff] %v5088_v36 }
 0x939   : > { %v5089_v59 = vadd.f32 %v5355_v6, %v5078_v16 }
 0x93b   : > { %5093 = vst [vmem:[%s640_s30 + $0x18] sm:$0xff] %v5089_v59 }
 0x93c   : > { %6045 = shalt.err (!%p6042_p4)
}
 0x93d   : > { %s6046_s25 = scalar_lea.hbm %s8089_s0, 512  ;;  %s6050_s5 = scalar_lea.hbm %s8154_s19, 1024 }
 0x93e   : > { %p6047_p7 = scmp.ne.s32.totalorder %s8089_s0, %s6046_s25  ;;  %p6051_p10 = scmp.lt.s32.totalorder %s8089_s0, %s8154_s19 }
 0x93f   : > { %p6052_p11 = scmp.lt.s32.totalorder %s6050_s5, %s6046_s25 }
 0x940   : > { %p6048_p8 = pnand %p6047_p7, %p6242_p5 }
 0x941   : > { %p6053_p12 = por %p6052_p11, %p6051_p10 }
 0x942   : > { %p6049_p9 = pneg %p6048_p8 }
 0x944   : > { %p6054_p13 = pnand %p6053_p12, %p6049_p9 }
 0x946   : > { %6057 = shalt.err (!%p6054_p13)
}
 0x947   : > { %s6097_s28 = smov 128   ;;  %s6098_s23 = smov 8  }
 0x948   : > { %5736 = dma.vmem_to_hbm [thread:$0]  (%p6242_p5), %s8091_s26, 512, %s8089_s0, %s8095_s27, %s6097_s28, %s6097_s28, %s6098_s23  }
 0x949 PF: > { %p5742_p0 = scmp.ge.s32.totalorder %s6092_s24, 2  ;;  %s5132_s3 = sand.u32 1, %s6080_s1  }
 0x94a   : > { %s5133_s6 = scalar_lea.sflag [#allocation3], %s5132_s3 }
 0x94b   : > { %p5739_p1 = pnand %p5742_p0, %p6246_p6 }
 0x94d   : > { %p5740_p2 = pneg %p5739_p1 }
 0x94f   : > { %6075 = dma.done.wait (%p5740_p2), %s5133_s6, 512  }
 0x950   : > { %6077 = vsyncadd (%p5740_p2), %s5133_s6, 4294966784  ;;  %s8307_s24 = sld [smem:[#allocation6_spill]]  ;;  %s8310_s1 = smov %s6084_s22 }
 0x951   : > { %s8308_s25 = sld [smem:[#allocation5_spill]] }
 0x952   : > { %s8309_s23 = sld [smem:[#allocation7_spill]] }
 0x956   : > { %p31_p3 = scmp.ge.s32.totalorder %s8307_s24, 4  }
 0x957   : > { %s8311_s22 = smov %s8308_s25 }
 0x958   :  { %33 = sbr.rel (!%p31_p3) target bundleno = 11 (0xb), region = 146 }
 0x95d   :  { %5146 = vsyncpa [#allocation3], 1 }
 0x95e   :  { %5148 = vsyncpa [#allocation3 + $0x1], 1 }

</bundles_post_ra>
